<compile_context>
chip_gen: v6e
topology: v6e:2x2x1
jax: 0.10.0
libtpu: 0.0.40
codegen_flags: <defaults>
</compile_context>

<pallas_src>
import functools

import jax
import jax.numpy as jnp
from jax import lax
from jax.experimental import pallas as pl
from jax.experimental.pallas import tpu as pltpu

EPS = 1e-5          # PyTorch nn.LayerNorm default
NEG_INF = -1e30


def _gtc_kernel(x_ref,
                wqkv_ref, bqkv_ref, wo_ref, bo_ref, mask_ref,
                g1_ref, be1_ref,
                w1_ref, b1_ref, w2_ref, b2_ref,
                g2_ref, be2_ref,
                o_ref,
                *, n_head):
    x = x_ref[0]                                  # (C, TV) float32, lane-dense
    C, TV = x.shape
    dh = C // n_head
    scale = 1.0 / (dh ** 0.5)

    # ---- fused QKV projection: one MXU matmul (3C, C) @ (C, TV) ----
    qkv = (jnp.dot(wqkv_ref[...], x, preferred_element_type=jnp.float32)
           + bqkv_ref[...])                       # (3C, TV)
    q_t = jnp.transpose(qkv[0:C]) * scale         # (TV, C), scale folded into Q
    k = qkv[C:2 * C]                              # (C, TV)
    v = qkv[2 * C:3 * C]                          # (C, TV)

    # Additive mask over flattened lane pairs: 0 where (same vertex AND s <= t),
    # NEG_INF elsewhere.  Precomputed in the wrapper.
    bias = mask_ref[...]                          # (TV, TV)

    head_outs = []
    for h in range(n_head):                       # n_head is small & static -> unrolled
        qh = q_t[:, h * dh:(h + 1) * dh]          # (TV, dh)
        kh = k[h * dh:(h + 1) * dh]               # (dh, TV)
        vh = v[h * dh:(h + 1) * dh]               # (dh, TV)

        # scores[l, m] = <q[:, l], k[:, m]> * scale + mask  (dense 128x128 MXU matmul)
        s = jnp.dot(qh, kh, preferred_element_type=jnp.float32) + bias
        m = jnp.max(s, axis=-1, keepdims=True)
        e = jnp.exp(s - m)
        # reciprocal-multiply: only the (TV, 1) row sums are divided.
        p = e * (1.0 / jnp.sum(e, axis=-1, keepdims=True))
        # att[d, l] = sum_m vh[d, m] * p[l, m]    (flash-style NT matmul)
        head_outs.append(
            lax.dot_general(vh, p, (((1,), (1,)), ((), ())),
                            preferred_element_type=jnp.float32))   # (dh, TV)
    att = jnp.concatenate(head_outs, axis=0)      # (C, TV)  (sublane concat)
    att = (jnp.dot(wo_ref[...], att, preferred_element_type=jnp.float32)
           + bo_ref[...])

    # ---- residual + LayerNorm over all C*T*V elements (one-pass stats) ----
    h1 = att + x
    mu1 = jnp.mean(h1, keepdims=True)
    var1 = jnp.mean(h1 * h1, keepdims=True) - mu1 * mu1
    h1 = (h1 - mu1) * lax.rsqrt(var1 + EPS) * g1_ref[...] + be1_ref[...]

    # ---- FFN: 1x1 conv C->4C, ReLU, 1x1 conv 4C->C (lane-dense matmuls) ----
    z = jnp.maximum(
        jnp.dot(w1_ref[...], h1, preferred_element_type=jnp.float32) + b1_ref[...],
        0.0)                                      # (4C, TV)
    f = jnp.dot(w2_ref[...], z, preferred_element_type=jnp.float32) + b2_ref[...]

    # ---- residual + second LayerNorm ----
    h2 = f + h1
    mu2 = jnp.mean(h2, keepdims=True)
    var2 = jnp.mean(h2 * h2, keepdims=True) - mu2 * mu2
    o_ref[0] = (h2 - mu2) * lax.rsqrt(var2 + EPS) * g2_ref[...] + be2_ref[...]


def global_temporal_casual_forward(x_nchw, params, *, n_head, causal):
    """x_nchw: (B, C, T, V) float32 (PyTorch NCHW layout)."""
    B, C, T, V = x_nchw.shape
    TV = T * V
    hidden = params["w1"].shape[0]

    # Free, contiguous reshapes only (no HBM transposes around the kernel).
    x_flat = x_nchw.reshape(B, C, TV)
    flat_cvt = lambda p: p.reshape(C, TV)         # (C, T, V) -> (C, T*V), contiguous

    # Additive attention mask over flattened lane indices l = t*V + v:
    # allow (l, m) iff same vertex and (not causal or s <= t).
    t_idx = jnp.arange(TV, dtype=jnp.int32) // V
    v_idx = jnp.arange(TV, dtype=jnp.int32) % V
    allow = v_idx[:, None] == v_idx[None, :]
    if causal:
        allow = allow & (t_idx[None, :] <= t_idx[:, None])
    attn_bias = jnp.where(allow, 0.0, NEG_INF).astype(jnp.float32)

    rep = lambda shape: pl.BlockSpec(shape, lambda b: (0,) * len(shape))
    kernel = functools.partial(_gtc_kernel, n_head=n_head)

    out_flat = pl.pallas_call(
        kernel,
        out_shape=jax.ShapeDtypeStruct((B, C, TV), jnp.float32),
        grid_spec=pltpu.PrefetchScalarGridSpec(
            num_scalar_prefetch=0,
            grid=(B,),
            in_specs=[
                pl.BlockSpec((1, C, TV), lambda b: (b, 0, 0)),    # x
                rep((3 * C, C)), rep((3 * C, 1)),                 # wqkv, bqkv
                rep((C, C)), rep((C, 1)),                         # wo, bo
                rep((TV, TV)),                                    # attention mask
                rep((C, TV)), rep((C, TV)),                       # gamma1, beta1
                rep((hidden, C)), rep((hidden, 1)),               # w1, b1
                rep((C, hidden)), rep((C, 1)),                    # w2, b2
                rep((C, TV)), rep((C, TV)),                       # gamma2, beta2
            ],
            out_specs=pl.BlockSpec((1, C, TV), lambda b: (b, 0, 0)),
        ),
        compiler_params=pltpu.CompilerParams(
            dimension_semantics=("parallel",)),                   # 2 TCs on v7x
    )(
        x_flat,
        params["wqkv"], params["bqkv"], params["wo"], params["bo"],
        attn_bias,
        flat_cvt(params["gamma1"]), flat_cvt(params["beta1"]),
        params["w1"], params["b1"], params["w2"], params["b2"],
        flat_cvt(params["gamma2"]), flat_cvt(params["beta2"]),
    )
    return out_flat.reshape(B, C, T, V)


def _reference(x, params, *, n_head, causal):
    """Pure-JAX reference with identical math, in native (B, C, T, V) layout."""
    B, C, T, V = x.shape
    dh = C // n_head

    def conv1x1(a, w, b):                         # w: (C_out, C_in), b: (C_out,)
        return jnp.einsum("oc,bctv->botv", w, a) + b[None, :, None, None]

    qkv = conv1x1(x, params["wqkv"], params["bqkv"][:, 0])        # (B, 3C, T, V)
    q = qkv[:, 0:C].reshape(B, n_head, dh, T, V)
    k = qkv[:, C:2 * C].reshape(B, n_head, dh, T, V)
    v = qkv[:, 2 * C:3 * C].reshape(B, n_head, dh, T, V)

    scores = jnp.einsum("bhdtv,bhdsv->bhtsv", q, k) / (dh ** 0.5)
    if causal:
        allow = jnp.arange(T)[:, None] >= jnp.arange(T)[None, :]  # allow[t, s] = s <= t
        scores = jnp.where(allow[None, None, :, :, None], scores, NEG_INF)
    p = jax.nn.softmax(scores, axis=3)
    att = jnp.einsum("bhtsv,bhdsv->bhdtv", p, v).reshape(B, C, T, V)
    att = conv1x1(att, params["wo"], params["bo"][:, 0])

    def layer_norm(a, g, be):
        mu = jnp.mean(a, axis=(1, 2, 3), keepdims=True)
        var = jnp.mean((a - mu) ** 2, axis=(1, 2, 3), keepdims=True)
        return (a - mu) * lax.rsqrt(var + EPS) * g[None] + be[None]

    h1 = layer_norm(att + x, params["gamma1"], params["beta1"])
    z = jnp.maximum(conv1x1(h1, params["w1"], params["b1"][:, 0]), 0.0)
    f = conv1x1(z, params["w2"], params["b2"][:, 0])
    return layer_norm(f + h1, params["gamma2"], params["beta2"])


def init_params(key, C, T, V, hidden):
    ks = jax.random.split(key, 10)
    s_c = 1.0 / (C ** 0.5)
    s_h = 1.0 / (hidden ** 0.5)
    return {
        # fused QKV 1x1-conv weight/bias: rows [0:C)=Q, [C:2C)=K, [2C:3C)=V
        "wqkv": jax.random.normal(ks[0], (3 * C, C), jnp.float32) * s_c,
        "bqkv": jax.random.normal(ks[1], (3 * C, 1), jnp.float32) * 0.02,
        "wo": jax.random.normal(ks[2], (C, C), jnp.float32) * s_c,
        "bo": jax.random.normal(ks[3], (C, 1), jnp.float32) * 0.02,
        # LayerNorm affine params kept in PyTorch nn.LayerNorm([C, T, V]) shape;
        # non-trivial values so a layout bug would be caught by the check.
        "gamma1": 1.0 + 0.1 * jax.random.normal(ks[4], (C, T, V), jnp.float32),
        "beta1": 0.1 * jax.random.normal(ks[5], (C, T, V), jnp.float32),
        "gamma2": 1.0 + 0.1 * jax.random.normal(ks[6], (C, T, V), jnp.float32),
        "beta2": 0.1 * jax.random.normal(ks[7], (C, T, V), jnp.float32),
        # FFN 1x1-conv weights
        "w1": jax.random.normal(ks[8], (hidden, C), jnp.float32) * s_c,
        "b1": jnp.zeros((hidden, 1), jnp.float32),
        "w2": jax.random.normal(ks[9], (C, hidden), jnp.float32) * s_h,
        "b2": jnp.zeros((C, 1), jnp.float32),
    }


if __name__ == "__main__":
    # Keep the pure-JAX reference matmuls in full f32 so the comparison is meaningful.
    jax.config.update("jax_default_matmul_precision", "highest")

    # module args: n_channel=8, n_his=8, n_vertex=16, n_head=2, mask=True
    B, C, T, V = 2, 8, 8, 16          # T*V = 128 -> full lane occupancy
    n_head, causal = 2, True
    hidden = 4 * C

    key = jax.random.PRNGKey(0)
    kx, kp = jax.random.split(key)
    x = jax.random.normal(kx, (B, C, T, V), jnp.float32)   # PyTorch NCHW layout
    params = init_params(kp, C, T, V, hidden)

    out = global_temporal_casual_forward(x, params, n_head=n_head, causal=causal)
    out = jax.block_until_ready(out)

    ref = _reference(x, params, n_head=n_head, causal=causal)
    assert out.shape == (B, C, T, V)
    err = float(jnp.max(jnp.abs(out - ref)))
    assert err < 1e-3, f"kernel/reference mismatch: max abs err = {err}"

    print("KERNEL_OK")
</pallas_src>

<mosaic_0001>
module attributes {stable_mosaic.version = 11 : i64} {
  func.func @_gtc_kernel(%arg0: i32, %arg1: memref<1x8x128xf32, #tpu.memory_space<vmem>>, %arg2: memref<24x8xf32, #tpu.memory_space<vmem>>, %arg3: memref<24x1xf32, #tpu.memory_space<vmem>>, %arg4: memref<8x8xf32, #tpu.memory_space<vmem>>, %arg5: memref<8x1xf32, #tpu.memory_space<vmem>>, %arg6: memref<128x128xf32, #tpu.memory_space<vmem>>, %arg7: memref<8x128xf32, #tpu.memory_space<vmem>>, %arg8: memref<8x128xf32, #tpu.memory_space<vmem>>, %arg9: memref<32x8xf32, #tpu.memory_space<vmem>>, %arg10: memref<32x1xf32, #tpu.memory_space<vmem>>, %arg11: memref<8x32xf32, #tpu.memory_space<vmem>>, %arg12: memref<8x1xf32, #tpu.memory_space<vmem>>, %arg13: memref<8x128xf32, #tpu.memory_space<vmem>>, %arg14: memref<8x128xf32, #tpu.memory_space<vmem>>, %arg15: memref<1x8x128xf32, #tpu.memory_space<vmem>>) attributes {dimension_semantics = [#tpu.dimension_semantics<parallel>], iteration_bounds = array<i64: 2>, scalar_prefetch = 0 : i64, scratch_operands = 0 : i64, tpu.core_type = #tpu.core_type<tc>, window_params = [{transform_indices = @transform_0, window_bounds = array<i64: 1, 8, 128>}, {pipeline_mode = #tpu.pipeline_mode<synchronous>, transform_indices = @transform_1, window_bounds = array<i64: 24, 8>}, {pipeline_mode = #tpu.pipeline_mode<synchronous>, transform_indices = @transform_2, window_bounds = array<i64: 24, 1>}, {pipeline_mode = #tpu.pipeline_mode<synchronous>, transform_indices = @transform_3, window_bounds = array<i64: 8, 8>}, {pipeline_mode = #tpu.pipeline_mode<synchronous>, transform_indices = @transform_4, window_bounds = array<i64: 8, 1>}, {pipeline_mode = #tpu.pipeline_mode<synchronous>, transform_indices = @transform_5, window_bounds = array<i64: 128, 128>}, {pipeline_mode = #tpu.pipeline_mode<synchronous>, transform_indices = @transform_6, window_bounds = array<i64: 8, 128>}, {pipeline_mode = #tpu.pipeline_mode<synchronous>, transform_indices = @transform_7, window_bounds = array<i64: 8, 128>}, {pipeline_mode = #tpu.pipeline_mode<synchronous>, transform_indices = @transform_8, window_bounds = array<i64: 32, 8>}, {pipeline_mode = #tpu.pipeline_mode<synchronous>, transform_indices = @transform_9, window_bounds = array<i64: 32, 1>}, {pipeline_mode = #tpu.pipeline_mode<synchronous>, transform_indices = @transform_10, window_bounds = array<i64: 8, 32>}, {pipeline_mode = #tpu.pipeline_mode<synchronous>, transform_indices = @transform_11, window_bounds = array<i64: 8, 1>}, {pipeline_mode = #tpu.pipeline_mode<synchronous>, transform_indices = @transform_12, window_bounds = array<i64: 8, 128>}, {pipeline_mode = #tpu.pipeline_mode<synchronous>, transform_indices = @transform_13, window_bounds = array<i64: 8, 128>}, {transform_indices = @transform_14, window_bounds = array<i64: 1, 8, 128>}]} {
    %c0 = arith.constant 0 : index
    %c0_0 = arith.constant 0 : index
    %c0_1 = arith.constant 0 : index
    %0 = vector.load %arg1[%c0, %c0_0, %c0_1] : memref<1x8x128xf32, #tpu.memory_space<vmem>>, vector<1x8x128xf32>
    %1 = vector.shape_cast %0 : vector<1x8x128xf32> to vector<8x128xf32>
    %c0_2 = arith.constant 0 : index
    %c0_3 = arith.constant 0 : index
    %2 = vector.load %arg2[%c0_2, %c0_3] : memref<24x8xf32, #tpu.memory_space<vmem>>, vector<24x8xf32>
    %cst = arith.constant dense<0.000000e+00> : vector<24x128xf32>
    %3 = tpu.matmul %2, %1, %cst {dimension_numbers = #tpu.dot_dimension_numbers<[1], [0], [0], [1], [0, 0, 1, 1], [], []>, precision = #tpu.contract_precision<fp32>} : vector<24x8xf32>, vector<8x128xf32>, vector<24x128xf32> -> vector<24x128xf32>
    %c0_4 = arith.constant 0 : index
    %c0_5 = arith.constant 0 : index
    %4 = vector.load %arg3[%c0_4, %c0_5] : memref<24x1xf32, #tpu.memory_space<vmem>>, vector<24x1xf32>
    %5 = vector.broadcast %4 : vector<24x1xf32> to vector<24x128xf32>
    %6 = arith.addf %3, %5 : vector<24x128xf32>
    %7 = vector.extract_strided_slice %6 {offsets = [0, 0], sizes = [8, 128], strides = [1, 1]} : vector<24x128xf32> to vector<8x128xf32>
    %8 = tpu.transpose %7, [1, 0] : vector<8x128xf32> -> vector<128x8xf32>
    %cst_6 = arith.constant 5.000000e-01 : f32
    %9 = vector.broadcast %cst_6 : f32 to vector<128x8xf32>
    %10 = arith.mulf %8, %9 : vector<128x8xf32>
    %11 = vector.extract_strided_slice %6 {offsets = [8, 0], sizes = [8, 128], strides = [1, 1]} : vector<24x128xf32> to vector<8x128xf32>
    %12 = vector.extract_strided_slice %6 {offsets = [16, 0], sizes = [8, 128], strides = [1, 1]} : vector<24x128xf32> to vector<8x128xf32>
    %c0_7 = arith.constant 0 : index
    %c0_8 = arith.constant 0 : index
    %13 = vector.load %arg6[%c0_7, %c0_8] : memref<128x128xf32, #tpu.memory_space<vmem>>, vector<128x128xf32>
    %14 = vector.extract_strided_slice %10 {offsets = [0, 0], sizes = [128, 4], strides = [1, 1]} : vector<128x8xf32> to vector<128x4xf32>
    %15 = vector.extract_strided_slice %11 {offsets = [0, 0], sizes = [4, 128], strides = [1, 1]} : vector<8x128xf32> to vector<4x128xf32>
    %16 = vector.extract_strided_slice %12 {offsets = [0, 0], sizes = [4, 128], strides = [1, 1]} : vector<8x128xf32> to vector<4x128xf32>
    %cst_9 = arith.constant dense<0.000000e+00> : vector<128x128xf32>
    %17 = tpu.matmul %14, %15, %cst_9 {dimension_numbers = #tpu.dot_dimension_numbers<[1], [0], [0], [1], [0, 0, 1, 1], [], []>, precision = #tpu.contract_precision<fp32>} : vector<128x4xf32>, vector<4x128xf32>, vector<128x128xf32> -> vector<128x128xf32>
    %18 = arith.addf %17, %13 : vector<128x128xf32>
    %cst_10 = arith.constant dense<0xFF800000> : vector<128xf32>
    %19 = vector.multi_reduction <maximumf>, %18, %cst_10 [1] : vector<128x128xf32> to vector<128xf32>
    %20 = vector.shape_cast %19 : vector<128xf32> to vector<128x1xf32>
    %21 = vector.broadcast %20 : vector<128x1xf32> to vector<128x128xf32>
    %22 = arith.subf %18, %21 : vector<128x128xf32>
    %23 = math.exp %22 : vector<128x128xf32>
    %cst_11 = arith.constant dense<0.000000e+00> : vector<128xf32>
    %24 = vector.multi_reduction <add>, %23, %cst_11 [1] : vector<128x128xf32> to vector<128xf32>
    %25 = vector.shape_cast %24 : vector<128xf32> to vector<128x1xf32>
    %cst_12 = arith.constant 1.000000e+00 : f32
    %26 = vector.broadcast %cst_12 : f32 to vector<128x1xf32>
    %27 = arith.divf %26, %25 : vector<128x1xf32>
    %28 = vector.broadcast %27 : vector<128x1xf32> to vector<128x128xf32>
    %29 = arith.mulf %23, %28 : vector<128x128xf32>
    %cst_13 = arith.constant dense<0.000000e+00> : vector<4x128xf32>
    %30 = tpu.matmul %16, %29, %cst_13 {dimension_numbers = #tpu.dot_dimension_numbers<[1], [1], [0], [0], [0, 0, 1, 0], [], []>, precision = #tpu.contract_precision<fp32>} : vector<4x128xf32>, vector<128x128xf32>, vector<4x128xf32> -> vector<4x128xf32>
    %31 = vector.extract_strided_slice %10 {offsets = [0, 4], sizes = [128, 4], strides = [1, 1]} : vector<128x8xf32> to vector<128x4xf32>
    %32 = vector.extract_strided_slice %11 {offsets = [4, 0], sizes = [4, 128], strides = [1, 1]} : vector<8x128xf32> to vector<4x128xf32>
    %33 = vector.extract_strided_slice %12 {offsets = [4, 0], sizes = [4, 128], strides = [1, 1]} : vector<8x128xf32> to vector<4x128xf32>
    %cst_14 = arith.constant dense<0.000000e+00> : vector<128x128xf32>
    %34 = tpu.matmul %31, %32, %cst_14 {dimension_numbers = #tpu.dot_dimension_numbers<[1], [0], [0], [1], [0, 0, 1, 1], [], []>, precision = #tpu.contract_precision<fp32>} : vector<128x4xf32>, vector<4x128xf32>, vector<128x128xf32> -> vector<128x128xf32>
    %35 = arith.addf %34, %13 : vector<128x128xf32>
    %cst_15 = arith.constant dense<0xFF800000> : vector<128xf32>
    %36 = vector.multi_reduction <maximumf>, %35, %cst_15 [1] : vector<128x128xf32> to vector<128xf32>
    %37 = vector.shape_cast %36 : vector<128xf32> to vector<128x1xf32>
    %38 = vector.broadcast %37 : vector<128x1xf32> to vector<128x128xf32>
    %39 = arith.subf %35, %38 : vector<128x128xf32>
    %40 = math.exp %39 : vector<128x128xf32>
    %cst_16 = arith.constant dense<0.000000e+00> : vector<128xf32>
    %41 = vector.multi_reduction <add>, %40, %cst_16 [1] : vector<128x128xf32> to vector<128xf32>
    %42 = vector.shape_cast %41 : vector<128xf32> to vector<128x1xf32>
    %cst_17 = arith.constant 1.000000e+00 : f32
    %43 = vector.broadcast %cst_17 : f32 to vector<128x1xf32>
    %44 = arith.divf %43, %42 : vector<128x1xf32>
    %45 = vector.broadcast %44 : vector<128x1xf32> to vector<128x128xf32>
    %46 = arith.mulf %40, %45 : vector<128x128xf32>
    %cst_18 = arith.constant dense<0.000000e+00> : vector<4x128xf32>
    %47 = tpu.matmul %33, %46, %cst_18 {dimension_numbers = #tpu.dot_dimension_numbers<[1], [1], [0], [0], [0, 0, 1, 0], [], []>, precision = #tpu.contract_precision<fp32>} : vector<4x128xf32>, vector<128x128xf32>, vector<4x128xf32> -> vector<4x128xf32>
    %48 = tpu.concatenate %30, %47 in 0 : vector<4x128xf32>, vector<4x128xf32> -> vector<8x128xf32>
    %c0_19 = arith.constant 0 : index
    %c0_20 = arith.constant 0 : index
    %49 = vector.load %arg4[%c0_19, %c0_20] : memref<8x8xf32, #tpu.memory_space<vmem>>, vector<8x8xf32>
    %cst_21 = arith.constant dense<0.000000e+00> : vector<8x128xf32>
    %50 = tpu.matmul %49, %48, %cst_21 {dimension_numbers = #tpu.dot_dimension_numbers<[1], [0], [0], [1], [0, 0, 1, 1], [], []>, precision = #tpu.contract_precision<fp32>} : vector<8x8xf32>, vector<8x128xf32>, vector<8x128xf32> -> vector<8x128xf32>
    %c0_22 = arith.constant 0 : index
    %c0_23 = arith.constant 0 : index
    %51 = vector.load %arg5[%c0_22, %c0_23] : memref<8x1xf32, #tpu.memory_space<vmem>>, vector<8x1xf32>
    %52 = vector.broadcast %51 : vector<8x1xf32> to vector<8x128xf32>
    %53 = arith.addf %50, %52 : vector<8x128xf32>
    %54 = arith.addf %53, %1 : vector<8x128xf32>
    %55 = vector.shape_cast %54 : vector<8x128xf32> to vector<1x8x128xf32>
    %cst_24 = arith.constant dense<0.000000e+00> : vector<1xf32>
    %56 = vector.multi_reduction <add>, %55, %cst_24 [1, 2] : vector<1x8x128xf32> to vector<1xf32>
    %57 = vector.shape_cast %56 : vector<1xf32> to vector<1x1x1xf32>
    %58 = vector.extract %57[0, 0, 0] : f32 from vector<1x1x1xf32>
    %59 = vector.broadcast %58 : f32 to vector<1x1xf32>
    %cst_25 = arith.constant 1.024000e+03 : f32
    %60 = vector.broadcast %cst_25 : f32 to vector<1x1xf32>
    %61 = arith.divf %59, %60 : vector<1x1xf32>
    %62 = arith.mulf %54, %54 : vector<8x128xf32>
    %63 = vector.shape_cast %62 : vector<8x128xf32> to vector<1x8x128xf32>
    %cst_26 = arith.constant dense<0.000000e+00> : vector<1xf32>
    %64 = vector.multi_reduction <add>, %63, %cst_26 [1, 2] : vector<1x8x128xf32> to vector<1xf32>
    %65 = vector.shape_cast %64 : vector<1xf32> to vector<1x1x1xf32>
    %66 = vector.extract %65[0, 0, 0] : f32 from vector<1x1x1xf32>
    %67 = vector.broadcast %66 : f32 to vector<1x1xf32>
    %cst_27 = arith.constant 1.024000e+03 : f32
    %68 = vector.broadcast %cst_27 : f32 to vector<1x1xf32>
    %69 = arith.divf %67, %68 : vector<1x1xf32>
    %70 = arith.mulf %61, %61 : vector<1x1xf32>
    %71 = arith.subf %69, %70 : vector<1x1xf32>
    %72 = vector.broadcast %61 : vector<1x1xf32> to vector<8x128xf32>
    %73 = arith.subf %54, %72 : vector<8x128xf32>
    %cst_28 = arith.constant 9.99999974E-6 : f32
    %74 = vector.broadcast %cst_28 : f32 to vector<1x1xf32>
    %75 = arith.addf %71, %74 : vector<1x1xf32>
    %76 = math.rsqrt %75 : vector<1x1xf32>
    %77 = vector.broadcast %76 : vector<1x1xf32> to vector<8x128xf32>
    %78 = arith.mulf %73, %77 : vector<8x128xf32>
    %c0_29 = arith.constant 0 : index
    %c0_30 = arith.constant 0 : index
    %79 = vector.load %arg7[%c0_29, %c0_30] : memref<8x128xf32, #tpu.memory_space<vmem>>, vector<8x128xf32>
    %80 = arith.mulf %78, %79 : vector<8x128xf32>
    %c0_31 = arith.constant 0 : index
    %c0_32 = arith.constant 0 : index
    %81 = vector.load %arg8[%c0_31, %c0_32] : memref<8x128xf32, #tpu.memory_space<vmem>>, vector<8x128xf32>
    %82 = arith.addf %80, %81 : vector<8x128xf32>
    %c0_33 = arith.constant 0 : index
    %c0_34 = arith.constant 0 : index
    %83 = vector.load %arg9[%c0_33, %c0_34] : memref<32x8xf32, #tpu.memory_space<vmem>>, vector<32x8xf32>
    %cst_35 = arith.constant dense<0.000000e+00> : vector<32x128xf32>
    %84 = tpu.matmul %83, %82, %cst_35 {dimension_numbers = #tpu.dot_dimension_numbers<[1], [0], [0], [1], [0, 0, 1, 1], [], []>, precision = #tpu.contract_precision<fp32>} : vector<32x8xf32>, vector<8x128xf32>, vector<32x128xf32> -> vector<32x128xf32>
    %c0_36 = arith.constant 0 : index
    %c0_37 = arith.constant 0 : index
    %85 = vector.load %arg10[%c0_36, %c0_37] : memref<32x1xf32, #tpu.memory_space<vmem>>, vector<32x1xf32>
    %86 = vector.broadcast %85 : vector<32x1xf32> to vector<32x128xf32>
    %87 = arith.addf %84, %86 : vector<32x128xf32>
    %cst_38 = arith.constant 0.000000e+00 : f32
    %88 = vector.broadcast %cst_38 : f32 to vector<32x128xf32>
    %89 = arith.maximumf %87, %88 : vector<32x128xf32>
    %c0_39 = arith.constant 0 : index
    %c0_40 = arith.constant 0 : index
    %90 = vector.load %arg11[%c0_39, %c0_40] : memref<8x32xf32, #tpu.memory_space<vmem>>, vector<8x32xf32>
    %cst_41 = arith.constant dense<0.000000e+00> : vector<8x128xf32>
    %91 = tpu.matmul %90, %89, %cst_41 {dimension_numbers = #tpu.dot_dimension_numbers<[1], [0], [0], [1], [0, 0, 1, 1], [], []>, precision = #tpu.contract_precision<fp32>} : vector<8x32xf32>, vector<32x128xf32>, vector<8x128xf32> -> vector<8x128xf32>
    %c0_42 = arith.constant 0 : index
    %c0_43 = arith.constant 0 : index
    %92 = vector.load %arg12[%c0_42, %c0_43] : memref<8x1xf32, #tpu.memory_space<vmem>>, vector<8x1xf32>
    %93 = vector.broadcast %92 : vector<8x1xf32> to vector<8x128xf32>
    %94 = arith.addf %91, %93 : vector<8x128xf32>
    %95 = arith.addf %94, %82 : vector<8x128xf32>
    %96 = vector.shape_cast %95 : vector<8x128xf32> to vector<1x8x128xf32>
    %cst_44 = arith.constant dense<0.000000e+00> : vector<1xf32>
    %97 = vector.multi_reduction <add>, %96, %cst_44 [1, 2] : vector<1x8x128xf32> to vector<1xf32>
    %98 = vector.shape_cast %97 : vector<1xf32> to vector<1x1x1xf32>
    %99 = vector.extract %98[0, 0, 0] : f32 from vector<1x1x1xf32>
    %100 = vector.broadcast %99 : f32 to vector<1x1xf32>
    %cst_45 = arith.constant 1.024000e+03 : f32
    %101 = vector.broadcast %cst_45 : f32 to vector<1x1xf32>
    %102 = arith.divf %100, %101 : vector<1x1xf32>
    %103 = arith.mulf %95, %95 : vector<8x128xf32>
    %104 = vector.shape_cast %103 : vector<8x128xf32> to vector<1x8x128xf32>
    %cst_46 = arith.constant dense<0.000000e+00> : vector<1xf32>
    %105 = vector.multi_reduction <add>, %104, %cst_46 [1, 2] : vector<1x8x128xf32> to vector<1xf32>
    %106 = vector.shape_cast %105 : vector<1xf32> to vector<1x1x1xf32>
    %107 = vector.extract %106[0, 0, 0] : f32 from vector<1x1x1xf32>
    %108 = vector.broadcast %107 : f32 to vector<1x1xf32>
    %cst_47 = arith.constant 1.024000e+03 : f32
    %109 = vector.broadcast %cst_47 : f32 to vector<1x1xf32>
    %110 = arith.divf %108, %109 : vector<1x1xf32>
    %111 = arith.mulf %102, %102 : vector<1x1xf32>
    %112 = arith.subf %110, %111 : vector<1x1xf32>
    %113 = vector.broadcast %102 : vector<1x1xf32> to vector<8x128xf32>
    %114 = arith.subf %95, %113 : vector<8x128xf32>
    %cst_48 = arith.constant 9.99999974E-6 : f32
    %115 = vector.broadcast %cst_48 : f32 to vector<1x1xf32>
    %116 = arith.addf %112, %115 : vector<1x1xf32>
    %117 = math.rsqrt %116 : vector<1x1xf32>
    %118 = vector.broadcast %117 : vector<1x1xf32> to vector<8x128xf32>
    %119 = arith.mulf %114, %118 : vector<8x128xf32>
    %c0_49 = arith.constant 0 : index
    %c0_50 = arith.constant 0 : index
    %120 = vector.load %arg13[%c0_49, %c0_50] : memref<8x128xf32, #tpu.memory_space<vmem>>, vector<8x128xf32>
    %121 = arith.mulf %119, %120 : vector<8x128xf32>
    %c0_51 = arith.constant 0 : index
    %c0_52 = arith.constant 0 : index
    %122 = vector.load %arg14[%c0_51, %c0_52] : memref<8x128xf32, #tpu.memory_space<vmem>>, vector<8x128xf32>
    %123 = arith.addf %121, %122 : vector<8x128xf32>
    %c0_53 = arith.constant 0 : index
    %c0_54 = arith.constant 0 : index
    %c0_55 = arith.constant 0 : index
    %124 = vector.load %arg15[%c0_53, %c0_54, %c0_55] : memref<1x8x128xf32, #tpu.memory_space<vmem>>, vector<1x8x128xf32>
    %125 = vector.shape_cast %124 : vector<1x8x128xf32> to vector<8x128xf32>
    %126 = vector.shape_cast %123 : vector<8x128xf32> to vector<1x8x128xf32>
    tpu.vector_store %arg15[%c0_53, %c0_54, %c0_55], %126 {strides = array<i32>} : memref<1x8x128xf32, #tpu.memory_space<vmem>>, vector<1x8x128xf32>,
    return
  }
  func.func @transform_0(%arg0: i32) -> (i32, i32, i32) {
    %c0_i32 = arith.constant 0 : i32
    %c0_i32_0 = arith.constant 0 : i32
    %c0_i32_1 = arith.constant 0 : i32
    return %arg0, %c0_i32, %c0_i32_0 : i32, i32, i32
  }
  func.func @transform_1(%arg0: i32) -> (i32, i32) {
    %c0_i32 = arith.constant 0 : i32
    %c0_i32_0 = arith.constant 0 : i32
    %c0_i32_1 = arith.constant 0 : i32
    return %c0_i32, %c0_i32_0 : i32, i32
  }
  func.func @transform_2(%arg0: i32) -> (i32, i32) {
    %c0_i32 = arith.constant 0 : i32
    %c0_i32_0 = arith.constant 0 : i32
    %c0_i32_1 = arith.constant 0 : i32
    return %c0_i32, %c0_i32_0 : i32, i32
  }
  func.func @transform_3(%arg0: i32) -> (i32, i32) {
    %c0_i32 = arith.constant 0 : i32
    %c0_i32_0 = arith.constant 0 : i32
    %c0_i32_1 = arith.constant 0 : i32
    return %c0_i32, %c0_i32_0 : i32, i32
  }
  func.func @transform_4(%arg0: i32) -> (i32, i32) {
    %c0_i32 = arith.constant 0 : i32
    %c0_i32_0 = arith.constant 0 : i32
    %c0_i32_1 = arith.constant 0 : i32
    return %c0_i32, %c0_i32_0 : i32, i32
  }
  func.func @transform_5(%arg0: i32) -> (i32, i32) {
    %c0_i32 = arith.constant 0 : i32
    %c0_i32_0 = arith.constant 0 : i32
    %c0_i32_1 = arith.constant 0 : i32
    return %c0_i32, %c0_i32_0 : i32, i32
  }
  func.func @transform_6(%arg0: i32) -> (i32, i32) {
    %c0_i32 = arith.constant 0 : i32
    %c0_i32_0 = arith.constant 0 : i32
    %c0_i32_1 = arith.constant 0 : i32
    return %c0_i32, %c0_i32_0 : i32, i32
  }
  func.func @transform_7(%arg0: i32) -> (i32, i32) {
    %c0_i32 = arith.constant 0 : i32
    %c0_i32_0 = arith.constant 0 : i32
    %c0_i32_1 = arith.constant 0 : i32
    return %c0_i32, %c0_i32_0 : i32, i32
  }
  func.func @transform_8(%arg0: i32) -> (i32, i32) {
    %c0_i32 = arith.constant 0 : i32
    %c0_i32_0 = arith.constant 0 : i32
    %c0_i32_1 = arith.constant 0 : i32
    return %c0_i32, %c0_i32_0 : i32, i32
  }
  func.func @transform_9(%arg0: i32) -> (i32, i32) {
    %c0_i32 = arith.constant 0 : i32
    %c0_i32_0 = arith.constant 0 : i32
    %c0_i32_1 = arith.constant 0 : i32
    return %c0_i32, %c0_i32_0 : i32, i32
  }
  func.func @transform_10(%arg0: i32) -> (i32, i32) {
    %c0_i32 = arith.constant 0 : i32
    %c0_i32_0 = arith.constant 0 : i32
    %c0_i32_1 = arith.constant 0 : i32
    return %c0_i32, %c0_i32_0 : i32, i32
  }
  func.func @transform_11(%arg0: i32) -> (i32, i32) {
    %c0_i32 = arith.constant 0 : i32
    %c0_i32_0 = arith.constant 0 : i32
    %c0_i32_1 = arith.constant 0 : i32
    return %c0_i32, %c0_i32_0 : i32, i32
  }
  func.func @transform_12(%arg0: i32) -> (i32, i32) {
    %c0_i32 = arith.constant 0 : i32
    %c0_i32_0 = arith.constant 0 : i32
    %c0_i32_1 = arith.constant 0 : i32
    return %c0_i32, %c0_i32_0 : i32, i32
  }
  func.func @transform_13(%arg0: i32) -> (i32, i32) {
    %c0_i32 = arith.constant 0 : i32
    %c0_i32_0 = arith.constant 0 : i32
    %c0_i32_1 = arith.constant 0 : i32
    return %c0_i32, %c0_i32_0 : i32, i32
  }
  func.func @transform_14(%arg0: i32) -> (i32, i32, i32) {
    %c0_i32 = arith.constant 0 : i32
    %c0_i32_0 = arith.constant 0 : i32
    %c0_i32_1 = arith.constant 0 : i32
    return %arg0, %c0_i32, %c0_i32_0 : i32, i32, i32
  }
}

</mosaic_0001>

<bundles_post_ra>
// kernel: tpu_custom_call.1
= control target key start
LH: loop header
LB: loop body
LE: loop exit
PB: predicated region body
PF: predicated region fallthrough
CT: control target
= control target key end

     0   :  { %s11032_s0 = inlined_call_operand.vmem [shape: f32[2,8,128], index: 0, kind: input, shape index: {}]   ;;  %s11033_s1 = inlined_call_operand.vmem [shape: f32[24,8], index: 1, kind: input, shape index: {}]   ;;  %s11034_s2 = inlined_call_operand.vmem [shape: f32[24,1], index: 2, kind: input, shape index: {}]   ;;  %s11035_s3 = inlined_call_operand.hbm [shape: f32[8,8], index: 3, kind: input, shape index: {}]   ;;  %s11036_s4 = inlined_call_operand.vmem [shape: f32[8,1], index: 4, kind: input, shape index: {}]   ;;  %s11037_s5 = inlined_call_operand.vmem [shape: f32[128,128], index: 5, kind: input, shape index: {}]   ;;  %s11038_s6 = inlined_call_operand.hbm [shape: f32[8,128], index: 6, kind: input, shape index: {}]   ;;  %s11039_s7 = inlined_call_operand.vmem [shape: f32[8,128], index: 7, kind: input, shape index: {}]   ;;  %s11040_s8 = inlined_call_operand.vmem [shape: f32[32,8], index: 8, kind: input, shape index: {}]   ;;  %s11041_s9 = inlined_call_operand.vmem [shape: f32[32,1], index: 9, kind: input, shape index: {}]   ;;  %s11042_s10 = inlined_call_operand.hbm [shape: f32[8,32], index: 10, kind: input, shape index: {}]   ;;  %s11043_s11 = inlined_call_operand.vmem [shape: f32[8,1], index: 11, kind: input, shape index: {}]   ;;  %s11044_s12 = inlined_call_operand.vmem [shape: f32[8,128], index: 12, kind: input, shape index: {}]   ;;  %s11045_s13 = inlined_call_operand.hbm [shape: f32[8,128], index: 13, kind: input, shape index: {}]   ;;  %s11046_s14 = inlined_call_operand.hbm [shape: f32[2,8,128], index: 14, kind: output, shape index: {}]  }
   0x1   :  { %11088 = sst [smem:[#allocation42_spill]] %s11032_s0 }
   0x2   :  { %11089 = sst [smem:[#allocation43_spill]] %s11033_s1 }
   0x3   :  { %19 = vsyncpa [#allocation3], 0 }
   0x4   :  { %20 = vsyncpa [#allocation6], 0 }
   0x5   :  { %21 = vsyncpa [#allocation9], 0 }
   0x6   :  { %22 = vsyncpa [#allocation4], 0 }
   0x7   :  { %24 = vsyncpa [#allocation4 + $0x1], 0  ;;  %s8777_s29 = smov 0   ;;  %s8779_s30 = smov 0  }
   0x8   :  { %s8781_s15 = smov 0   ;;  %s8783_s16 = smov 0  }
   0x9 LB: > { %11090 = sst [smem:[#allocation15_spill]] %s8687_s15  ;;  %s8798_s17 = sadd.s32 4294967295, %s8691_s16   ;;  %s8691_s16 = sphi %s8783_s16, %s11203_s16   ;;  %s8687_s15 = sphi %s8781_s15, %s11205_s15   ;;  %s8683_s30 = sphi %s8779_s30, %s11207_s30   ;;  %s8679_s29 = sphi %s8777_s29, %s11206_s29  }
   0xa   : > { %s6808_s18 = sadd.s32 4294967294, %s8691_s16   ;;  %s8802_s19 = sadd.s32 1, %s8691_s16  }
   0xb   : > { %11091 = sst [smem:[#allocation16_spill]] %s8802_s19  ;;  %s336_s20 = sadd.s32 1, %s8687_s15 }
   0xc   : > { %s333_s21 = ssub.s32 %s8691_s16, %s8802_s19  ;;  %p346_p0 = scmp.ne.s32.totalorder %s8687_s15, %s8683_s30 }
   0xd   : > { %p334_p1 = scmp.eq.s32.totalorder %s333_s21, 0  ;;  %p347_p2 = scmp.eq.s32.totalorder %s8798_s17, 1 }
   0xe   : > { %p352_p3 = scmp.ne.s32.totalorder %s8683_s30, %s8679_s29  ;;  %p353_p4 = scmp.eq.s32.totalorder %s6808_s18, 1 }
   0xf   : > { %s8813_s22 = scalar_select %p334_p1, %s8687_s15, %s336_s20  }
  0x10   : > { %p8815_p5 = por %p347_p2, %p346_p0  ;;  %p8819_p6 = por %p353_p4, %p352_p3 }
  0x11   : > { %11092 = sst [smem:[#allocation17_spill]] %s8813_s22  ;;  %p6809_p7 = scmp.ge.s32.totalorder %s8691_s16, 1 }
  0x12   : > { %s11093_s23 = scalar_select %p8815_p5, 1, 0 }
  0x13   : > { %s11094_s24 = scalar_select %p8819_p6, 1, 0 }
  0x14   : > { %p360_p8 = scmp.lt.s32.totalorder %s8691_s16, 3  ;;  %p11048_p9 = scmp.eq.s32.totalorder %s8798_s17, 0 }
  0x15   : > { %s8693_s26 = smov [#allocation5]   ;;  %s8694_s28 = smov [#allocation2]  }
  0x16   : > { %p8826_p10 = pnand %p6809_p7, %p360_p8  ;;  %s396_s27 = sshll.u32 %s8693_s26, 4  ;;  %s397_s27 = int_to_ptr.vmem [resolvable:$true] %s396_s27 }
  0x17   : > { %s379_s18 = sshll.u32 %s8694_s28, 4  ;;  %s8695_s21 = smov [#allocation7]   ;;  %s380_s18 = int_to_ptr.vmem [resolvable:$true] %s379_s18 }
  0x18   : > { %s11095_s25 = scalar_select %p8826_p10, 1, 0 }
  0x19   : > { %p8298_p11 = pneg %p8826_p10  ;;  %s416_s22 = sshll.u32 %s8695_s21, 4  ;;  %s8838_s22 = int_to_ptr.vmem [resolvable:$true] %s416_s22 }
  0x1a   : > { %s8526_s26 = scalar_lea.vmem %s397_s27, 128  ;;  %p8534_p3 = scmp.lt.s32.totalorder %s397_s27, %s397_s27 }
  0x1b   : > { %p8834_p12 = pnand %p11048_p9, %p8298_p11  ;;  %p8527_p0 = scmp.ne.s32.totalorder %s397_s27, %s8526_s26 }
  0x1c   : > { %p8535_p4 = scmp.lt.s32.totalorder %s8526_s26, %s8526_s26 }
  0x1d   : > { %p8517_p13 = pneg %p8834_p12 }
  0x1e   : > { %p8536_p7 = por %p8535_p4, %p8534_p3 }
  0x1f   : > { %p8529_p1 = pnand %p8527_p0, %p8517_p13 }
  0x21   : > { %p8530_p2 = pneg %p8529_p1 }
  0x23   : > { %p8537_p8 = pnand %p8536_p7, %p8530_p2 }
  0x25   : > { %8540 = shalt.err (!%p8537_p8)
}
  0x26   : > { %8304 = dma.hbm_to_vmem [thread:$0]  (!%p8834_p12), %s11038_s6, 128, %s397_s27, [#allocation6]  }
  0x27   : > { %s8552_s21 = scalar_lea.vmem %s380_s18, 128  ;;  %p8560_p0 = scmp.lt.s32.totalorder %s380_s18, %s380_s18 }
  0x28   : > { %p8553_p11 = scmp.ne.s32.totalorder %s380_s18, %s8552_s21  ;;  %p8561_p1 = scmp.lt.s32.totalorder %s8552_s21, %s8552_s21 }
  0x2a   : > { %p8555_p9 = pnand %p8553_p11, %p8517_p13  ;;  %p8562_p5 = por %p8561_p1, %p8560_p0 }
  0x2c   : > { %p8556_p6 = pneg %p8555_p9 }
  0x2e   : > { %p8563_p10 = pnand %p8562_p5, %p8556_p6 }
  0x30   : > { %8566 = shalt.err (!%p8563_p10)
}
  0x31   : > { %8301 = dma.hbm_to_vmem [thread:$0]  (!%p8834_p12), %s11035_s3, 128, %s380_s18, [#allocation3]  }
  0x32   : > { %s8578_s15 = scalar_lea.vmem %s8838_s22, 128  ;;  %p8586_p4 = scmp.lt.s32.totalorder %s8838_s22, %s8838_s22 }
  0x33   : > { %p8579_p2 = scmp.ne.s32.totalorder %s8838_s22, %s8578_s15  ;;  %p8587_p5 = scmp.lt.s32.totalorder %s8578_s15, %s8578_s15 }
  0x35   : > { %p8581_p9 = pnand %p8579_p2, %p8517_p13  ;;  %p8588_p6 = por %p8587_p5, %p8586_p4 }
  0x37   : > { %p8582_p3 = pneg %p8581_p9 }
  0x39   : > { %p8589_p10 = pnand %p8588_p6, %p8582_p3 }
  0x3b   : > { %8592 = shalt.err (!%p8589_p10)
}
  0x3c   : > { %8307 = dma.hbm_to_vmem [thread:$0]  (!%p8834_p12), %s11042_s10, 128, %s8838_s22, [#allocation6]  }
  0x3d   : > { %s8696_s18 = smov [#allocation8]  }
  0x3e   : > { %s433_s28 = sshll.u32 %s8696_s18, 4  ;;  %s434_s28 = int_to_ptr.vmem [resolvable:$true] %s433_s28 }
  0x3f   : > { %s8604_s21 = scalar_lea.vmem %s434_s28, 128  ;;  %p8612_p0 = scmp.lt.s32.totalorder %s434_s28, %s434_s28 }
  0x40   : > { %p8605_p7 = scmp.ne.s32.totalorder %s434_s28, %s8604_s21  ;;  %p8613_p1 = scmp.lt.s32.totalorder %s8604_s21, %s8604_s21 }
  0x42   : > { %p8607_p8 = pnand %p8605_p7, %p8517_p13  ;;  %p8614_p2 = por %p8613_p1, %p8612_p0 }
  0x44   : > { %p8608_p11 = pneg %p8607_p8 }
  0x46   : > { %p8615_p9 = pnand %p8614_p2, %p8608_p11 }
  0x48   : > { %8618 = shalt.err (!%p8615_p9)
}
  0x49   : > { %8310 = dma.hbm_to_vmem [thread:$0]  (!%p8834_p12), %s11045_s13, 128, %s434_s28, [#allocation9]  }
  0x4a   : > { %p11097_p3 = scmp.ne.s32.totalorder %s11095_s25, 0 }
  0x4c   : > { %453 = sbr.rel (%p11097_p3) target bundleno = 3452 (0xd7c), region = 76 }
  0x51   : > { %p11098_p4 = scmp.eq.s32.totalorder %s8798_s17, 0 }
  0x53   : > { %8662 = dma.done.wait (%p11098_p4), [#allocation3], 128   ;;  %p11099_p13 = pmov %p11098_p4 }
  0x54   : > { %p11100_p5 = pmov %p11098_p4 }
  0x55   : > { %8664 = vsyncadd (%p11099_p13), [#allocation3], 4294967168 }
  0x56   : > { %8666 = dma.done.wait (%p11100_p5), [#allocation6], 256   ;;  %p11101_p6 = pmov %p11098_p4 }
  0x57   : > { %p11102_p10 = pmov %p11098_p4 }
  0x58   : > { %8668 = vsyncadd (%p11101_p6), [#allocation6], 4294967040 }
  0x59   : > { %8670 = dma.done.wait (%p11102_p10), [#allocation9], 128   ;;  %p11103_p12 = pmov %p11098_p4 }
  0x5a   : > { %p510_p7 = scmp.lt.s32.totalorder %s8798_s17, 1  ;;  %v11062_v0 = vmov 0.0   ;;  %vm8698_vm0 = vmmov 0   ;;  %v8699_v1 = vmov 0   ;;  %s11104_s0 = sld [smem:[#allocation42_spill]]  ;;  %vm536_vm1 = vcmask 64512  }
  0x5b   : > { %8672 = vsyncadd (%p11103_p12), [#allocation9], 4294967168  ;;  %7330 = vmatprep.subr.mxu0 %v11062_v0  ;;  %7341 = vmatprep.subr.mxu1 %v11062_v0  ;;  %s11105_s1 = sld [smem:[#allocation43_spill]]  ;;  %v518_v9 = vld [vmem:[%s11034_s2] sm:$0xff]  ;;  %v519_v15 = vld [vmem:[%s11034_s2 + $0x8] sm:$0xff]  ;;  %vm1191_vm2 = vcmask 1043456  }
  0x5c   : > { %s511_s22 = scalar_select %p510_p7, %s8798_s17, 1  ;;  %7332 = vmatprep.mubr.msk.f32.mxu0 %vm8698_vm0, %v11062_v0  ;;  %7343 = vmatprep.mubr.msk.f32.mxu1 %vm8698_vm0, %v11062_v0  ;;  %vm1142_vm3 = vcmask 31744   ;;  %vm6170_vm4 = vcmask 261120  }
  0x5d   : > { %8364 = vset.pattern.permute.xlu0 %v8699_v1  ;;  %s8700_s19 = smov 124   ;;  %s6823_s26 = sshll.u32 %s8798_s17, 7 }
  0x5e   : > { %s6821_s25 = sshll.u32 %s511_s22, 3  ;;  %523 = vperm.xlu0 %8364, %v518_v9   ;;  %p11201_p11 = scmp.ne.s32.totalorder %s11093_s23, 0 }
  0x5f   : > { %s8701_s28 = smov [#allocation10]  }
  0x60   : > { %s8905_s27 = scalar_lea.vmem %s11104_s0, %s6821_s25  ;;  %s8623_s21 = sshll.u32 %s8701_s28, 4  ;;  %s8624_s21 = int_to_ptr.vmem [resolvable:$false] %s8623_s21 }
  0x61   : > { %v514_v2 = vld [vmem:[%s8905_s27] sm:$0xff]  ;;  %v516_v4 = vld [vmem:[%s11105_s1 + $0x8] sm:$0xff]  ;;  %v517_v8 = vld [vmem:[%s11105_s1 + $0x10] sm:$0xff]  ;;  %s8625_s17 = scalar_lea.vmem %s8624_s21, 256 }
  0x62   : > { %v515_v3 = vld [vmem:[%s11105_s1] sm:$0xff]  ;;  %v577_v5 = vand.u32 4294901760, %v514_v2  ;;  %v541_v7 = vsel %vm536_vm1, %v516_v4, 0  ;;  %v544_v12 = vsel %vm536_vm1, %v517_v8, 0  ;;  %528 = vperm.xlu0 %8364, %v519_v15  }
  0x63   : > { %v538_v6 = vsel %vm536_vm1, %v515_v3, 0  ;;  %v622_v11 = vand.u32 4294901760, %v541_v7  ;;  %v632_v14 = vand.u32 4294901760, %v544_v12 }
  0x64   : > { %v612_v10 = vand.u32 4294901760, %v538_v6  ;;  %7331 = vmatpush3.msra.mxu0 %v577_v5  ;;  %v674_v13 = vsub.f32 %v514_v2, %v577_v5 }
  0x65   : > { %7352 = vmatprep.subr.mxu0 %v11062_v0  ;;  %v623_v17 = vsub.f32 %v541_v7, %v622_v11  ;;  %v633_v19 = vsub.f32 %v544_v12, %v632_v14 }
  0x66   : > { %v613_v16 = vsub.f32 %v538_v6, %v612_v10  ;;  %v675_v18 = vand.u32 4294901760, %v674_v13 }
  0x67   : > { %v624_v21 = vand.u32 4294901760, %v623_v17  ;;  %v634_v25 = vand.u32 4294901760, %v633_v19 }
  0x68   : > { %v614_v20 = vand.u32 4294901760, %v613_v16  ;;  %v676_v22 = vsub.f32 %v674_v13, %v675_v18 }
  0x69   : > { %v625_v24 = vsub.f32 %v623_v17, %v624_v21  ;;  %v635_v29 = vsub.f32 %v633_v19, %v634_v25 }
  0x6a   : > { %v615_v23 = vsub.f32 %v613_v16, %v614_v20  ;;  %v677_v26 = vand.u32 4294901760, %v676_v22 }
  0x6b   : > { %v626_v28 = vand.u32 4294901760, %v625_v24  ;;  %v636_v30 = vand.u32 4294901760, %v635_v29 }
  0x6c   : > { %v616_v27 = vand.u32 4294901760, %v615_v23  ;;  %7342 = vmatpush3.msra.mxu1 %v677_v26 }
  0x6d   : > { %7344 = vmatmul.mubr.f32.vlgmr.msra.gmra.mxu1 %v612_v10  ;;  %7363 = vmatprep.subr.mxu1 %v11062_v0 }
  0x6e   : > { %7333 = vmatmul.mubr.f32.vlgmr.msra.gmra.mxu0 %v616_v27  ;;  %7346 = vmatprep.mubr.msk.f32.mxu1 %vm8698_vm0, %v11062_v0 }
  0x6f   : > { %7335 = vmatprep.mubr.msk.f32.mxu0 %vm8698_vm0, %v11062_v0  ;;  %7353 = vmatpush3.msra.mxu0 %v674_v13 }
  0x70   : > { %7364 = vmatpush3.msra.mxu1 %v577_v5  ;;  %7374 = vmatprep.subr.mxu0 %v11062_v0 }
  0x71   : > { %7347 = vmatmul.mubr.f32.gmra.mxu1 %v622_v11  ;;  %7385 = vmatprep.subr.mxu1 %v11062_v0 }
  0x72   : > { %7336 = vmatmul.mubr.f32.gmra.mxu0 %v626_v28  ;;  %7349 = vmatprep.mubr.msk.f32.mxu1 %vm8698_vm0, %v11062_v0 }
  0x73   : > { %7338 = vmatprep.mubr.msk.f32.mxu0 %vm8698_vm0, %v11062_v0 }
  0x75   : > { %7350 = vmatmul.mubr.f32.gmra.mxu1 %v632_v14 }
  0x76   : > { %7339 = vmatmul.mubr.f32.gmra.mxu0 %v636_v30  ;;  %7365 = vmatprep.mubr.msk.f32.mxu1 %vm8698_vm0, %v11062_v0 }
  0x77   : > { %7354 = vmatprep.mubr.msk.f32.mxu0 %vm8698_vm0, %v11062_v0 }
  0x79   : > { %7366 = vmatmul.mubr.f32.vlgmr.msra.gmra.mxu1 %v614_v20 }
  0x7a   : > { %7355 = vmatmul.mubr.f32.vlgmr.msra.gmra.mxu0 %v613_v16  ;;  %7368 = vmatprep.mubr.msk.f32.mxu1 %vm8698_vm0, %v11062_v0 }
  0x7b   : > { %7357 = vmatprep.mubr.msk.f32.mxu0 %vm8698_vm0, %v11062_v0  ;;  %7375 = vmatpush3.msra.mxu0 %v675_v18 }
  0x7c   : > { %7386 = vmatpush3.msra.mxu1 %v577_v5 }
  0x7d   : > { %7369 = vmatmul.mubr.f32.gmra.mxu1 %v624_v21 }
  0x7e   : > { %7358 = vmatmul.mubr.f32.gmra.mxu0 %v623_v17  ;;  %7371 = vmatprep.mubr.msk.f32.mxu1 %vm8698_vm0, %v11062_v0 }
  0x7f   : > { %7360 = vmatprep.mubr.msk.f32.mxu0 %vm8698_vm0, %v11062_v0 }
  0x81   : > { %7372 = vmatmul.mubr.f32.gmra.mxu1 %v634_v25 }
  0x82   : > { %7361 = vmatmul.mubr.f32.gmra.mxu0 %v633_v19  ;;  %7387 = vmatprep.mubr.msk.f32.mxu1 %vm8698_vm0, %v11062_v0 }
  0x83   : > { %7376 = vmatprep.mubr.msk.f32.mxu0 %vm8698_vm0, %v11062_v0 }
  0x85   : > { %7388 = vmatmul.mubr.f32.vlgmr.msra.gmra.mxu1 %v612_v10 }
  0x86   : > { %7377 = vmatmul.mubr.f32.vlgmr.msra.gmra.mxu0 %v612_v10  ;;  %7390 = vmatprep.mubr.msk.f32.mxu1 %vm8698_vm0, %v11062_v0 }
  0x87   : > { %7379 = vmatprep.mubr.msk.f32.mxu0 %vm8698_vm0, %v11062_v0 }
  0x89   : > { %7391 = vmatmul.mubr.f32.gmra.mxu1 %v622_v11 }
  0x8a   : > { %7380 = vmatmul.mubr.f32.gmra.mxu0 %v622_v11  ;;  %7393 = vmatprep.mubr.msk.f32.mxu1 %vm8698_vm0, %v11062_v0 }
  0x8b   : > { %7382 = vmatprep.mubr.msk.f32.mxu0 %vm8698_vm0, %v11062_v0 }
  0x8d   : > { %7394 = vmatmul.mubr.f32.gmra.mxu1 %v632_v14 }
  0x8e   : > { %7383 = vmatmul.mubr.f32.gmra.mxu0 %v632_v14 }
  0xd9   : > { %v524_v39 = vpop.permute.xlu0 %523 }
  0xdd   : > { %v529_v47 = vpop.permute.xlu0 %528 }
 0x12d   : > { %v714_v32 = vpop.f32.mrf.mxu1 }
 0x12e   : > { %v618_v31 = vpop.f32.mrf.mxu0 }
 0x12f   : > { %v7345_v34 = vpop.f32.mrf.mxu1  ;;  %v619_v46 = vadd.f32 %v618_v31, %v524_v39 }
 0x130   : > { %v7334_v33 = vpop.f32.mrf.mxu0 }
 0x131   : > { %v720_v36 = vpop.f32.mrf.mxu1  ;;  %v715_v52 = vadd.f32 %v714_v32, %v619_v46 }
 0x132   : > { %v628_v35 = vpop.f32.mrf.mxu0 }
 0x133   : > { %v7348_v38 = vpop.f32.mrf.mxu1  ;;  %v629_v53 = vadd.f32 %v628_v35, %v529_v47 }
 0x134   : > { %v7337_v37 = vpop.f32.mrf.mxu0 }
 0x135   : > { %v8964_v41 = vpop.f32.mrf.mxu1  ;;  %v721_v59 = vadd.f32 %v720_v36, %v629_v53 }
 0x136   : > { %v8962_v40 = vpop.f32.mrf.mxu0  ;;  %11107 = vst [vmem:[#allocation19_spill] sm:$0xff] %v8964_v41 }
 0x137   : > { %11106 = vst [vmem:[#allocation18_spill] sm:$0xff] %v8962_v40  ;;  %v7351_v43 = vpop.f32.mrf.mxu1 }
 0x138   : > { %v7340_v42 = vpop.f32.mrf.mxu0 }
 0x139   : > { %v888_v45 = vpop.f32.mrf.mxu1 }
 0x13a   : > { %v800_v44 = vpop.f32.mrf.mxu0 }
 0x13b   : > { %v7367_v49 = vpop.f32.mrf.mxu1  ;;  %v801_v56 = vadd.f32 %v800_v44, %v715_v52 }
 0x13c   : > { %v7356_v48 = vpop.f32.mrf.mxu0 }
 0x13d   : > { %v896_v51 = vpop.f32.mrf.mxu1  ;;  %v889_v62 = vadd.f32 %v888_v45, %v801_v56 }
 0x13e   : > { %v807_v50 = vpop.f32.mrf.mxu0 }
 0x13f   : > { %v7370_v55 = vpop.f32.mrf.mxu1  ;;  %v808_v63 = vadd.f32 %v807_v50, %v721_v59 }
 0x140   : > { %v7359_v54 = vpop.f32.mrf.mxu0 }
 0x141   : > { %v8968_v58 = vpop.f32.mrf.mxu1  ;;  %v897_v7 = vadd.f32 %v896_v51, %v808_v63 }
 0x142   : > { %v8966_v57 = vpop.f32.mrf.mxu0  ;;  %11109 = vst [vmem:[#allocation21_spill] sm:$0xff] %v8968_v58 }
 0x143   : > { %11108 = vst [vmem:[#allocation20_spill] sm:$0xff] %v8966_v57  ;;  %v7373_v61 = vpop.f32.mrf.mxu1 }
 0x144   : > { %v7362_v60 = vpop.f32.mrf.mxu0 }
 0x145   : > { %v1062_v3 = vpop.f32.mrf.mxu1 }
 0x146   : > { %v978_v2 = vpop.f32.mrf.mxu0 }
 0x147   : > { %v979_v4 = vadd.f32 %v978_v2, %v889_v62  ;;  %v7389_v6 = vpop.f32.mrf.mxu1 }
 0x148   : > { %v7378_v5 = vpop.f32.mrf.mxu0 }
 0x149   : > { %v1063_v8 = vadd.f32 %v1062_v3, %v979_v4  ;;  %v1068_v10 = vpop.f32.mrf.mxu1 }
 0x14a   : > { %v984_v9 = vpop.f32.mrf.mxu0 }
 0x14b   : > { %v985_v11 = vadd.f32 %v984_v9, %v897_v7  ;;  %1078 = vxpose.xlu1.b32.start.end [1/1] (short) %v1063_v8, 128  ;;  %v7392_v13 = vpop.f32.mrf.mxu1 }
 0x14c   : > { %v7381_v12 = vpop.f32.mrf.mxu0 }
 0x14d   : > { %v8970_v14 = vadd.f32 %v1068_v10, %v985_v11  ;;  %v9010_v34 = vpop.f32.mrf.mxu1 }
 0x14e   : > { %11114 = vst [vmem:[#allocation26_spill] sm:$0xff] %v9010_v34 }
 0x14f   : > { %11110 = vst [vmem:[#allocation22_spill] sm:$0xff] %v8970_v14  ;;  %v1193_v15 = vsel %vm1191_vm2, %v8970_v14, 0  ;;  %v7395_v42 = vpop.f32.mrf.mxu1 }
 0x150   : > { %v8974_v16 = vand.u32 4294901760, %v1193_v15 }
 0x152   : > { %v1453_v17 = vsub.f32 %v1193_v15, %v8974_v16  ;;  %7396 = vmatprep.subr.mxu0 %v8974_v16 }
 0x153   : > { %7397 = vmatpush3.msra.mxu0 %v8974_v16 }
 0x154   : > { %7448 = vmatprep.subr.mxu0 %v1453_v17  ;;  %v8979_v18 = vand.u32 4294901760, %v1453_v17 }
 0x156   : > { %v1455_v19 = vsub.f32 %v1453_v17, %v8979_v18 }
 0x158   : > { %v1456_v20 = vand.u32 4294901760, %v1455_v19 }
 0x15a   : > { %7422 = vmatprep.subr.mxu1 %v1456_v20 }
 0x15b   : > { %7423 = vmatpush3.msra.mxu1 %v1456_v20 }
 0x15c   : > { %7474 = vmatprep.subr.mxu1 %v8974_v16 }
 0x169   : > { %8365 = vset.pattern.permute.xlu1 %v8699_v1 }
 0x1c7   : > { %v1094_v21 = vpop.trf.xlu1 }
 0x1c8   : > { %v8984_v22 = vmul.f32 0.5, %v1094_v21 }
 0x1ca   : > { %11111 = vst [vmem:[#allocation23_spill] sm:$0xff] %v8984_v22  ;;  %v1144_v23 = vsel %vm1142_vm3, %v8984_v22, 0 }
 0x1cb   : > { %v8988_v24 = vand.u32 4294901760, %v1144_v23  ;;  %v1095_v25 = vpop.trf.xlu1 }
 0x1cc   : > { %v8990_v26 = vmul.f32 0.5, %v1095_v25 }
 0x1cd   : > { %v8993_v27 = vsub.f32 %v1144_v23, %v8988_v24  ;;  %7424 = vmatprep.mubr.f32.mxu1 %v8988_v24 }
 0x1ce   : > { %11112 = vst [vmem:[#allocation24_spill] sm:$0xff] %v8990_v26  ;;  %v1147_v1 = vsel %vm1142_vm3, %v8990_v26, 0 }
 0x1cf   : > { %v8998_v28 = vand.u32 4294901760, %v1147_v1  ;;  %v1096_v29 = vpop.trf.xlu1  ;;  %v11066_v30 = vand.u32 4294901760, %v8993_v27 }
 0x1d0   : > { %v9001_v31 = vmul.f32 0.5, %v1096_v29 }
 0x1d1   : > { %v9004_v32 = vsub.f32 %v1147_v1, %v8998_v28  ;;  %7425 = vmatmul.mubr.f32.vlgmr.msra.gmra.mxu1 %v8998_v28  ;;  %v1264_v33 = vsub.f32 %v8993_v27, %v11066_v30 }
 0x1d2   : > { %11113 = vst [vmem:[#allocation25_spill] sm:$0xff] %v9001_v31  ;;  %v1150_v35 = vsel %vm1142_vm3, %v9001_v31, 0  ;;  %7475 = vmatpush3.msra.mxu1 %v8974_v16 }
 0x1d3   : > { %v11065_v36 = vand.u32 4294901760, %v9004_v32  ;;  %v9016_v37 = vand.u32 4294901760, %v1150_v35  ;;  %7526 = vmatprep.subr.mxu1 %v8974_v16  ;;  %v1097_v38 = vpop.trf.xlu1  ;;  %v1265_v39 = vand.u32 4294901760, %v1264_v33  ;;  %v11129_v58 = vand.u32 4294901760, %v9004_v32 }
 0x1d4   : > { %v9019_v43 = vmul.f32 0.5, %v1097_v38 }
 0x1d5   : > { %v1274_v44 = vsub.f32 %v9004_v32, %v11065_v36  ;;  %v9025_v45 = vsub.f32 %v1150_v35, %v9016_v37  ;;  %7398 = vmatprep.mubr.f32.mxu0 %v1265_v39  ;;  %7427 = vmatprep.mubr.f32.mxu1 %v9016_v37 }
 0x1d6   : > { %11115 = vst [vmem:[#allocation27_spill] sm:$0xff] %v9019_v43  ;;  %v1153_v46 = vsel %vm1142_vm3, %v9019_v43, 0 }
 0x1d7   : > { %v1275_v47 = vand.u32 4294901760, %v1274_v44  ;;  %v9030_v48 = vand.u32 4294901760, %v1153_v46  ;;  %v1098_v49 = vpop.trf.xlu1  ;;  %v11064_v50 = vand.u32 4294901760, %v9025_v45 }
 0x1d8   : > { %v9033_v51 = vmul.f32 0.5, %v1098_v49 }
 0x1d9   : > { %v9036_v52 = vsub.f32 %v1153_v46, %v9030_v48  ;;  %7399 = vmatmul.mubr.f32.vlgmr.msra.gmra.mxu0 %v1275_v47  ;;  %7428 = vmatmul.mubr.f32.gmra.mxu1 %v9030_v48  ;;  %v1284_v53 = vsub.f32 %v9025_v45, %v11064_v50 }
 0x1da   : > { %11116 = vst [vmem:[#allocation28_spill] sm:$0xff] %v9033_v51  ;;  %v1156_v54 = vsel %vm1142_vm3, %v9033_v51, 0  ;;  %7449 = vmatpush3.msra.mxu0 %v1453_v17 }
 0x1db   : > { %v9044_v55 = vand.u32 4294901760, %v1156_v54  ;;  %7500 = vmatprep.subr.mxu0 %v8979_v18  ;;  %v1099_v56 = vpop.trf.xlu1  ;;  %v1285_v59 = vand.u32 4294901760, %v1284_v53  ;;  %v11061_v60 = vand.u32 4294901760, %v9036_v52  ;;  %v11132_v41 = vand.u32 4294901760, %v9036_v52 }
 0x1dc   : > { %v9048_v61 = vmul.f32 0.5, %v1099_v56 }
 0x1dd   : > { %v9051_v62 = vsub.f32 %v1156_v54, %v9044_v55  ;;  %7401 = vmatprep.mubr.f32.mxu0 %v1285_v59  ;;  %7430 = vmatprep.mubr.f32.mxu1 %v9044_v55  ;;  %v1294_v63 = vsub.f32 %v9036_v52, %v11061_v60 }
 0x1de   : > { %11117 = vst [vmem:[#allocation29_spill] sm:$0xff] %v9048_v61  ;;  %v1159_v2 = vsel %vm1142_vm3, %v9048_v61, 0 }
 0x1df   : > { %v9059_v3 = vand.u32 4294901760, %v1159_v2  ;;  %v1100_v4 = vpop.trf.xlu1  ;;  %v1295_v5 = vand.u32 4294901760, %v1294_v63  ;;  %v11060_v6 = vand.u32 4294901760, %v9051_v62 }
 0x1e0   : > { %v9062_v7 = vmul.f32 0.5, %v1100_v4 }
 0x1e1   : > { %v9065_v8 = vsub.f32 %v1159_v2, %v9059_v3  ;;  %7402 = vmatmul.mubr.f32.gmra.mxu0 %v1295_v5  ;;  %7431 = vmatmul.mubr.f32.gmra.mxu1 %v9059_v3  ;;  %v1304_v9 = vsub.f32 %v9051_v62, %v11060_v6 }
 0x1e2   : > { %11118 = vst [vmem:[#allocation30_spill] sm:$0xff] %v9062_v7  ;;  %v1162_v10 = vsel %vm1142_vm3, %v9062_v7, 0 }
 0x1e3   : > { %v9073_v11 = vand.u32 4294901760, %v1162_v10  ;;  %v1101_v12 = vpop.trf.xlu1  ;;  %v1305_v13 = vand.u32 4294901760, %v1304_v9  ;;  %v11058_v15 = vand.u32 4294901760, %v9065_v8 }
 0x1e4   : > { %v9076_v17 = vmul.f32 0.5, %v1101_v12 }
 0x1e5   : > { %v9079_v19 = vsub.f32 %v1162_v10, %v9073_v11  ;;  %7404 = vmatprep.mubr.f32.mxu0 %v1305_v13  ;;  %7433 = vmatprep.mubr.f32.mxu1 %v9073_v11  ;;  %v1314_v20 = vsub.f32 %v9065_v8, %v11058_v15 }
 0x1e6   : > { %11119 = vst [vmem:[#allocation31_spill] sm:$0xff] %v9076_v17  ;;  %v1165_v21 = vsel %vm1142_vm3, %v9076_v17, 0 }
 0x1e7   : > { %v9087_v23 = vand.u32 4294901760, %v1165_v21  ;;  %v1102_v25 = vpop.trf.xlu1  ;;  %v1315_v1 = vand.u32 4294901760, %v1314_v20  ;;  %v11057_v29 = vand.u32 4294901760, %v9079_v19 }
 0x1e8   : > { %v9090_v33 = vmul.f32 0.5, %v1102_v25 }
 0x1e9   : > { %v9093_v35 = vsub.f32 %v1165_v21, %v9087_v23  ;;  %7405 = vmatmul.mubr.f32.gmra.mxu0 %v1315_v1  ;;  %7434 = vmatmul.mubr.f32.gmra.mxu1 %v9087_v23  ;;  %v1324_v38 = vsub.f32 %v9079_v19, %v11057_v29 }
 0x1ea   : > { %11120 = vst [vmem:[#allocation32_spill] sm:$0xff] %v9090_v33  ;;  %v1168_v39 = vsel %vm1142_vm3, %v9090_v33, 0 }
 0x1eb   : > { %v9101_v42 = vand.u32 4294901760, %v1168_v39  ;;  %v1103_v44 = vpop.trf.xlu1  ;;  %v1325_v46 = vand.u32 4294901760, %v1324_v38  ;;  %v11056_v47 = vand.u32 4294901760, %v9093_v35 }
 0x1ec   : > { %v9104_v49 = vmul.f32 0.5, %v1103_v44 }
 0x1ed   : > { %v9107_v53 = vsub.f32 %v1168_v39, %v9101_v42  ;;  %7407 = vmatprep.mubr.f32.mxu0 %v1325_v46  ;;  %7436 = vmatprep.mubr.f32.mxu1 %v9101_v42  ;;  %v1334_v54 = vsub.f32 %v9093_v35, %v11056_v47 }
 0x1ee   : > { %11121 = vst [vmem:[#allocation33_spill] sm:$0xff] %v9104_v49  ;;  %v1171_v56 = vsel %vm1142_vm3, %v9104_v49, 0 }
 0x1ef   : > { %v9115_v59 = vand.u32 4294901760, %v1171_v56  ;;  %v1104_v63 = vpop.trf.xlu1  ;;  %v1335_v2 = vand.u32 4294901760, %v1334_v54  ;;  %v11054_v4 = vand.u32 4294901760, %v9107_v53 }
 0x1f0   : > { %v9118_v5 = vmul.f32 0.5, %v1104_v63 }
 0x1f1   : > { %v9121_v9 = vsub.f32 %v1171_v56, %v9115_v59  ;;  %7408 = vmatmul.mubr.f32.gmra.mxu0 %v1335_v2  ;;  %7437 = vmatmul.mubr.f32.gmra.mxu1 %v9115_v59  ;;  %v1344_v10 = vsub.f32 %v9107_v53, %v11054_v4 }
 0x1f2   : > { %11122 = vst [vmem:[#allocation34_spill] sm:$0xff] %v9118_v5  ;;  %v1174_v12 = vsel %vm1142_vm3, %v9118_v5, 0 }
 0x1f3   : > { %v9129_v13 = vand.u32 4294901760, %v1174_v12  ;;  %v1105_v20 = vpop.trf.xlu1  ;;  %v1345_v21 = vand.u32 4294901760, %v1344_v10  ;;  %v11053_v25 = vand.u32 4294901760, %v9121_v9 }
 0x1f4   : > { %v9132_v1 = vmul.f32 0.5, %v1105_v20 }
 0x1f5   : > { %v9135_v38 = vsub.f32 %v1174_v12, %v9129_v13  ;;  %7410 = vmatprep.mubr.f32.mxu0 %v1345_v21  ;;  %7439 = vmatprep.mubr.f32.mxu1 %v9129_v13  ;;  %v1354_v39 = vsub.f32 %v9121_v9, %v11053_v25 }
 0x1f6   : > { %11123 = vst [vmem:[#allocation35_spill] sm:$0xff] %v9132_v1  ;;  %v1177_v44 = vsel %vm1142_vm3, %v9132_v1, 0 }
 0x1f7   : > { %v9143_v46 = vand.u32 4294901760, %v1177_v44  ;;  %v1106_v54 = vpop.trf.xlu1  ;;  %v1355_v56 = vand.u32 4294901760, %v1354_v39  ;;  %v11055_v63 = vand.u32 4294901760, %v9135_v38 }
 0x1f8   : > { %v9146_v2 = vmul.f32 0.5, %v1106_v54 }
 0x1f9   : > { %v9149_v10 = vsub.f32 %v1177_v44, %v9143_v46  ;;  %7411 = vmatmul.mubr.f32.gmra.mxu0 %v1355_v56  ;;  %7440 = vmatmul.mubr.f32.gmra.mxu1 %v9143_v46  ;;  %v1364_v12 = vsub.f32 %v9135_v38, %v11055_v63 }
 0x1fa   : > { %11124 = vst [vmem:[#allocation36_spill] sm:$0xff] %v9146_v2  ;;  %v1180_v20 = vsel %vm1142_vm3, %v9146_v2, 0 }
 0x1fb   : > { %v9157_v21 = vand.u32 4294901760, %v1180_v20  ;;  %v1107_v39 = vpop.trf.xlu1  ;;  %v1365_v25 = vand.u32 4294901760, %v1364_v12  ;;  %v11059_v54 = vand.u32 4294901760, %v9149_v10 }
 0x1fc   : > { %v9160_v4 = vmul.f32 0.5, %v1107_v39 }
 0x1fd   : > { %v9163_v44 = vsub.f32 %v1180_v20, %v9157_v21  ;;  %7413 = vmatprep.mubr.f32.mxu0 %v1365_v25  ;;  %7442 = vmatprep.mubr.f32.mxu1 %v9157_v21  ;;  %v1374_v56 = vsub.f32 %v9149_v10, %v11059_v54 }
 0x1fe   : > { %11125 = vst [vmem:[#allocation37_spill] sm:$0xff] %v9160_v4  ;;  %v1183_v63 = vsel %vm1142_vm3, %v9160_v4, 0 }
 0x1ff   : > { %v9171_v47 = vand.u32 4294901760, %v1183_v63  ;;  %v1108_v12 = vpop.trf.xlu1  ;;  %v1375_v29 = vand.u32 4294901760, %v1374_v56  ;;  %v1383_v39 = vand.u32 4294901760, %v9163_v44 }
 0x200   : > { %v9174_v15 = vmul.f32 0.5, %v1108_v12 }
 0x201   : > { %v9177_v20 = vsub.f32 %v1183_v63, %v9171_v47  ;;  %7414 = vmatmul.mubr.f32.gmra.mxu0 %v1375_v29  ;;  %7443 = vmatmul.mubr.f32.gmra.mxu1 %v9171_v47  ;;  %v1384_v25 = vsub.f32 %v9163_v44, %v1383_v39 }
 0x202   : > { %11126 = vst [vmem:[#allocation38_spill] sm:$0xff] %v9174_v15  ;;  %v1186_v54 = vsel %vm1142_vm3, %v9174_v15, 0 }
 0x203   : > { %v9183_v6 = vand.u32 4294901760, %v1186_v54  ;;  %v1109_v60 = vpop.trf.xlu1  ;;  %v1385_v0 = vand.u32 4294901760, %v1384_v25  ;;  %v1393_v56 = vand.u32 4294901760, %v9177_v20 }
 0x204   : > { %v9186_v50 = vmul.f32 0.5, %v1109_v60 }
 0x205   : > { %v1402_v12 = vsub.f32 %v1186_v54, %v9183_v6  ;;  %7416 = vmatprep.mubr.f32.mxu0 %v1385_v0  ;;  %7445 = vmatprep.mubr.f32.mxu1 %v9183_v6  ;;  %v1394_v29 = vsub.f32 %v9177_v20, %v1393_v56  ;;  %v11128_v54 = vand.u32 4294901760, %v8993_v27 }
 0x206   : > { %11127 = vst [vmem:[#allocation39_spill] sm:$0xff] %v9186_v50  ;;  %v1189_v63 = vsel %vm1142_vm3, %v9186_v50, 0 }
 0x207   : > { %v9193_v36 = vand.u32 4294901760, %v1189_v63  ;;  %v1395_v30 = vand.u32 4294901760, %v1394_v29  ;;  %v1403_v14 = vand.u32 4294901760, %v1402_v12  ;;  %v11130_v29 = vand.u32 4294901760, %v9025_v45 }
 0x209   : > { %v1412_v25 = vsub.f32 %v1189_v63, %v9193_v36  ;;  %7417 = vmatmul.mubr.f32.gmra.mxu0 %v1395_v30  ;;  %7446 = vmatmul.mubr.f32.gmra.mxu1 %v9193_v36  ;;  %v1404_v60 = vsub.f32 %v1402_v12, %v1403_v14  ;;  %v11131_v30 = vmov 0.0  }
 0x20a   : > { %7476 = vmatprep.mubr.f32.mxu1 %v11128_v54  ;;  %v9210_v54 = vpop.f32.mrf.mxu0 }
 0x20b   : > { %v1405_v0 = vand.u32 4294901760, %v1404_v60  ;;  %v1413_v34 = vand.u32 4294901760, %v1412_v25  ;;  %v11133_v60 = vand.u32 4294901760, %v9051_v62  ;;  %11134 = vst [vmem:[#allocation40_spill] sm:$0xff] %v9210_v54 }
 0x20d   : > { %7419 = vmatprep.mubr.f32.mxu0 %v1405_v0  ;;  %7477 = vmatmul.mubr.f32.vlgmr.msra.gmra.mxu1 %v11129_v58  ;;  %v1414_v57 = vsub.f32 %v1412_v25, %v1413_v34  ;;  %v11135_v58 = vand.u32 4294901760, %v9065_v8 }
 0x20e   : > { %7527 = vmatpush3.msra.mxu1 %v8974_v16  ;;  %7479 = vmatprep.mubr.f32.mxu1 %v11130_v29  ;;  %v7384_v16 = vpop.f32.mrf.mxu0 }
 0x20f   : > { %v1415_v63 = vand.u32 4294901760, %v1414_v57  ;;  %7587 = vmatprep.subr.mxu1 %v11131_v30  ;;  %v11136_v57 = vand.u32 4294901760, %v9079_v19 }
 0x211   : > { %7420 = vmatmul.mubr.f32.gmra.mxu0 %v1415_v63  ;;  %7480 = vmatmul.mubr.f32.gmra.mxu1 %v11132_v41  ;;  %v11137_v41 = vand.u32 4294901760, %v9093_v35 }
 0x212   : > { %7450 = vmatprep.mubr.f32.mxu0 %v8993_v27  ;;  %7482 = vmatprep.mubr.f32.mxu1 %v11133_v60  ;;  %v11138_v27 = vand.u32 4294901760, %v9107_v53  ;;  %v1137_v60 = vld [vmem:[%s11037_s5 + $0x58] sm:$0xff] }
 0x215   : > { %7451 = vmatmul.mubr.f32.vlgmr.msra.gmra.mxu0 %v9004_v32  ;;  %7483 = vmatmul.mubr.f32.gmra.mxu1 %v11135_v58  ;;  %v11140_v32 = vand.u32 4294901760, %v9135_v38 }
 0x216   : > { %7501 = vmatpush3.msra.mxu0 %v8979_v18  ;;  %7453 = vmatprep.mubr.f32.mxu0 %v9025_v45  ;;  %v11139_v18 = vand.u32 4294901760, %v9121_v9  ;;  %v11141_v45 = vand.u32 4294901760, %v9149_v10 }
 0x217   : > { %7485 = vmatprep.mubr.f32.mxu1 %v11136_v57  ;;  %7552 = vmatprep.subr.mxu0 %v11131_v30 }
 0x219   : > { %7454 = vmatmul.mubr.f32.gmra.mxu0 %v9036_v52  ;;  %7486 = vmatmul.mubr.f32.gmra.mxu1 %v11137_v41  ;;  %v1129_v52 = vld [vmem:[%s11037_s5 + $0x18] sm:$0xff] }
 0x21a   : > { %7456 = vmatprep.mubr.f32.mxu0 %v9051_v62  ;;  %7488 = vmatprep.mubr.f32.mxu1 %v11138_v27 }
 0x21d   : > { %7457 = vmatmul.mubr.f32.gmra.mxu0 %v9065_v8  ;;  %7489 = vmatmul.mubr.f32.gmra.mxu1 %v11139_v18 }
 0x21e   : > { %7459 = vmatprep.mubr.f32.mxu0 %v9079_v19  ;;  %7491 = vmatprep.mubr.f32.mxu1 %v11140_v32 }
 0x221   : > { %7460 = vmatmul.mubr.f32.gmra.mxu0 %v9093_v35  ;;  %7492 = vmatmul.mubr.f32.gmra.mxu1 %v11141_v45  ;;  %v1139_v45 = vld [vmem:[%s11037_s5 + $0x68] sm:$0xff] }
 0x222   : > { %7462 = vmatprep.mubr.f32.mxu0 %v9107_v53  ;;  %7494 = vmatprep.mubr.f32.mxu1 %v1383_v39 }
 0x225   : > { %7463 = vmatmul.mubr.f32.gmra.mxu0 %v9121_v9  ;;  %7495 = vmatmul.mubr.f32.gmra.mxu1 %v1393_v56  ;;  %v1133_v9 = vld [vmem:[%s11037_s5 + $0x38] sm:$0xff] }
 0x226   : > { %7465 = vmatprep.mubr.f32.mxu0 %v9135_v38  ;;  %7497 = vmatprep.mubr.f32.mxu1 %v1403_v14  ;;  %v1127_v14 = vld [vmem:[%s11037_s5 + $0x8] sm:$0xff] }
 0x229   : > { %7466 = vmatmul.mubr.f32.gmra.mxu0 %v9149_v10  ;;  %7498 = vmatmul.mubr.f32.gmra.mxu1 %v1413_v34 }
 0x22a   : > { %7468 = vmatprep.mubr.f32.mxu0 %v9163_v44  ;;  %7528 = vmatprep.mubr.f32.mxu1 %v8988_v24 }
 0x22d   : > { %7469 = vmatmul.mubr.f32.gmra.mxu0 %v9177_v20  ;;  %7529 = vmatmul.mubr.f32.vlgmr.msra.gmra.mxu1 %v8998_v28  ;;  %v1135_v20 = vld [vmem:[%s11037_s5 + $0x48] sm:$0xff] }
 0x22e   : > { %7471 = vmatprep.mubr.f32.mxu0 %v1402_v12  ;;  %7531 = vmatprep.mubr.f32.mxu1 %v9016_v37 }
 0x231   : > { %7472 = vmatmul.mubr.f32.gmra.mxu0 %v1412_v25  ;;  %7532 = vmatmul.mubr.f32.gmra.mxu1 %v9030_v48 }
 0x232   : > { %7502 = vmatprep.mubr.f32.mxu0 %v8988_v24  ;;  %7534 = vmatprep.mubr.f32.mxu1 %v9044_v55 }
 0x235   : > { %7503 = vmatmul.mubr.f32.vlgmr.msra.gmra.mxu0 %v8998_v28  ;;  %7535 = vmatmul.mubr.f32.gmra.mxu1 %v9059_v3 }
 0x236   : > { %7505 = vmatprep.mubr.f32.mxu0 %v9016_v37  ;;  %7537 = vmatprep.mubr.f32.mxu1 %v9073_v11 }
 0x239   : > { %7506 = vmatmul.mubr.f32.gmra.mxu0 %v9030_v48  ;;  %7538 = vmatmul.mubr.f32.gmra.mxu1 %v9087_v23 }
 0x23a   : > { %7508 = vmatprep.mubr.f32.mxu0 %v9044_v55  ;;  %7540 = vmatprep.mubr.f32.mxu1 %v9101_v42 }
 0x23d   : > { %7509 = vmatmul.mubr.f32.gmra.mxu0 %v9059_v3  ;;  %7541 = vmatmul.mubr.f32.gmra.mxu1 %v9115_v59 }
 0x23e   : > { %7511 = vmatprep.mubr.f32.mxu0 %v9073_v11  ;;  %7543 = vmatprep.mubr.f32.mxu1 %v9129_v13  ;;  %v1131_v11 = vld [vmem:[%s11037_s5 + $0x28] sm:$0xff] }
 0x241   : > { %7512 = vmatmul.mubr.f32.gmra.mxu0 %v9087_v23  ;;  %7544 = vmatmul.mubr.f32.gmra.mxu1 %v9143_v46 }
 0x242   : > { %7514 = vmatprep.mubr.f32.mxu0 %v9101_v42  ;;  %7546 = vmatprep.mubr.f32.mxu1 %v9157_v21 }
 0x245   : > { %7515 = vmatmul.mubr.f32.gmra.mxu0 %v9115_v59  ;;  %7547 = vmatmul.mubr.f32.gmra.mxu1 %v9171_v47 }
 0x246   : > { %7517 = vmatprep.mubr.f32.mxu0 %v9129_v13  ;;  %7549 = vmatprep.mubr.f32.mxu1 %v9183_v6 }
 0x249   : > { %7518 = vmatmul.mubr.f32.gmra.mxu0 %v9143_v46  ;;  %7550 = vmatmul.mubr.f32.gmra.mxu1 %v9193_v36 }
 0x24a   : > { %7520 = vmatprep.mubr.f32.mxu0 %v9157_v21  ;;  %7619 = vmatprep.mubr.msk.f32.mxu1 %vm8698_vm0, %v11131_v30 }
 0x24d   : > { %7521 = vmatmul.mubr.f32.gmra.mxu0 %v9171_v47 }
 0x24e   : > { %7523 = vmatprep.mubr.f32.mxu0 %v9183_v6 }
 0x251   : > { %7524 = vmatmul.mubr.f32.gmra.mxu0 %v9193_v36 }
 0x252   : > { %7584 = vmatprep.mubr.msk.f32.mxu0 %vm8698_vm0, %v11131_v30 }
 0x291   : > { %v7426_v34 = vpop.f32.mrf.mxu1 }
 0x293   : > { %v9285_v55 = vpop.f32.mrf.mxu1 }
 0x299   : > { %v7400_v24 = vpop.f32.mrf.mxu0  ;;  %v7429_v3 = vpop.f32.mrf.mxu1 }
 0x29a   : > { %v1278_v28 = vadd.f32 %v7400_v24, %v1127_v14 }
 0x29b   : > { %v9280_v48 = vpop.f32.mrf.mxu0  ;;  %v9292_v19 = vpop.f32.mrf.mxu1 }
 0x29c   : > { %v1500_v37 = vadd.f32 %v7426_v34, %v1278_v28 }
 0x2a1   : > { %v7403_v36 = vpop.f32.mrf.mxu0  ;;  %v7432_v42 = vpop.f32.mrf.mxu1 }
 0x2a2   : > { %v1298_v62 = vadd.f32 %v7403_v36, %v1129_v52 }
 0x2a3   : > { %v9287_v8 = vpop.f32.mrf.mxu0  ;;  %v1517_v53 = vpop.f32.mrf.mxu1 }
 0x2a4   : > { %v1512_v6 = vadd.f32 %v7429_v3, %v1298_v62 }
 0x2a9   : > { %v7406_v23 = vpop.f32.mrf.mxu0  ;;  %v7435_v13 = vpop.f32.mrf.mxu1 }
 0x2aa   : > { %v1318_v35 = vadd.f32 %v7406_v23, %v1131_v11 }
 0x2ab   : > { %v1307_v59 = vpop.f32.mrf.mxu0  ;;  %v1529_v21 = vpop.f32.mrf.mxu1 }
 0x2ac   : > { %v1524_v47 = vadd.f32 %v7432_v42, %v1318_v35 }
 0x2b1   : > { %v7409_v38 = vpop.f32.mrf.mxu0  ;;  %v7438_v44 = vpop.f32.mrf.mxu1 }
 0x2b2   : > { %v1338_v46 = vadd.f32 %v7409_v38, %v1133_v9 }
 0x2b3   : > { %v1327_v39 = vpop.f32.mrf.mxu0  ;;  %v1541_v25 = vpop.f32.mrf.mxu1 }
 0x2b4   : > { %v1536_v10 = vadd.f32 %v7435_v13, %v1338_v46  ;;  %v1130_v46 = vld [vmem:[%s11037_s5 + $0x20] sm:$0xff] }
 0x2b9   : > { %v7412_v56 = vpop.f32.mrf.mxu0  ;;  %v7441_v29 = vpop.f32.mrf.mxu1 }
 0x2ba   : > { %v1358_v12 = vadd.f32 %v7412_v56, %v1135_v20 }
 0x2bb   : > { %v1347_v63 = vpop.f32.mrf.mxu0  ;;  %v9305_v58 = vpop.f32.mrf.mxu1 }
 0x2bc   : > { %v9300_v0 = vadd.f32 %v7438_v44, %v1358_v12 }
 0x2c1   : > { %v7415_v16 = vpop.f32.mrf.mxu0  ;;  %v7444_v41 = vpop.f32.mrf.mxu1 }
 0x2c2   : > { %v1378_v57 = vadd.f32 %v7415_v16, %v1137_v60  ;;  %v1308_v60 = vadd.f32 %v1307_v59, %v1130_v46 }
 0x2c3   : > { %v9309_v18 = vpop.f32.mrf.mxu0  ;;  %v9311_v32 = vpop.f32.mrf.mxu1 }
 0x2c4   : > { %v9307_v27 = vadd.f32 %v7441_v29, %v1378_v57  ;;  %v1132_v57 = vld [vmem:[%s11037_s5 + $0x30] sm:$0xff]  ;;  %v1518_v40 = vadd.f32 %v1517_v53, %v1308_v60 }
 0x2c9   : > { %v7418_v14 = vpop.f32.mrf.mxu0  ;;  %v9316_v24 = vpop.f32.mrf.mxu1 }
 0x2ca   : > { %v1398_v28 = vadd.f32 %v7418_v14, %v1139_v45 }
 0x2cb   : > { %v9318_v34 = vpop.f32.mrf.mxu1  ;;  %v9322_v62 = vpop.f32.mrf.mxu0 }
 0x2cc   : > { %v9320_v52 = vadd.f32 %v7444_v41, %v1398_v28 }
 0x2cd   : > { %v7478_v36 = vpop.f32.mrf.mxu1 }
 0x2cf   : > { %v9324_v3 = vpop.f32.mrf.mxu1 }
 0x2d1   : > { %v9326_v11 = vpop.f32.mrf.mxu0  ;;  %v7481_v23 = vpop.f32.mrf.mxu1 }
 0x2d3   : > { %v9328_v35 = vpop.f32.mrf.mxu0  ;;  %v9330_v42 = vpop.f32.mrf.mxu1 }
 0x2d5   : > { %v7452_v9 = vpop.f32.mrf.mxu0  ;;  %v7484_v13 = vpop.f32.mrf.mxu1 }
 0x2d6   : > { %v1665_v38 = vadd.f32 %v7452_v9, %v1500_v37  ;;  %v1328_v9 = vadd.f32 %v1327_v39, %v1132_v57 }
 0x2d7   : > { %v1657_v44 = vpop.f32.mrf.mxu0  ;;  %v1868_v20 = vpop.f32.mrf.mxu1 }
 0x2d8   : > { %v1845_v56 = vadd.f32 %v7478_v36, %v1665_v38  ;;  %v1134_v36 = vld [vmem:[%s11037_s5 + $0x40] sm:$0xff] }
 0x2d9   : > { %v7455_v12 = vpop.f32.mrf.mxu0  ;;  %v7487_v29 = vpop.f32.mrf.mxu1  ;;  %v1348_v15 = vadd.f32 %v1347_v63, %v1134_v36 }
 0x2da   : > { %v1679_v16 = vadd.f32 %v7455_v12, %v1512_v6 }
 0x2db   : > { %v1671_v41 = vpop.f32.mrf.mxu0  ;;  %v1884_v45 = vpop.f32.mrf.mxu1 }
 0x2dc   : > { %v1861_v14 = vadd.f32 %v7481_v23, %v1679_v16  ;;  %v1530_v16 = vadd.f32 %v1529_v21, %v1328_v9  ;;  %v1126_v21 = vld [vmem:[%s11037_s5] sm:$0xff] }
 0x2dd   : > { %v7458_v28 = vpop.f32.mrf.mxu0  ;;  %v9338_v37 = vpop.f32.mrf.mxu1 }
 0x2de   : > { %v1693_v54 = vadd.f32 %v7458_v28, %v1524_v47 }
 0x2df   : > { %v1685_v38 = vpop.f32.mrf.mxu0  ;;  %v1900_v59 = vpop.f32.mrf.mxu1 }
 0x2e0   : > { %v1686_v6 = vadd.f32 %v1685_v38, %v1518_v40  ;;  %v9343_v46 = vadd.f32 %v7484_v13, %v1693_v54  ;;  %v1542_v40 = vadd.f32 %v1541_v25, %v1348_v15  ;;  %v1268_v15 = vadd.f32 %v9280_v48, %v1126_v21  ;;  %v1128_v25 = vld [vmem:[%s11037_s5 + $0x10] sm:$0xff] }
 0x2e1   : > { %v7461_v12 = vpop.f32.mrf.mxu0  ;;  %v9345_v30 = vpop.f32.mrf.mxu1 }
 0x2e2   : > { %v1707_v23 = vadd.f32 %v7461_v12, %v1536_v10  ;;  %v9347_v50 = vadd.f32 %v1868_v20, %v1686_v6 }
 0x2e3   : > { %v1699_v39 = vpop.f32.mrf.mxu0  ;;  %v9349_v47 = vpop.f32.mrf.mxu1 }
 0x2e4   : > { %v1700_v53 = vadd.f32 %v1699_v39, %v1530_v16  ;;  %v9351_v60 = vadd.f32 %v7487_v29, %v1707_v23  ;;  %v1288_v16 = vadd.f32 %v9287_v8, %v1128_v25 }
 0x2e5   : > { %v9353_v57 = vpop.f32.mrf.mxu0  ;;  %v9355_v28 = vpop.f32.mrf.mxu1 }
 0x2e6   : > { %v9357_v54 = vadd.f32 %v1884_v45, %v1700_v53  ;;  %v1506_v48 = vadd.f32 %v9292_v19, %v1288_v16 }
 0x2e7   : > { %v1713_v13 = vpop.f32.mrf.mxu0  ;;  %v9359_v38 = vpop.f32.mrf.mxu1 }
 0x2e8   : > { %v1714_v10 = vadd.f32 %v1713_v13, %v1542_v40  ;;  %v1672_v4 = vadd.f32 %v1671_v41, %v1506_v48 }
 0x2e9   : > { %v9364_v63 = vpop.f32.mrf.mxu0  ;;  %v9366_v20 = vpop.f32.mrf.mxu1 }
 0x2ea   : > { %v9368_v29 = vadd.f32 %v1900_v59, %v1714_v10  ;;  %v1494_v59 = vadd.f32 %v9285_v55, %v1268_v15 }
 0x2eb   : > { %v9370_v9 = vpop.f32.mrf.mxu0  ;;  %v9372_v36 = vpop.f32.mrf.mxu1 }
 0x2ec   : > { %v1658_v40 = vadd.f32 %v1657_v44, %v1494_v59  ;;  %v1853_v59 = vadd.f32 %v9330_v42, %v1672_v4  ;;  %v1141_v42 = vld [vmem:[%s11037_s5 + $0x78] sm:$0xff] }
 0x2ed   : > { %v7470_v45 = vpop.f32.mrf.mxu0  ;;  %v7530_v6 = vpop.f32.mrf.mxu1  ;;  %v1418_v48 = vadd.f32 %v9326_v11, %v1141_v42 }
 0x2ee   : > { %v1837_v1 = vadd.f32 %v9324_v3, %v1658_v40 }
 0x2ef   : > { %v9378_v12 = vpop.f32.mrf.mxu0  ;;  %v2192_v23 = vpop.f32.mrf.mxu1 }
 0x2f1   : > { %v7473_v39 = vpop.f32.mrf.mxu0  ;;  %v7533_v53 = vpop.f32.mrf.mxu1 }
 0x2f3   : > { %v1755_v13 = vpop.f32.mrf.mxu0  ;;  %v2204_v10 = vpop.f32.mrf.mxu1 }
 0x2f5   : > { %v7504_v21 = vpop.f32.mrf.mxu0  ;;  %v9383_v2 = vpop.f32.mrf.mxu1 }
 0x2f6   : > { %v2037_v5 = vadd.f32 %v7504_v21, %v1845_v56 }
 0x2f7   : > { %v2030_v33 = vpop.f32.mrf.mxu0  ;;  %v9386_v49 = vpop.f32.mrf.mxu1 }
 0x2f8   : > { %v2031_v8 = vadd.f32 %v2030_v33, %v1837_v1  ;;  %v9388_v25 = vadd.f32 %v7530_v6, %v2037_v5 }
 0x2f9   : > { %v7507_v55 = vpop.f32.mrf.mxu0  ;;  %v9390_v15 = vpop.f32.mrf.mxu1 }
 0x2fa   : > { %v2049_v44 = vadd.f32 %v7507_v55, %v1861_v14  ;;  %v9393_v19 = vadd.f32 %v2192_v23, %v2031_v8  ;;  %v1140_v23 = vld [vmem:[%s11037_s5 + $0x70] sm:$0xff] }
 0x2fb   : > { %v2042_v16 = vpop.f32.mrf.mxu0  ;;  %v9395_v7 = vpop.f32.mrf.mxu1  ;;  %v1408_v8 = vadd.f32 %v9328_v35, %v1140_v23  ;;  %v1749_v35 = vadd.f32 %v7470_v45, %v9320_v52 }
 0x2fc   : > { %11142 = vst [vmem:[#allocation41_spill] sm:$0xff] %v9393_v19  ;;  %v2043_v56 = vadd.f32 %v2042_v16, %v1853_v59  ;;  %v9397_v41 = vadd.f32 %v7533_v53, %v2049_v44  ;;  %v1584_v59 = vadd.f32 %v9316_v24, %v1418_v48  ;;  %v1138_v16 = vld [vmem:[%s11037_s5 + $0x60] sm:$0xff] }
 0x2fd   : > { %v9399_v3 = vpop.f32.mrf.mxu0  ;;  %v9401_v40 = vpop.f32.mrf.mxu1  ;;  %v1578_v51 = vadd.f32 %v9318_v34, %v1408_v8  ;;  %v1388_v43 = vadd.f32 %v9322_v62, %v1138_v16  ;;  %v1136_v34 = vld [vmem:[%s11037_s5 + $0x50] sm:$0xff] }
 0x2fe   : > { %v9403_v33 = vadd.f32 %v2204_v10, %v2043_v56  ;;  %v1763_v17 = vadd.f32 %v7473_v39, %v1584_v59 }
 0x2ff   : > { %v9405_v5 = vpop.f32.mrf.mxu0  ;;  %v9407_v1 = vpop.f32.mrf.mxu1  ;;  %v1756_v11 = vadd.f32 %v1755_v13, %v1578_v51  ;;  %v1566_v48 = vadd.f32 %v9311_v32, %v1388_v43  ;;  %v1941_v51 = vadd.f32 %v9355_v28, %v1749_v35  ;;  %v1735_v32 = vadd.f32 %v9364_v63, %v9307_v27 }
 0x300   : > { %v1957_v23 = vadd.f32 %v9366_v20, %v1763_v17  ;;  %v1368_v17 = vadd.f32 %v9309_v18, %v1136_v34 }
 0x301   : > { %v9409_v14 = vpop.f32.mrf.mxu0  ;;  %v7545_v4 = vpop.f32.mrf.mxu1  ;;  %v1949_v19 = vadd.f32 %v9372_v36, %v1756_v11  ;;  %v1742_v62 = vadd.f32 %v9378_v12, %v1566_v48 }
 0x302   : > { %v1554_v8 = vadd.f32 %v9305_v58, %v1368_v17 }
 0x303   : > { %v9414_v6 = vpop.f32.mrf.mxu0  ;;  %v2252_v53 = vpop.f32.mrf.mxu1  ;;  %v1933_v36 = vadd.f32 %v9359_v38, %v1742_v62 }
 0x304   : > { %v1728_v28 = vadd.f32 %v9370_v9, %v1554_v8 }
 0x305   : > { %v7516_v10 = vpop.f32.mrf.mxu0  ;;  %v7548_v55 = vpop.f32.mrf.mxu1 }
 0x307   : > { %v2078_v21 = vpop.f32.mrf.mxu0  ;;  %v2264_v61 = vpop.f32.mrf.mxu1 }
 0x308   : > { %v2079_v9 = vadd.f32 %v2078_v21, %v9368_v29 }
 0x309   : > { %v7519_v44 = vpop.f32.mrf.mxu0  ;;  %v7551_v26 = vpop.f32.mrf.mxu1 }
 0x30b   : > { %v2090_v56 = vpop.f32.mrf.mxu0  ;;  %v2276_v45 = vpop.f32.mrf.mxu1 }
 0x30d   : > { %v7522_v31 = vpop.f32.mrf.mxu0 }
 0x30e   : > { %v2109_v20 = vadd.f32 %v7522_v31, %v1941_v51  ;;  %v1721_v31 = vadd.f32 %v9353_v57, %v9300_v0  ;;  %v2241_v0 = vadd.f32 %v9407_v1, %v2079_v9  ;;  %v2061_v57 = vadd.f32 %v9399_v3, %v9343_v46 }
 0x30f   : > { %v2102_v42 = vpop.f32.mrf.mxu0 }
 0x310   : > { %v2103_v59 = vadd.f32 %v2102_v42, %v1933_v36  ;;  %v2271_v12 = vadd.f32 %v7548_v55, %v2109_v20  ;;  %v1909_v63 = vadd.f32 %v9338_v37, %v1721_v31 }
 0x311   : > { %v7525_v24 = vpop.f32.mrf.mxu0 }
 0x312   : > { %v2121_v22 = vadd.f32 %v7525_v24, %v1957_v23  ;;  %v2265_v18 = vadd.f32 %v2264_v61, %v2103_v59  ;;  %v2085_v58 = vadd.f32 %v7516_v10, %v1909_v63  ;;  %v2073_v61 = vadd.f32 %v9409_v14, %v9351_v60 }
 0x313   : > { %v2114_v39 = vpop.f32.mrf.mxu0  ;;  %v9461_v60 = vadd.f32 %v9383_v2, %v2061_v57 }
 0x314   : > { %v2115_v13 = vadd.f32 %v2114_v39, %v1949_v19  ;;  %v2283_v52 = vadd.f32 %v7551_v26, %v2121_v22  ;;  %v1925_v22 = vadd.f32 %v9345_v30, %v1735_v32  ;;  %v1917_v19 = vadd.f32 %v9349_v47, %v1728_v28 }
 0x315   : > { %v2247_v30 = vadd.f32 %v9401_v40, %v2085_v58  ;;  %v2067_v47 = vadd.f32 %v9414_v6, %v9357_v54  ;;  %v2235_v37 = vadd.f32 %v9390_v15, %v2073_v61  ;;  %v2055_v40 = vadd.f32 %v9405_v5, %v9347_v50 }
 0x316   : > { %2316 = vmax.xlane.f32.xlu1 %v2283_v52  ;;  %v2277_v43 = vadd.f32 %v2276_v45, %v2115_v13  ;;  %v2097_v26 = vadd.f32 %v7519_v44, %v1925_v22  ;;  %v2091_v27 = vadd.f32 %v2090_v56, %v1917_v19 }
 0x317   : > { %v2229_v29 = vadd.f32 %v9395_v7, %v2067_v47  ;;  %v9465_v1 = vadd.f32 %v9386_v49, %v2055_v40  ;;  %v11143_v7 = vld [vmem:[#allocation41_spill] sm:$0xff] }
 0x318   : > { %2314 = vmax.xlane.f32.xlu0 %v2277_v43  ;;  %v2259_v38 = vadd.f32 %v7545_v4, %v2097_v26  ;;  %v2253_v55 = vadd.f32 %v2252_v53, %v2091_v27 }
 0x31c   : > { %2312 = vmax.xlane.f32.xlu0 %v2271_v12 }
 0x320   : > { %2310 = vmax.xlane.f32.xlu0 %v2265_v18 }
 0x324   : > { %2308 = vmax.xlane.f32.xlu0 %v2259_v38 }
 0x328   : > { %2306 = vmax.xlane.f32.xlu0 %v2253_v55 }
 0x32c   : > { %2304 = vmax.xlane.f32.xlu0 %v2247_v30 }
 0x330   : > { %2302 = vmax.xlane.f32.xlu0 %v2241_v0 }
 0x334   : > { %2300 = vmax.xlane.f32.xlu0 %v2235_v37 }
 0x338   : > { %2298 = vmax.xlane.f32.xlu0 %v2229_v29 }
 0x33c   : > { %2296 = vmax.xlane.f32.xlu0 %v9461_v60 }
 0x340   : > { %2294 = vmax.xlane.f32.xlu0 %v9465_v1 }
 0x344   : > { %2292 = vmax.xlane.f32.xlu0 %v9397_v41 }
 0x348   : > { %2290 = vmax.xlane.f32.xlu0 %v9403_v33 }
 0x34c   : > { %2288 = vmax.xlane.f32.xlu0 %v9388_v25 }
 0x350   : > { %2286 = vmax.xlane.f32.xlu0 %v11143_v7 }
 0x39f   : > { %v2317_v46 = vpop.xlane.xlu1 %2316 }
 0x3a0   : > { %v2333_v50 = vsub.f32 %v2283_v52, %v2317_v46 }
 0x3a1   : > { %v2315_v54 = vpop.xlane.xlu0 %2314 }
 0x3a2   : > { %v2364_v2 = vmul.f32 1.442695, %v2333_v50  ;;  %v2332_v15 = vsub.f32 %v2277_v43, %v2315_v54  ;;  %v11144_v50 = vld [vmem:[#allocation23_spill] sm:$0xff]  ;;  %v11145_v54 = vld [vmem:[#allocation24_spill] sm:$0xff] }
 0x3a4   : > { %8366 = vpow2.f32 %v2364_v2  ;;  %v2362_v3 = vmul.f32 1.442695, %v2332_v15  ;;  %v11146_v2 = vld [vmem:[#allocation27_spill] sm:$0xff]  ;;  %v11147_v15 = vld [vmem:[#allocation25_spill] sm:$0xff] }
 0x3a5   : > { %v2313_v5 = vpop.xlane.xlu0 %2312 }
 0x3a6   : > { %v2331_v49 = vsub.f32 %v2271_v12, %v2313_v5  ;;  %8368 = vpow2.f32 %v2362_v3  ;;  %v11148_v3 = vld [vmem:[#allocation29_spill] sm:$0xff]  ;;  %v11149_v5 = vld [vmem:[#allocation28_spill] sm:$0xff] }
 0x3a8   : > { %v2360_v14 = vmul.f32 1.442695, %v2331_v49  ;;  %v11150_v49 = vld [vmem:[#allocation31_spill] sm:$0xff] }
 0x3a9   : > { %v2311_v4 = vpop.xlane.xlu0 %2310 }
 0x3aa   : > { %v2330_v6 = vsub.f32 %v2265_v18, %v2311_v4  ;;  %8370 = vpow2.f32 %v2360_v14  ;;  %v11151_v14 = vld [vmem:[#allocation30_spill] sm:$0xff]  ;;  %v11152_v4 = vld [vmem:[#allocation33_spill] sm:$0xff] }
 0x3ac   : > { %v2358_v53 = vmul.f32 1.442695, %v2330_v6  ;;  %v11153_v6 = vld [vmem:[#allocation32_spill] sm:$0xff] }
 0x3ad   : > { %v2309_v10 = vpop.xlane.xlu0 %2308 }
 0x3ae   : > { %8372 = vpow2.f32 %v2358_v53  ;;  %v2329_v21 = vsub.f32 %v2259_v38, %v2309_v10  ;;  %v11154_v53 = vld [vmem:[#allocation35_spill] sm:$0xff]  ;;  %v11155_v10 = vld [vmem:[#allocation34_spill] sm:$0xff] }
 0x3b0   : > { %v2356_v44 = vmul.f32 1.442695, %v2329_v21  ;;  %v11156_v21 = vld [vmem:[#allocation37_spill] sm:$0xff] }
 0x3b1   : > { %v9472_v16 = vpop.eup %8366  ;;  %v2307_v56 = vpop.xlane.xlu0 %2306 }
 0x3b2   : > { %8374 = vpow2.f32 %v2356_v44  ;;  %v2328_v11 = vsub.f32 %v2253_v55, %v2307_v56  ;;  %2396 = vadd.xlane.f32.xlu0 %v9472_v16  ;;  %v11157_v44 = vld [vmem:[#allocation36_spill] sm:$0xff]  ;;  %v11158_v56 = vld [vmem:[#allocation39_spill] sm:$0xff] }
 0x3b3   : > { %v9475_v35 = vpop.eup %8368 }
 0x3b4   : > { %v2354_v42 = vmul.f32 1.442695, %v2328_v11  ;;  %v11159_v11 = vld [vmem:[#allocation38_spill] sm:$0xff] }
 0x3b5   : > { %v2305_v23 = vpop.xlane.xlu0 %2304 }
 0x3b6   : > { %8376 = vpow2.f32 %v2354_v42  ;;  %v2327_v24 = vsub.f32 %v2247_v30, %v2305_v23  ;;  %2394 = vadd.xlane.f32.xlu0 %v9475_v35 }
 0x3b7   : > { %v9478_v34 = vpop.eup %8370 }
 0x3b8   : > { %v2352_v48 = vmul.f32 1.442695, %v2327_v24 }
 0x3b9   : > { %v2303_v39 = vpop.xlane.xlu0 %2302 }
 0x3ba   : > { %8378 = vpow2.f32 %v2352_v48  ;;  %v2326_v62 = vsub.f32 %v2241_v0, %v2303_v39  ;;  %2392 = vadd.xlane.f32.xlu0 %v9478_v34 }
 0x3bb   : > { %v9481_v51 = vpop.eup %8372 }
 0x3bc   : > { %v2350_v13 = vmul.f32 1.442695, %v2326_v62  ;;  %2390 = vadd.xlane.f32.xlu1 %v9481_v51 }
 0x3bd   : > { %v2301_v52 = vpop.xlane.xlu0 %2300 }
 0x3be   : > { %8380 = vpow2.f32 %v2350_v13  ;;  %v2325_v45 = vsub.f32 %v2235_v37, %v2301_v52 }
 0x3bf   : > { %v9484_v17 = vpop.eup %8374 }
 0x3c0   : > { %v2348_v20 = vmul.f32 1.442695, %v2325_v45  ;;  %2388 = vadd.xlane.f32.xlu0 %v9484_v17 }
 0x3c1   : > { %v2299_v43 = vpop.xlane.xlu0 %2298 }
 0x3c2   : > { %8382 = vpow2.f32 %v2348_v20  ;;  %v2324_v32 = vsub.f32 %v2229_v29, %v2299_v43 }
 0x3c3   : > { %v9487_v36 = vpop.eup %8376 }
 0x3c4   : > { %v2346_v8 = vmul.f32 1.442695, %v2324_v32  ;;  %2386 = vadd.xlane.f32.xlu1 %v9487_v36 }
 0x3c5   : > { %v2297_v59 = vpop.xlane.xlu0 %2296 }
 0x3c6   : > { %8384 = vpow2.f32 %v2346_v8  ;;  %v2323_v12 = vsub.f32 %v9461_v60, %v2297_v59  ;;  %v11160_v8 = vmov 0.0  }
 0x3c7   : > { %v9491_v28 = vpop.eup %8378 }
 0x3c8   : > { %v2344_v22 = vmul.f32 1.442695, %v2323_v12  ;;  %2384 = vadd.xlane.f32.xlu0 %v9491_v28 }
 0x3c9   : > { %v2295_v26 = vpop.xlane.xlu0 %2294 }
 0x3ca   : > { %8386 = vpow2.f32 %v2344_v22  ;;  %v2322_v18 = vsub.f32 %v9465_v1, %v2295_v26 }
 0x3cb   : > { %v9495_v31 = vpop.eup %8380 }
 0x3cc   : > { %v2342_v19 = vmul.f32 1.442695, %v2322_v18  ;;  %2382 = vadd.xlane.f32.xlu1 %v9495_v31 }
 0x3cd   : > { %v2293_v27 = vpop.xlane.xlu0 %2292 }
 0x3ce   : > { %8388 = vpow2.f32 %v2342_v19  ;;  %v2321_v38 = vsub.f32 %v9397_v41, %v2293_v27 }
 0x3cf   : > { %v9499_v63 = vpop.eup %8382 }
 0x3d0   : > { %v2340_v58 = vmul.f32 1.442695, %v2321_v38  ;;  %2380 = vadd.xlane.f32.xlu0 %v9499_v63 }
 0x3d1   : > { %v2291_v55 = vpop.xlane.xlu0 %2290 }
 0x3d2   : > { %8390 = vpow2.f32 %v2340_v58  ;;  %v2320_v9 = vsub.f32 %v9403_v33, %v2291_v55 }
 0x3d3   : > { %v9503_v30 = vpop.eup %8384 }
 0x3d4   : > { %v2338_v61 = vmul.f32 1.442695, %v2320_v9  ;;  %2378 = vadd.xlane.f32.xlu1 %v9503_v30 }
 0x3d5   : > { %v2289_v0 = vpop.xlane.xlu0 %2288 }
 0x3d6   : > { %8392 = vpow2.f32 %v2338_v61  ;;  %v2319_v47 = vsub.f32 %v9388_v25, %v2289_v0 }
 0x3d7   : > { %v9507_v37 = vpop.eup %8386 }
 0x3d8   : > { %v2336_v41 = vmul.f32 1.442695, %v2319_v47  ;;  %2376 = vadd.xlane.f32.xlu0 %v9507_v37 }
 0x3d9   : > { %v2287_v57 = vpop.xlane.xlu0 %2286 }
 0x3da   : > { %8394 = vpow2.f32 %v2336_v41  ;;  %v2318_v29 = vsub.f32 %v11143_v7, %v2287_v57  ;;  %v520_v7 = vld [vmem:[%s11034_s2 + $0x10] sm:$0xff] }
 0x3db   : > { %v9511_v40 = vpop.eup %8388 }
 0x3dc   : > { %v2334_v33 = vmul.f32 1.442695, %v2318_v29  ;;  %2374 = vadd.xlane.f32.xlu1 %v9511_v40 }
 0x3de   : > { %8396 = vpow2.f32 %v2334_v33 }
 0x3df   : > { %v9514_v60 = vpop.eup %8390 }
 0x3e0   : > { %2372 = vadd.xlane.f32.xlu0 %v9514_v60 }
 0x3e3   : > { %v9517_v25 = vpop.eup %8392 }
 0x3e4   : > { %2370 = vadd.xlane.f32.xlu1 %v9517_v25 }
 0x3e7   : > { %v9520_v1 = vpop.eup %8394 }
 0x3e8   : > { %2368 = vadd.xlane.f32.xlu0 %v9520_v1 }
 0x3eb   : > { %v9523_v46 = vpop.eup %8396 }
 0x3ec   : > { %2366 = vadd.xlane.f32.xlu1 %v9523_v46 }
 0x3fd   : > { %3087 = vrot.lane.b32.xlu1 %v11144_v50, %s8700_s19 }
 0x3fe   : > { %533 = vperm.xlu0 %8364, %v520_v7  }
 0x401   : > { %3089 = vrot.lane.b32.xlu1 %v11145_v54, %s8700_s19 }
 0x402   : > { %3093 = vrot.lane.b32.xlu0 %v11146_v2, %s8700_s19 }
 0x405   : > { %3091 = vrot.lane.b32.xlu1 %v11147_v15, %s8700_s19 }
 0x406   : > { %3097 = vrot.lane.b32.xlu0 %v11148_v3, %s8700_s19 }
 0x409   : > { %3095 = vrot.lane.b32.xlu1 %v11149_v5, %s8700_s19 }
 0x40a   : > { %3101 = vrot.lane.b32.xlu0 %v11150_v49, %s8700_s19 }
 0x40d   : > { %3099 = vrot.lane.b32.xlu1 %v11151_v14, %s8700_s19 }
 0x40e   : > { %3105 = vrot.lane.b32.xlu0 %v11152_v4, %s8700_s19 }
 0x411   : > { %3103 = vrot.lane.b32.xlu1 %v11153_v6, %s8700_s19 }
 0x412   : > { %3109 = vrot.lane.b32.xlu0 %v11154_v53, %s8700_s19 }
 0x415   : > { %3107 = vrot.lane.b32.xlu1 %v11155_v10, %s8700_s19 }
 0x416   : > { %3113 = vrot.lane.b32.xlu0 %v11156_v21, %s8700_s19 }
 0x419   : > { %3111 = vrot.lane.b32.xlu1 %v11157_v44, %s8700_s19 }
 0x41a   : > { %3117 = vrot.lane.b32.xlu0 %v11158_v56, %s8700_s19 }
 0x41d   : > { %3115 = vrot.lane.b32.xlu1 %v11159_v11, %s8700_s19 }
 0x43b   : > { %v2397_v42 = vpop.xlane.xlu0 %2396 }
 0x43c   : > { %8398 = vrcp.f32 %v2397_v42 }
 0x43f   : > { %v2395_v23 = vpop.xlane.xlu0 %2394 }
 0x440   : > { %8400 = vrcp.f32 %v2395_v23 }
 0x443   : > { %v2393_v24 = vpop.xlane.xlu0 %2392 }
 0x444   : > { %8402 = vrcp.f32 %v2393_v24 }
 0x445   : > { %v2391_v48 = vpop.xlane.xlu1 %2390 }
 0x446   : > { %8404 = vrcp.f32 %v2391_v48 }
 0x449   : > { %v8399_v39 = vpop.eup %8398  ;;  %v2389_v62 = vpop.xlane.xlu0 %2388 }
 0x44a   : > { %8406 = vrcp.f32 %v2389_v62  ;;  %v2445_v13 = vmul.f32 %v8399_v39, %v9472_v16 }
 0x44c   : > { %v9546_v52 = vand.u32 4294901760, %v2445_v13 }
 0x44d   : > { %v8401_v45 = vpop.eup %8400  ;;  %v2387_v20 = vpop.xlane.xlu1 %2386 }
 0x44e   : > { %8408 = vrcp.f32 %v2387_v20  ;;  %7553 = vmatpush3.xpose.msra.mxu0 %v9546_v52  ;;  %v9550_v43 = vsub.f32 %v2445_v13, %v9546_v52  ;;  %v2444_v32 = vmul.f32 %v8401_v45, %v9475_v35 }
 0x44f   : > { %7554 = vmatprep.subr.mxu0 %v11160_v8 }
 0x450   : > { %v9554_v59 = vand.u32 4294901760, %v2444_v32  ;;  %v2540_v12 = vand.u32 4294901760, %v9550_v43 }
 0x451   : > { %v8403_v22 = vpop.eup %8402  ;;  %v2385_v16 = vpop.xlane.xlu0 %2384 }
 0x452   : > { %8410 = vrcp.f32 %v2385_v16  ;;  %7555 = vmatpush3.xpose.msra.mxu0 %v9554_v59  ;;  %v9559_v26 = vsub.f32 %v2444_v32, %v9554_v59  ;;  %v2443_v18 = vmul.f32 %v8403_v22, %v9478_v34  ;;  %v2541_v35 = vsub.f32 %v9550_v43, %v2540_v12 }
 0x453   : > { %v8405_v19 = vpop.eup %8404  ;;  %7556 = vmatprep.subr.mxu0 %v11160_v8 }
 0x454   : > { %v9566_v27 = vand.u32 4294901760, %v2443_v18  ;;  %v2542_v38 = vand.u32 4294901760, %v2541_v35  ;;  %v2442_v58 = vmul.f32 %v8405_v19, %v9481_v51  ;;  %v2547_v55 = vand.u32 4294901760, %v9559_v26 }
 0x455   : > { %v2383_v9 = vpop.xlane.xlu1 %2382 }
 0x456   : > { %8412 = vrcp.f32 %v2383_v9  ;;  %7557 = vmatpush3.xpose.msra.mxu0 %v9566_v27  ;;  %v9572_v34 = vsub.f32 %v2443_v18, %v9566_v27  ;;  %7588 = vmatpush3.xpose.msra.mxu1 %v2542_v38  ;;  %v9574_v61 = vand.u32 4294901760, %v2442_v58  ;;  %v2548_v0 = vsub.f32 %v9559_v26, %v2547_v55 }
 0x457   : > { %v8407_v47 = vpop.eup %8406  ;;  %7558 = vmatprep.subr.mxu0 %v11160_v8  ;;  %7589 = vmatprep.subr.mxu1 %v11160_v8 }
 0x458   : > { %v9582_v51 = vsub.f32 %v2442_v58, %v9574_v61  ;;  %v2549_v41 = vand.u32 4294901760, %v2548_v0  ;;  %v2441_v57 = vmul.f32 %v8407_v47, %v9484_v17  ;;  %v2554_v29 = vand.u32 4294901760, %v9572_v34 }
 0x459   : > { %v2381_v33 = vpop.xlane.xlu0 %2380 }
 0x45a   : > { %8414 = vrcp.f32 %v2381_v33  ;;  %7559 = vmatpush3.xpose.msra.mxu0 %v9574_v61  ;;  %7590 = vmatpush3.xpose.msra.mxu1 %v2549_v41  ;;  %v9587_v7 = vand.u32 4294901760, %v2441_v57  ;;  %v2555_v50 = vsub.f32 %v9572_v34, %v2554_v29  ;;  %v2561_v54 = vand.u32 4294901760, %v9582_v51 }
 0x45b   : > { %v8409_v2 = vpop.eup %8408  ;;  %7560 = vmatprep.subr.mxu0 %v11160_v8  ;;  %7591 = vmatprep.subr.mxu1 %v11160_v8 }
 0x45c   : > { %v9596_v17 = vsub.f32 %v2441_v57, %v9587_v7  ;;  %v2556_v15 = vand.u32 4294901760, %v2555_v50  ;;  %v2440_v3 = vmul.f32 %v8409_v2, %v9487_v36  ;;  %v2562_v5 = vsub.f32 %v9582_v51, %v2561_v54 }
 0x45d   : > { %v2379_v49 = vpop.xlane.xlu1 %2378 }
 0x45e   : > { %8416 = vrcp.f32 %v2379_v49  ;;  %7561 = vmatpush3.xpose.msra.mxu0 %v9587_v7  ;;  %7592 = vmatpush3.xpose.msra.mxu1 %v2556_v15  ;;  %v9603_v14 = vand.u32 4294901760, %v2440_v3  ;;  %v2568_v4 = vand.u32 4294901760, %v9596_v17  ;;  %v2563_v53 = vand.u32 4294901760, %v2562_v5 }
 0x45f   : > { %v8411_v6 = vpop.eup %8410  ;;  %7562 = vmatprep.subr.mxu0 %v11160_v8  ;;  %7593 = vmatprep.subr.mxu1 %v11160_v8 }
 0x460   : > { %v9609_v36 = vsub.f32 %v2440_v3, %v9603_v14  ;;  %v2439_v10 = vmul.f32 %v8411_v6, %v9491_v28  ;;  %v2569_v21 = vsub.f32 %v9596_v17, %v2568_v4 }
 0x461   : > { %v2377_v44 = vpop.xlane.xlu0 %2376 }
 0x462   : > { %8418 = vrcp.f32 %v2377_v44  ;;  %7563 = vmatpush3.xpose.msra.mxu0 %v9603_v14  ;;  %7594 = vmatpush3.xpose.msra.mxu1 %v2563_v53  ;;  %v9616_v56 = vand.u32 4294901760, %v2439_v10  ;;  %v2575_v11 = vand.u32 4294901760, %v9609_v36  ;;  %v2570_v23 = vand.u32 4294901760, %v2569_v21 }
 0x463   : > { %v8413_v42 = vpop.eup %8412  ;;  %7564 = vmatprep.subr.mxu0 %v11160_v8  ;;  %7595 = vmatprep.subr.mxu1 %v11160_v8 }
 0x464   : > { %v9622_v28 = vsub.f32 %v2439_v10, %v9616_v56  ;;  %v2438_v24 = vmul.f32 %v8413_v42, %v9495_v31  ;;  %v2576_v48 = vsub.f32 %v9609_v36, %v2575_v11 }
 0x465   : > { %v2375_v39 = vpop.xlane.xlu1 %2374 }
 0x466   : > { %8420 = vrcp.f32 %v2375_v39  ;;  %7565 = vmatpush3.xpose.msra.mxu0 %v9616_v56  ;;  %7596 = vmatpush3.xpose.msra.mxu1 %v2570_v23  ;;  %v9629_v62 = vand.u32 4294901760, %v2438_v24  ;;  %v2582_v13 = vand.u32 4294901760, %v9622_v28  ;;  %v2577_v20 = vand.u32 4294901760, %v2576_v48 }
 0x467   : > { %v8415_v45 = vpop.eup %8414  ;;  %7566 = vmatprep.subr.mxu0 %v11160_v8  ;;  %7597 = vmatprep.subr.mxu1 %v11160_v8 }
 0x468   : > { %v9635_v31 = vsub.f32 %v2438_v24, %v9629_v62  ;;  %v2437_v32 = vmul.f32 %v8415_v45, %v9499_v63  ;;  %v2583_v22 = vsub.f32 %v9622_v28, %v2582_v13 }
 0x469   : > { %v2373_v16 = vpop.xlane.xlu0 %2372 }
 0x46a   : > { %8422 = vrcp.f32 %v2373_v16  ;;  %7567 = vmatpush3.xpose.msra.mxu0 %v9629_v62  ;;  %7598 = vmatpush3.xpose.msra.mxu1 %v2577_v20  ;;  %v9642_v18 = vand.u32 4294901760, %v2437_v32  ;;  %v2589_v35 = vand.u32 4294901760, %v9635_v31  ;;  %v2584_v38 = vand.u32 4294901760, %v2583_v22  ;;  %v11161_v20 = vld [vmem:[#allocation18_spill] sm:$0xff] }
 0x46b   : > { %v8417_v19 = vpop.eup %8416  ;;  %7568 = vmatprep.subr.mxu0 %v11160_v8  ;;  %7599 = vmatprep.subr.mxu1 %v11160_v8 }
 0x46c   : > { %v9648_v63 = vsub.f32 %v2437_v32, %v9642_v18  ;;  %v2436_v58 = vmul.f32 %v8417_v19, %v9503_v30  ;;  %v2590_v9 = vsub.f32 %v9635_v31, %v2589_v35 }
 0x46d   : > { %v2371_v0 = vpop.xlane.xlu1 %2370 }
 0x46e   : > { %8424 = vrcp.f32 %v2371_v0  ;;  %7569 = vmatpush3.xpose.msra.mxu0 %v9642_v18  ;;  %7600 = vmatpush3.xpose.msra.mxu1 %v2584_v38  ;;  %v9655_v47 = vand.u32 4294901760, %v2436_v58  ;;  %v2596_v41 = vand.u32 4294901760, %v9648_v63  ;;  %v2591_v33 = vand.u32 4294901760, %v2590_v9 }
 0x46f   : > { %v8419_v57 = vpop.eup %8418  ;;  %7570 = vmatprep.subr.mxu0 %v11160_v8  ;;  %7601 = vmatprep.subr.mxu1 %v11160_v8 }
 0x470   : > { %v9661_v30 = vsub.f32 %v2436_v58, %v9655_v47  ;;  %v2435_v50 = vmul.f32 %v8419_v57, %v9507_v37  ;;  %v2597_v2 = vsub.f32 %v9648_v63, %v2596_v41 }
 0x471   : > { %v2369_v15 = vpop.xlane.xlu0 %2368 }
 0x472   : > { %8426 = vrcp.f32 %v2369_v15  ;;  %7571 = vmatpush3.xpose.msra.mxu0 %v9655_v47  ;;  %7602 = vmatpush3.xpose.msra.mxu1 %v2591_v33  ;;  %v9668_v3 = vand.u32 4294901760, %v2435_v50  ;;  %v2603_v5 = vand.u32 4294901760, %v9661_v30  ;;  %v2598_v6 = vand.u32 4294901760, %v2597_v2  ;;  %v11163_v33 = vld [vmem:[#allocation20_spill] sm:$0xff] }
 0x473   : > { %v8421_v49 = vpop.eup %8420  ;;  %7572 = vmatprep.subr.mxu0 %v11160_v8  ;;  %7603 = vmatprep.subr.mxu1 %v11160_v8 }
 0x474   : > { %v9674_v37 = vsub.f32 %v2435_v50, %v9668_v3  ;;  %v2434_v53 = vmul.f32 %v8421_v49, %v9511_v40  ;;  %v2604_v10 = vsub.f32 %v9661_v30, %v2603_v5  ;;  %v11164_v49 = vld [vmem:[#allocation21_spill] sm:$0xff] }
 0x475   : > { %v2367_v21 = vpop.xlane.xlu1 %2366 }
 0x476   : > { %8428 = vrcp.f32 %v2367_v21  ;;  %7573 = vmatpush3.xpose.msra.mxu0 %v9668_v3  ;;  %7604 = vmatpush3.xpose.msra.mxu1 %v2598_v6  ;;  %v9681_v44 = vand.u32 4294901760, %v2434_v53  ;;  %v2610_v42 = vand.u32 4294901760, %v9674_v37  ;;  %v2605_v24 = vand.u32 4294901760, %v2604_v10 }
 0x477   : > { %v8423_v23 = vpop.eup %8422  ;;  %7574 = vmatprep.subr.mxu0 %v11160_v8  ;;  %7605 = vmatprep.subr.mxu1 %v11160_v8 }
 0x478   : > { %v9687_v40 = vsub.f32 %v2434_v53, %v9681_v44  ;;  %v2433_v48 = vmul.f32 %v8423_v23, %v9514_v60  ;;  %v2611_v39 = vsub.f32 %v9674_v37, %v2610_v42  ;;  %v11162_v60 = vld [vmem:[#allocation19_spill] sm:$0xff]  ;;  %v11165_v23 = vld [vmem:[#allocation40_spill] sm:$0xff] }
 0x479   : > { %v534_v45 = vpop.permute.xlu0 %533 }
 0x47a   : > { %v639_v32 = vadd.f32 %v11161_v20, %v534_v45  ;;  %7575 = vmatpush3.xpose.msra.mxu0 %v9681_v44  ;;  %7606 = vmatpush3.xpose.msra.mxu1 %v2605_v24  ;;  %v9695_v22 = vand.u32 4294901760, %v2433_v48  ;;  %v2617_v19 = vand.u32 4294901760, %v9687_v40  ;;  %v2612_v9 = vand.u32 4294901760, %v2611_v39  ;;  %v11166_v45 = vld [vmem:[#allocation26_spill] sm:$0xff] }
 0x47b   : > { %v8425_v16 = vpop.eup %8424  ;;  %7576 = vmatprep.subr.mxu0 %v11160_v8  ;;  %7607 = vmatprep.subr.mxu1 %v11160_v8 }
 0x47c   : > { %v727_v38 = vadd.f32 %v11162_v60, %v639_v32  ;;  %v9702_v58 = vsub.f32 %v2433_v48, %v9695_v22  ;;  %v2432_v0 = vmul.f32 %v8425_v16, %v9517_v25  ;;  %v2618_v57 = vsub.f32 %v9687_v40, %v2617_v19 }
 0x47e   : > { %v815_v50 = vadd.f32 %v11163_v33, %v727_v38  ;;  %7577 = vmatpush3.xpose.msra.mxu0 %v9695_v22  ;;  %7608 = vmatpush3.xpose.msra.mxu1 %v2612_v9  ;;  %v9710_v2 = vand.u32 4294901760, %v2432_v0  ;;  %v2619_v53 = vand.u32 4294901760, %v2618_v57  ;;  %v2624_v10 = vand.u32 4294901760, %v9702_v58 }
 0x47f   : > { %v8427_v15 = vpop.eup %8426  ;;  %7578 = vmatprep.subr.mxu0 %v11160_v8  ;;  %7609 = vmatprep.subr.mxu1 %v11160_v8 }
 0x480   : > { %v905_v6 = vadd.f32 %v11164_v49, %v815_v50  ;;  %v2431_v25 = vmul.f32 %v8427_v15, %v9520_v1  ;;  %v9718_v21 = vsub.f32 %v2432_v0, %v9710_v2  ;;  %v2625_v1 = vsub.f32 %v9702_v58, %v2624_v10 }
 0x482   : > { %v991_v24 = vadd.f32 %v11165_v23, %v905_v6  ;;  %7579 = vmatpush3.xpose.msra.mxu0 %v9710_v2  ;;  %7610 = vmatpush3.xpose.msra.mxu1 %v2619_v53  ;;  %v9722_v48 = vand.u32 4294901760, %v2431_v25  ;;  %v2631_v60 = vand.u32 4294901760, %v9718_v21  ;;  %v2626_v0 = vand.u32 4294901760, %v2625_v1 }
 0x483   : > { %v8429_v39 = vpop.eup %8428  ;;  %7580 = vmatprep.subr.mxu0 %v11160_v8  ;;  %7611 = vmatprep.subr.mxu1 %v11160_v8 }
 0x484   : > { %v9727_v20 = vadd.f32 %v11166_v45, %v991_v24  ;;  %v9733_v32 = vsub.f32 %v2431_v25, %v9722_v48  ;;  %v2430_v16 = vmul.f32 %v8429_v39, %v9523_v46  ;;  %v2632_v46 = vsub.f32 %v9718_v21, %v2631_v60 }
 0x486   : > { %11167 = vst [vmem:[#allocation41_spill] sm:$0xff] %v9727_v20  ;;  %v9738_v38 = vand.u32 4294901760, %v9727_v20  ;;  %7581 = vmatpush3.xpose.msra.mxu0 %v9722_v48  ;;  %v9746_v57 = vand.u32 4294901760, %v2430_v16  ;;  %v2638_v33 = vand.u32 4294901760, %v9733_v32  ;;  %7612 = vmatpush3.xpose.msra.mxu1 %v2626_v0  ;;  %v2633_v15 = vand.u32 4294901760, %v2632_v46 }
 0x487   : > { %7582 = vmatprep.subr.mxu0 %v11160_v8  ;;  %7613 = vmatprep.subr.mxu1 %v11160_v8 }
 0x488   : > { %v9744_v9 = vsub.f32 %v9727_v20, %v9738_v38  ;;  %v9755_v50 = vsub.f32 %v2430_v16, %v9746_v57  ;;  %v2639_v49 = vsub.f32 %v9733_v32, %v2638_v33 }
 0x48a   : > { %7583 = vmatpush3.xpose.msra.mxu0 %v9746_v57  ;;  %v2529_v6 = vand.u32 4294901760, %v9744_v9  ;;  %v2645_v53 = vand.u32 4294901760, %v9755_v50  ;;  %7614 = vmatpush3.xpose.msra.mxu1 %v2633_v15  ;;  %v2640_v23 = vand.u32 4294901760, %v2639_v49 }
 0x48b   : > { %7622 = vmatprep.subr.mxu0 %v11160_v8  ;;  %7615 = vmatprep.subr.mxu1 %v11160_v8 }
 0x48c   : > { %v2530_v25 = vsub.f32 %v9744_v9, %v2529_v6  ;;  %v2646_v39 = vsub.f32 %v9755_v50, %v2645_v53 }
 0x48e   : > { %v2531_v24 = vand.u32 4294901760, %v2530_v25  ;;  %7616 = vmatpush3.xpose.msra.mxu1 %v2640_v23  ;;  %v2647_v45 = vand.u32 4294901760, %v2646_v39 }
 0x48f   : > { %7617 = vmatprep.subr.mxu1 %v11160_v8 }
 0x490   : > { %7585 = vmatmul.mubr.f32.vlgmr.msra.gmra.mxu0 %v2531_v24 }
 0x491   : > { %7623 = vmatpush3.xpose.msra.mxu0 %v9550_v43  ;;  %7654 = vmatprep.mubr.msk.f32.mxu0 %vm8698_vm0, %v11160_v8 }
 0x492   : > { %7624 = vmatprep.subr.mxu0 %v11160_v8  ;;  %7618 = vmatpush3.xpose.msra.mxu1 %v2647_v45 }
 0x493   : > { %7657 = vmatprep.subr.mxu1 %v11160_v8 }
 0x495   : > { %7625 = vmatpush3.xpose.msra.mxu0 %v9559_v26  ;;  %7620 = vmatmul.mubr.f32.vlgmr.msra.gmra.mxu1 %v9738_v38 }
 0x496   : > { %7626 = vmatprep.subr.mxu0 %v11160_v8  ;;  %7658 = vmatpush3.xpose.msra.mxu1 %v9546_v52 }
 0x497   : > { %7689 = vmatprep.mubr.msk.f32.mxu1 %vm8698_vm0, %v11160_v8  ;;  %7659 = vmatprep.subr.mxu1 %v11160_v8 }
 0x499   : > { %7627 = vmatpush3.xpose.msra.mxu0 %v9572_v34 }
 0x49a   : > { %7628 = vmatprep.subr.mxu0 %v11160_v8  ;;  %7660 = vmatpush3.xpose.msra.mxu1 %v9554_v59 }
 0x49b   : > { %7661 = vmatprep.subr.mxu1 %v11160_v8 }
 0x49d   : > { %7629 = vmatpush3.xpose.msra.mxu0 %v9582_v51 }
 0x49e   : > { %7630 = vmatprep.subr.mxu0 %v11160_v8  ;;  %7662 = vmatpush3.xpose.msra.mxu1 %v9566_v27 }
 0x49f   : > { %7663 = vmatprep.subr.mxu1 %v11160_v8 }
 0x4a1   : > { %7631 = vmatpush3.xpose.msra.mxu0 %v9596_v17 }
 0x4a2   : > { %7632 = vmatprep.subr.mxu0 %v11160_v8  ;;  %7664 = vmatpush3.xpose.msra.mxu1 %v9574_v61 }
 0x4a3   : > { %7665 = vmatprep.subr.mxu1 %v11160_v8 }
 0x4a5   : > { %7633 = vmatpush3.xpose.msra.mxu0 %v9609_v36 }
 0x4a6   : > { %7634 = vmatprep.subr.mxu0 %v11160_v8  ;;  %7666 = vmatpush3.xpose.msra.mxu1 %v9587_v7 }
 0x4a7   : > { %7667 = vmatprep.subr.mxu1 %v11160_v8 }
 0x4a9   : > { %7635 = vmatpush3.xpose.msra.mxu0 %v9622_v28 }
 0x4aa   : > { %7636 = vmatprep.subr.mxu0 %v11160_v8  ;;  %7668 = vmatpush3.xpose.msra.mxu1 %v9603_v14 }
 0x4ab   : > { %7669 = vmatprep.subr.mxu1 %v11160_v8 }
 0x4ad   : > { %7637 = vmatpush3.xpose.msra.mxu0 %v9635_v31 }
 0x4ae   : > { %7638 = vmatprep.subr.mxu0 %v11160_v8  ;;  %7670 = vmatpush3.xpose.msra.mxu1 %v9616_v56 }
 0x4af   : > { %7671 = vmatprep.subr.mxu1 %v11160_v8 }
 0x4b1   : > { %7639 = vmatpush3.xpose.msra.mxu0 %v9648_v63 }
 0x4b2   : > { %7640 = vmatprep.subr.mxu0 %v11160_v8  ;;  %7672 = vmatpush3.xpose.msra.mxu1 %v9629_v62 }
 0x4b3   : > { %7673 = vmatprep.subr.mxu1 %v11160_v8 }
 0x4b5   : > { %7641 = vmatpush3.xpose.msra.mxu0 %v9661_v30 }
 0x4b6   : > { %7642 = vmatprep.subr.mxu0 %v11160_v8  ;;  %7674 = vmatpush3.xpose.msra.mxu1 %v9642_v18 }
 0x4b7   : > { %7675 = vmatprep.subr.mxu1 %v11160_v8 }
 0x4b9   : > { %7643 = vmatpush3.xpose.msra.mxu0 %v9674_v37 }
 0x4ba   : > { %7644 = vmatprep.subr.mxu0 %v11160_v8  ;;  %7676 = vmatpush3.xpose.msra.mxu1 %v9655_v47 }
 0x4bb   : > { %7677 = vmatprep.subr.mxu1 %v11160_v8 }
 0x4bd   : > { %7645 = vmatpush3.xpose.msra.mxu0 %v9687_v40 }
 0x4be   : > { %7646 = vmatprep.subr.mxu0 %v11160_v8  ;;  %7678 = vmatpush3.xpose.msra.mxu1 %v9668_v3 }
 0x4bf   : > { %7679 = vmatprep.subr.mxu1 %v11160_v8 }
 0x4c1   : > { %7647 = vmatpush3.xpose.msra.mxu0 %v9702_v58 }
 0x4c2   : > { %7648 = vmatprep.subr.mxu0 %v11160_v8  ;;  %7680 = vmatpush3.xpose.msra.mxu1 %v9681_v44 }
 0x4c3   : > { %7681 = vmatprep.subr.mxu1 %v11160_v8 }
 0x4c5   : > { %7649 = vmatpush3.xpose.msra.mxu0 %v9718_v21 }
 0x4c6   : > { %7650 = vmatprep.subr.mxu0 %v11160_v8  ;;  %7682 = vmatpush3.xpose.msra.mxu1 %v9695_v22 }
 0x4c7   : > { %7683 = vmatprep.subr.mxu1 %v11160_v8 }
 0x4c9   : > { %7651 = vmatpush3.xpose.msra.mxu0 %v9733_v32 }
 0x4ca   : > { %7652 = vmatprep.subr.mxu0 %v11160_v8  ;;  %7684 = vmatpush3.xpose.msra.mxu1 %v9710_v2 }
 0x4cb   : > { %7685 = vmatprep.subr.mxu1 %v11160_v8 }
 0x4cd   : > { %7653 = vmatpush3.xpose.msra.mxu0 %v9755_v50 }
 0x4ce   : > { %7692 = vmatprep.subr.mxu0 %v11160_v8  ;;  %7686 = vmatpush3.xpose.msra.mxu1 %v9722_v48 }
 0x4cf   : > { %7687 = vmatprep.subr.mxu1 %v11160_v8 }
 0x4d0   : > { %7655 = vmatmul.mubr.f32.vlgmr.msra.gmra.mxu0 %v9744_v9 }
 0x4d1   : > { %7693 = vmatpush3.xpose.msra.mxu0 %v2540_v12  ;;  %7724 = vmatprep.mubr.msk.f32.mxu0 %vm8698_vm0, %v11160_v8  ;;  %v3094_v12 = vpop.permute.xlu0 %3093 }
 0x4d2   : > { %7694 = vmatprep.subr.mxu0 %v11160_v8  ;;  %7688 = vmatpush3.xpose.msra.mxu1 %v9746_v57 }
 0x4d3   : > { %7727 = vmatprep.subr.mxu1 %v11160_v8 }
 0x4d5   : > { %7695 = vmatpush3.xpose.msra.mxu0 %v2547_v55  ;;  %7690 = vmatmul.mubr.f32.vlgmr.msra.gmra.mxu1 %v2529_v6  ;;  %v11168_v55 = vld [vmem:[#allocation22_spill] sm:$0xff] }
 0x4d6   : > { %7696 = vmatprep.subr.mxu0 %v11160_v8  ;;  %7728 = vmatpush3.xpose.msra.mxu1 %v9546_v52  ;;  %v3088_v52 = vpop.permute.xlu1 %3087  ;;  %v3119_v34 = vrot.slane %v11168_v55, 4 }
 0x4d7   : > { %7759 = vmatprep.mubr.msk.f32.mxu1 %vm8698_vm0, %v11160_v8  ;;  %7729 = vmatprep.subr.mxu1 %v11160_v8 }
 0x4d9   : > { %7697 = vmatpush3.xpose.msra.mxu0 %v2554_v29  ;;  %v3152_v29 = vsel %vm1191_vm2, %v3119_v34, 0 }
 0x4da   : > { %7698 = vmatprep.subr.mxu0 %v11160_v8  ;;  %7730 = vmatpush3.xpose.msra.mxu1 %v9554_v59  ;;  %v3090_v43 = vpop.permute.xlu1 %3089 }
 0x4db   : > { %7731 = vmatprep.subr.mxu1 %v11160_v8 }
 0x4dd   : > { %7699 = vmatpush3.xpose.msra.mxu0 %v2561_v54  ;;  %v3122_v54 = vsel %vm1142_vm3, %v3090_v43, 0 }
 0x4de   : > { %7700 = vmatprep.subr.mxu0 %v11160_v8  ;;  %7732 = vmatpush3.xpose.msra.mxu1 %v9566_v27  ;;  %v3092_v59 = vpop.permute.xlu1 %3091  ;;  %v3098_v27 = vpop.permute.xlu0 %3097  ;;  %v9917_v36 = vand.u32 4294901760, %v3122_v54 }
 0x4df   : > { %7733 = vmatprep.subr.mxu1 %v11160_v8  ;;  %v3130_v30 = vsel %vm1142_vm3, %v3098_v27, 0 }
 0x4e1   : > { %7701 = vmatpush3.xpose.msra.mxu0 %v2568_v4  ;;  %v9915_v4 = vand.u32 4294901760, %v3152_v29 }
 0x4e2   : > { %7702 = vmatprep.subr.mxu0 %v11160_v8  ;;  %7734 = vmatpush3.xpose.msra.mxu1 %v9574_v61  ;;  %v3096_v26 = vpop.permute.xlu1 %3095  ;;  %v3120_v61 = vsel %vm1142_vm3, %v3088_v52, 0  ;;  %v3102_v17 = vpop.permute.xlu0 %3101 }
 0x4e3   : > { %7735 = vmatprep.subr.mxu1 %v11160_v8  ;;  %v9932_v31 = vsub.f32 %v3152_v29, %v9915_v4 }
 0x4e5   : > { %7703 = vmatpush3.xpose.msra.mxu0 %v2575_v11  ;;  %v3126_v11 = vsel %vm1142_vm3, %v3094_v12, 0  ;;  %v9958_v40 = vand.u32 4294901760, %v9932_v31 }
 0x4e6   : > { %7704 = vmatprep.subr.mxu0 %v11160_v8  ;;  %7736 = vmatpush3.xpose.msra.mxu1 %v9587_v7  ;;  %v3100_v51 = vpop.permute.xlu1 %3099  ;;  %v9907_v7 = vand.u32 4294901760, %v3120_v61  ;;  %v3106_v63 = vpop.permute.xlu0 %3105 }
 0x4e7   : > { %7737 = vmatprep.subr.mxu1 %v11160_v8  ;;  %v3414_v46 = vsub.f32 %v9932_v31, %v9958_v40 }
 0x4e9   : > { %7705 = vmatpush3.xpose.msra.mxu0 %v2582_v13  ;;  %v3128_v13 = vsel %vm1142_vm3, %v3096_v26, 0 }
 0x4ea   : > { %7706 = vmatprep.subr.mxu0 %v11160_v8  ;;  %7738 = vmatpush3.xpose.msra.mxu1 %v9603_v14  ;;  %v3124_v14 = vsel %vm1142_vm3, %v3092_v59, 0  ;;  %v3110_v16 = vpop.permute.xlu0 %3109 }
 0x4eb   : > { %7739 = vmatprep.subr.mxu1 %v11160_v8  ;;  %v9924_v28 = vand.u32 4294901760, %v3124_v14  ;;  %v3142_v12 = vsel %vm1142_vm3, %v3110_v16, 0 }
 0x4ed   : > { %7707 = vmatpush3.xpose.msra.mxu0 %v2589_v35  ;;  %v9937_v35 = vand.u32 4294901760, %v3126_v11 }
 0x4ee   : > { %7708 = vmatprep.subr.mxu0 %v11160_v8  ;;  %7740 = vmatpush3.xpose.msra.mxu1 %v9616_v56  ;;  %v9921_v56 = vsub.f32 %v3120_v61, %v9907_v7  ;;  %v3114_v52 = vpop.permute.xlu0 %3113 }
 0x4ef   : > { %7741 = vmatprep.subr.mxu1 %v11160_v8 }
 0x4f1   : > { %7709 = vmatpush3.xpose.msra.mxu0 %v2596_v41  ;;  %v9942_v41 = vsub.f32 %v3124_v14, %v9924_v28 }
 0x4f2   : > { %7710 = vmatprep.subr.mxu0 %v11160_v8  ;;  %7742 = vmatpush3.xpose.msra.mxu1 %v9629_v62  ;;  %v3104_v62 = vpop.permute.xlu1 %3103 }
 0x4f3   : > { %7743 = vmatprep.subr.mxu1 %v11160_v8  ;;  %v3136_v32 = vsel %vm1142_vm3, %v3104_v62, 0 }
 0x4f4   : > { %v9990_v50 = vand.u32 4294901760, %v3136_v32 }
 0x4f5   : > { %7711 = vmatpush3.xpose.msra.mxu0 %v2603_v5  ;;  %v3132_v5 = vsel %vm1142_vm3, %v3100_v51, 0 }
 0x4f6   : > { %7712 = vmatprep.subr.mxu0 %v11160_v8  ;;  %7744 = vmatpush3.xpose.msra.mxu1 %v9642_v18  ;;  %v9935_v18 = vsub.f32 %v3122_v54, %v9917_v36  ;;  %v9970_v1 = vand.u32 4294901760, %v3132_v5  ;;  %v10012_v59 = vsub.f32 %v3136_v32, %v9990_v50 }
 0x4f7   : > { %7745 = vmatprep.subr.mxu1 %v11160_v8 }
 0x4f8   : > { %v3232_v37 = vand.u32 4294901760, %v9935_v18  ;;  %v9994_v6 = vsub.f32 %v3132_v5, %v9970_v1 }
 0x4f9   : > { %7713 = vmatpush3.xpose.msra.mxu0 %v2610_v42  ;;  %v3108_v42 = vpop.permute.xlu1 %3107 }
 0x4fa   : > { %7714 = vmatprep.subr.mxu0 %v11160_v8  ;;  %7746 = vmatpush3.xpose.msra.mxu1 %v9655_v47  ;;  %v3222_v47 = vand.u32 4294901760, %v9921_v56  ;;  %v3140_v23 = vsel %vm1142_vm3, %v3108_v42, 0  ;;  %v3282_v27 = vand.u32 4294901760, %v9994_v6 }
 0x4fb   : > { %7747 = vmatprep.subr.mxu1 %v11160_v8  ;;  %v10019_v55 = vand.u32 4294901760, %v3140_v23 }
 0x4fc   : > { %v3223_v58 = vsub.f32 %v9921_v56, %v3222_v47  ;;  %v3283_v42 = vsub.f32 %v9994_v6, %v3282_v27 }
 0x4fd   : > { %7715 = vmatpush3.xpose.msra.mxu0 %v2617_v19  ;;  %v9960_v19 = vand.u32 4294901760, %v3130_v30 }
 0x4fe   : > { %7716 = vmatprep.subr.mxu0 %v11160_v8  ;;  %7748 = vmatpush3.xpose.msra.mxu1 %v9668_v3  ;;  %v9945_v3 = vand.u32 4294901760, %v3128_v13  ;;  %v3224_v15 = vand.u32 4294901760, %v3223_v58 }
 0x4ff   : > { %7749 = vmatprep.subr.mxu1 %v11160_v8 }
 0x500   : > { %v9968_v21 = vsub.f32 %v3128_v13, %v9945_v3 }
 0x501   : > { %7717 = vmatpush3.xpose.msra.mxu0 %v2624_v10  ;;  %v3242_v10 = vand.u32 4294901760, %v9942_v41 }
 0x502   : > { %7718 = vmatprep.subr.mxu0 %v11160_v8  ;;  %7750 = vmatpush3.xpose.msra.mxu1 %v9681_v44  ;;  %v9954_v44 = vsub.f32 %v3126_v11, %v9937_v35  ;;  %v3262_v49 = vand.u32 4294901760, %v9968_v21  ;;  %v3146_v11 = vsel %vm1142_vm3, %v3114_v52, 0 }
 0x503   : > { %7751 = vmatprep.subr.mxu1 %v11160_v8  ;;  %v3243_v25 = vsub.f32 %v9942_v41, %v3242_v10  ;;  %v10055_v32 = vand.u32 4294901760, %v3146_v11 }
 0x504   : > { %v3252_v9 = vand.u32 4294901760, %v9954_v44  ;;  %v3263_v61 = vsub.f32 %v9968_v21, %v3262_v49 }
 0x505   : > { %7719 = vmatpush3.xpose.msra.mxu0 %v2631_v60  ;;  %v3233_v60 = vsub.f32 %v9935_v18, %v3232_v37  ;;  %v3244_v34 = vand.u32 4294901760, %v3243_v25  ;;  %v10076_v52 = vsub.f32 %v3146_v11, %v10055_v32 }
 0x506   : > { %7720 = vmatprep.subr.mxu0 %v11160_v8  ;;  %7752 = vmatpush3.xpose.msra.mxu1 %v9695_v22  ;;  %v3134_v22 = vsel %vm1142_vm3, %v3102_v17, 0  ;;  %v3253_v26 = vsub.f32 %v9954_v44, %v3252_v9  ;;  %v10031_v17 = vand.u32 4294901760, %v3142_v12  ;;  %v3264_v5 = vand.u32 4294901760, %v3263_v61 }
 0x507   : > { %7753 = vmatprep.subr.mxu1 %v11160_v8  ;;  %v9981_v0 = vand.u32 4294901760, %v3134_v22  ;;  %v3234_v24 = vand.u32 4294901760, %v3233_v60  ;;  %v3352_v11 = vand.u32 4294901760, %v10076_v52 }
 0x508   : > { %v3254_v62 = vand.u32 4294901760, %v3253_v26  ;;  %v10053_v58 = vsub.f32 %v3142_v12, %v10031_v17 }
 0x509   : > { %7721 = vmatpush3.xpose.msra.mxu0 %v2638_v33  ;;  %v3138_v33 = vsel %vm1142_vm3, %v3106_v63, 0  ;;  %v10004_v39 = vsub.f32 %v3134_v22, %v9981_v0 }
 0x50a   : > { %7722 = vmatprep.subr.mxu0 %v11160_v8  ;;  %7754 = vmatpush3.xpose.msra.mxu1 %v9710_v2  ;;  %v9987_v2 = vsub.f32 %v3130_v30, %v9960_v19  ;;  %v10006_v45 = vand.u32 4294901760, %v3138_v33  ;;  %v3118_v30 = vpop.permute.xlu0 %3117 }
 0x50b   : > { %7755 = vmatprep.subr.mxu1 %v11160_v8  ;;  %v3292_v29 = vand.u32 4294901760, %v10004_v39  ;;  %v3150_v16 = vsel %vm1142_vm3, %v3118_v30, 0 }
 0x50c   : > { %v3272_v43 = vand.u32 4294901760, %v9987_v2  ;;  %v10029_v54 = vsub.f32 %v3138_v33, %v10006_v45 }
 0x50d   : > { %7723 = vmatpush3.xpose.msra.mxu0 %v2645_v53  ;;  %v3112_v53 = vpop.permute.xlu1 %3111 }
 0x50e   : > { %7762 = vmatprep.subr.mxu0 %v9915_v4  ;;  %7756 = vmatpush3.xpose.msra.mxu1 %v9722_v48  ;;  %v3415_v48 = vand.u32 4294901760, %v3414_v46  ;;  %v3144_v51 = vsel %vm1142_vm3, %v3112_v53, 0  ;;  %v3273_v13 = vsub.f32 %v9987_v2, %v3272_v43  ;;  %v3312_v22 = vand.u32 4294901760, %v10029_v54 }
 0x50f   : > { %7757 = vmatprep.subr.mxu1 %v11160_v8  ;;  %v10043_v63 = vand.u32 4294901760, %v3144_v51  ;;  %v3293_v46 = vsub.f32 %v10004_v39, %v3292_v29 }
 0x510   : > { %7725 = vmatmul.mubr.f32.vlgmr.msra.gmra.mxu0 %v9738_v38  ;;  %v3274_v60 = vand.u32 4294901760, %v3273_v13  ;;  %v3313_v26 = vsub.f32 %v10029_v54, %v3312_v22 }
 0x511   : > { %7763 = vmatpush3.msra.mxu0 %v9915_v4  ;;  %7764 = vmatprep.mubr.f32.mxu0 %v3224_v15  ;;  %v3116_v14 = vpop.permute.xlu1 %3115  ;;  %v10067_v53 = vsub.f32 %v3144_v51, %v10043_v63  ;;  %v3294_v12 = vand.u32 4294901760, %v3293_v46  ;;  %v3353_v46 = vsub.f32 %v10076_v52, %v3352_v11 }
 0x512   : > { %7814 = vmatprep.subr.mxu0 %v9932_v31  ;;  %7758 = vmatpush3.xpose.msra.mxu1 %v9746_v57  ;;  %v3302_v57 = vand.u32 4294901760, %v10012_v59  ;;  %v3314_v13 = vand.u32 4294901760, %v3313_v26 }
 0x513   : > { %7788 = vmatprep.subr.mxu1 %v3415_v48 }
 0x514   : > { %7765 = vmatmul.mubr.f32.vlgmr.msra.gmra.mxu0 %v3234_v24  ;;  %v3303_v33 = vsub.f32 %v10012_v59, %v3302_v57  ;;  %v3332_v24 = vand.u32 4294901760, %v10053_v58 }
 0x515   : > { %7815 = vmatpush3.msra.mxu0 %v9932_v31  ;;  %7767 = vmatprep.mubr.f32.mxu0 %v3244_v34  ;;  %v10041_v31 = vsub.f32 %v3140_v23, %v10019_v55  ;;  %v3284_v23 = vand.u32 4294901760, %v3283_v42  ;;  %v3342_v34 = vand.u32 4294901760, %v10067_v53 }
 0x516   : > { %7866 = vmatprep.subr.mxu0 %v9958_v40  ;;  %7760 = vmatmul.mubr.f32.vlgmr.msra.gmra.mxu1 %v9738_v38  ;;  %v3148_v38 = vsel %vm1142_vm3, %v3116_v14, 0  ;;  %v3304_v51 = vand.u32 4294901760, %v3303_v33  ;;  %v3333_v30 = vsub.f32 %v10053_v58, %v3332_v24 }
 0x517   : > { %7789 = vmatpush3.msra.mxu1 %v3415_v48  ;;  %7790 = vmatprep.mubr.f32.mxu1 %v9907_v7  ;;  %v3322_v15 = vand.u32 4294901760, %v10041_v31  ;;  %v10069_v25 = vand.u32 4294901760, %v3148_v38  ;;  %v10078_v48 = vand.u32 4294901760, %v3150_v16 }
 0x518   : > { %7768 = vmatmul.mubr.f32.gmra.mxu0 %v3254_v62  ;;  %7840 = vmatprep.subr.mxu1 %v9915_v4 }
 0x519   : > { %7770 = vmatprep.mubr.f32.mxu0 %v3264_v5  ;;  %v10086_v61 = vsub.f32 %v3148_v38, %v10069_v25  ;;  %v3323_v14 = vsub.f32 %v10041_v31, %v3322_v15  ;;  %v10094_v62 = vsub.f32 %v3150_v16, %v10078_v48  ;;  %v3343_v38 = vsub.f32 %v10067_v53, %v3342_v34 }
 0x51a   : > { %7791 = vmatmul.mubr.f32.vlgmr.msra.gmra.mxu1 %v9917_v36 }
 0x51b   : > { %7841 = vmatpush3.msra.mxu1 %v9915_v4  ;;  %7793 = vmatprep.mubr.f32.mxu1 %v9924_v28  ;;  %v3362_v5 = vand.u32 4294901760, %v10086_v61  ;;  %v3324_v42 = vand.u32 4294901760, %v3323_v14  ;;  %v3372_v16 = vand.u32 4294901760, %v10094_v62  ;;  %v3344_v33 = vand.u32 4294901760, %v3343_v38 }
 0x51c   : > { %7892 = vmatprep.subr.mxu1 %v9915_v4  ;;  %7771 = vmatmul.mubr.f32.gmra.mxu0 %v3274_v60  ;;  %v3334_v60 = vand.u32 4294901760, %v3333_v30  ;;  %v8504_v30 = vld [vmem:[%s11037_s5 + $0x38] sm:$0xff] }
 0x51d   : > { %7773 = vmatprep.mubr.f32.mxu0 %v3284_v23  ;;  %v3363_v23 = vsub.f32 %v10086_v61, %v3362_v5  ;;  %v3373_v26 = vsub.f32 %v10094_v62, %v3372_v16 }
 0x51e   : > { %7794 = vmatmul.mubr.f32.gmra.mxu1 %v9937_v35 }
 0x51f   : > { %7796 = vmatprep.mubr.f32.mxu1 %v9945_v3  ;;  %v3374_v14 = vand.u32 4294901760, %v3373_v26  ;;  %v8506_v26 = vld [vmem:[%s11037_s5 + $0x48] sm:$0xff] }
 0x520   : > { %7774 = vmatmul.mubr.f32.gmra.mxu0 %v3294_v12  ;;  %v3354_v12 = vand.u32 4294901760, %v3353_v46 }
 0x521   : > { %7776 = vmatprep.mubr.f32.mxu0 %v3304_v51  ;;  %v3364_v51 = vand.u32 4294901760, %v3363_v23 }
 0x522   : > { %7797 = vmatmul.mubr.f32.gmra.mxu1 %v9960_v19 }
 0x523   : > { %7799 = vmatprep.mubr.f32.mxu1 %v9970_v1 }
 0x524   : > { %7777 = vmatmul.mubr.f32.gmra.mxu0 %v3314_v13 }
 0x525   : > { %7779 = vmatprep.mubr.f32.mxu0 %v3324_v42 }
 0x526   : > { %7800 = vmatmul.mubr.f32.gmra.mxu1 %v9981_v0 }
 0x527   : > { %7802 = vmatprep.mubr.f32.mxu1 %v9990_v50 }
 0x528   : > { %7780 = vmatmul.mubr.f32.gmra.mxu0 %v3334_v60  ;;  %v8505_v60 = vld [vmem:[%s11037_s5 + $0x30] sm:$0xff] }
 0x529   : > { %7782 = vmatprep.mubr.f32.mxu0 %v3344_v33 }
 0x52a   : > { %7803 = vmatmul.mubr.f32.gmra.mxu1 %v10006_v45 }
 0x52b   : > { %7805 = vmatprep.mubr.f32.mxu1 %v10019_v55 }
 0x52c   : > { %7783 = vmatmul.mubr.f32.gmra.mxu0 %v3354_v12 }
 0x52d   : > { %7785 = vmatprep.mubr.f32.mxu0 %v3364_v51 }
 0x52e   : > { %7806 = vmatmul.mubr.f32.gmra.mxu1 %v10031_v17 }
 0x52f   : > { %7808 = vmatprep.mubr.f32.mxu1 %v10043_v63 }
 0x530   : > { %7786 = vmatmul.mubr.f32.gmra.mxu0 %v3374_v14 }
 0x531   : > { %7816 = vmatprep.mubr.f32.mxu0 %v9921_v56 }
 0x532   : > { %7809 = vmatmul.mubr.f32.gmra.mxu1 %v10055_v32 }
 0x533   : > { %7811 = vmatprep.mubr.f32.mxu1 %v10069_v25 }
 0x534   : > { %7817 = vmatmul.mubr.f32.vlgmr.msra.gmra.mxu0 %v9935_v18 }
 0x535   : > { %7867 = vmatpush3.msra.mxu0 %v9958_v40  ;;  %7819 = vmatprep.mubr.f32.mxu0 %v9942_v41 }
 0x536   : > { %7812 = vmatmul.mubr.f32.gmra.mxu1 %v10078_v48  ;;  %7918 = vmatprep.subr.mxu0 %v11160_v8 }
 0x537   : > { %7842 = vmatprep.mubr.f32.mxu1 %v3222_v47 }
 0x538   : > { %7820 = vmatmul.mubr.f32.gmra.mxu0 %v9954_v44 }
 0x539   : > { %7822 = vmatprep.mubr.f32.mxu0 %v9968_v21 }
 0x53a   : > { %7843 = vmatmul.mubr.f32.vlgmr.msra.gmra.mxu1 %v3232_v37 }
 0x53b   : > { %7893 = vmatpush3.msra.mxu1 %v9915_v4  ;;  %7845 = vmatprep.mubr.f32.mxu1 %v3242_v10 }
 0x53c   : > { %7823 = vmatmul.mubr.f32.gmra.mxu0 %v9987_v2  ;;  %7953 = vmatprep.subr.mxu1 %v11160_v8 }
 0x53d   : > { %7825 = vmatprep.mubr.f32.mxu0 %v9994_v6 }
 0x53e   : > { %7846 = vmatmul.mubr.f32.gmra.mxu1 %v3252_v9 }
 0x53f   : > { %7848 = vmatprep.mubr.f32.mxu1 %v3262_v49 }
 0x540   : > { %7826 = vmatmul.mubr.f32.gmra.mxu0 %v10004_v39 }
 0x541   : > { %7828 = vmatprep.mubr.f32.mxu0 %v10012_v59 }
 0x542   : > { %7849 = vmatmul.mubr.f32.gmra.mxu1 %v3272_v43 }
 0x543   : > { %7851 = vmatprep.mubr.f32.mxu1 %v3282_v27 }
 0x544   : > { %7829 = vmatmul.mubr.f32.gmra.mxu0 %v10029_v54 }
 0x545   : > { %7831 = vmatprep.mubr.f32.mxu0 %v10041_v31 }
 0x546   : > { %7852 = vmatmul.mubr.f32.gmra.mxu1 %v3292_v29  ;;  %v8500_v29 = vld [vmem:[%s11037_s5 + $0x18] sm:$0xff] }
 0x547   : > { %7854 = vmatprep.mubr.f32.mxu1 %v3302_v57 }
 0x548   : > { %7832 = vmatmul.mubr.f32.gmra.mxu0 %v10053_v58 }
 0x549   : > { %7834 = vmatprep.mubr.f32.mxu0 %v10067_v53  ;;  %v8502_v53 = vld [vmem:[%s11037_s5 + $0x28] sm:$0xff] }
 0x54a   : > { %7855 = vmatmul.mubr.f32.gmra.mxu1 %v3312_v22 }
 0x54b   : > { %7857 = vmatprep.mubr.f32.mxu1 %v3322_v15 }
 0x54c   : > { %7835 = vmatmul.mubr.f32.gmra.mxu0 %v10076_v52 }
 0x54d   : > { %7837 = vmatprep.mubr.f32.mxu0 %v10086_v61 }
 0x54e   : > { %7858 = vmatmul.mubr.f32.gmra.mxu1 %v3332_v24 }
 0x54f   : > { %7860 = vmatprep.mubr.f32.mxu1 %v3342_v34  ;;  %v8503_v34 = vld [vmem:[%s11037_s5 + $0x20] sm:$0xff] }
 0x550   : > { %v2533_v4 = vpop.f32.mrf.mxu0  ;;  %7838 = vmatmul.mubr.f32.gmra.mxu0 %v10094_v62 }
 0x551   : > { %7868 = vmatprep.mubr.f32.mxu0 %v9907_v7 }
 0x552   : > { %v7586_v56 = vpop.f32.mrf.mxu0  ;;  %7861 = vmatmul.mubr.f32.gmra.mxu1 %v3352_v11 }
 0x553   : > { %7863 = vmatprep.mubr.f32.mxu1 %v3362_v5 }
 0x554   : > { %7869 = vmatmul.mubr.f32.vlgmr.msra.gmra.mxu0 %v9917_v36 }
 0x555   : > { %7871 = vmatprep.mubr.f32.mxu0 %v9924_v28  ;;  %v2684_v18 = vpop.f32.mrf.mxu1 }
 0x556   : > { %7864 = vmatmul.mubr.f32.gmra.mxu1 %v3372_v16  ;;  %v2685_v47 = vadd.f32 %v2684_v18, %v2533_v4  ;;  %v8507_v18 = vld [vmem:[%s11037_s5 + $0x40] sm:$0xff] }
 0x557   : > { %7894 = vmatprep.mubr.f32.mxu1 %v9907_v7  ;;  %v7621_v41 = vpop.f32.mrf.mxu1 }
 0x558   : > { %7872 = vmatmul.mubr.f32.gmra.mxu0 %v9937_v35 }
 0x559   : > { %7874 = vmatprep.mubr.f32.mxu0 %v9945_v3 }
 0x55a   : > { %7895 = vmatmul.mubr.f32.vlgmr.msra.gmra.mxu1 %v9917_v36 }
 0x55b   : > { %7897 = vmatprep.mubr.f32.mxu1 %v9924_v28 }
 0x55c   : > { %7875 = vmatmul.mubr.f32.gmra.mxu0 %v9960_v19 }
 0x55d   : > { %7877 = vmatprep.mubr.f32.mxu0 %v9970_v1 }
 0x55e   : > { %7898 = vmatmul.mubr.f32.gmra.mxu1 %v9937_v35 }
 0x55f   : > { %7900 = vmatprep.mubr.f32.mxu1 %v9945_v3 }
 0x560   : > { %7878 = vmatmul.mubr.f32.gmra.mxu0 %v9981_v0 }
 0x561   : > { %7880 = vmatprep.mubr.f32.mxu0 %v9990_v50 }
 0x562   : > { %7901 = vmatmul.mubr.f32.gmra.mxu1 %v9960_v19 }
 0x563   : > { %7903 = vmatprep.mubr.f32.mxu1 %v9970_v1 }
 0x564   : > { %7881 = vmatmul.mubr.f32.gmra.mxu0 %v10006_v45 }
 0x565   : > { %7883 = vmatprep.mubr.f32.mxu0 %v10019_v55 }
 0x566   : > { %7904 = vmatmul.mubr.f32.gmra.mxu1 %v9981_v0 }
 0x567   : > { %7906 = vmatprep.mubr.f32.mxu1 %v9990_v50  ;;  %v8498_v50 = vld [vmem:[%s11037_s5 + $0x8] sm:$0xff] }
 0x568   : > { %7884 = vmatmul.mubr.f32.gmra.mxu0 %v10031_v17 }
 0x569   : > { %7886 = vmatprep.mubr.f32.mxu0 %v10043_v63 }
 0x56a   : > { %7907 = vmatmul.mubr.f32.gmra.mxu1 %v10006_v45  ;;  %v8499_v45 = vld [vmem:[%s11037_s5] sm:$0xff] }
 0x56b   : > { %7909 = vmatprep.mubr.f32.mxu1 %v10019_v55 }
 0x56c   : > { %7887 = vmatmul.mubr.f32.gmra.mxu0 %v10055_v32 }
 0x56d   : > { %7889 = vmatprep.mubr.f32.mxu0 %v10069_v25 }
 0x56e   : > { %7910 = vmatmul.mubr.f32.gmra.mxu1 %v10031_v17 }
 0x56f   : > { %7912 = vmatprep.mubr.f32.mxu1 %v10043_v63  ;;  %v8501_v63 = vld [vmem:[%s11037_s5 + $0x10] sm:$0xff] }
 0x570   : > { %7890 = vmatmul.mubr.f32.gmra.mxu0 %v10078_v48 }
 0x571   : > { %7950 = vmatprep.mubr.msk.f32.mxu0 %vm8698_vm0, %v11160_v8 }
 0x572   : > { %7913 = vmatmul.mubr.f32.gmra.mxu1 %v10055_v32 }
 0x573   : > { %7915 = vmatprep.mubr.f32.mxu1 %v10069_v25 }
 0x576   : > { %7916 = vmatmul.mubr.f32.gmra.mxu1 %v10078_v48 }
 0x577   : > { %7985 = vmatprep.mubr.msk.f32.mxu1 %vm8698_vm0, %v11160_v8  ;;  %v8513_v8 = vld [vmem:[%s11037_s5 + $0x70] sm:$0xff] }
 0x590   : > { %v2788_v7 = vpop.f32.mrf.mxu0 }
 0x591   : > { %v2789_v36 = vadd.f32 %v2788_v7, %v2685_v47 }
 0x592   : > { %v7656_v28 = vpop.f32.mrf.mxu0 }
 0x593   : > { %v8508_v28 = vld [vmem:[%s11037_s5 + $0x58] sm:$0xff] }
 0x595   : > { %v2877_v35 = vpop.f32.mrf.mxu1 }
 0x596   : > { %v2878_v3 = vadd.f32 %v2877_v35, %v2789_v36 }
 0x597   : > { %v7691_v37 = vpop.f32.mrf.mxu1 }
 0x5d0   : > { %v2996_v44 = vpop.f32.mrf.mxu0 }
 0x5d1   : > { %v2997_v40 = vadd.f32 %v2996_v44, %v2878_v3 }
 0x5d2   : > { %v7726_v19 = vpop.f32.mrf.mxu0 }
 0x5d4   : > { %v7766_v10 = vpop.f32.mrf.mxu0 }
 0x5d5   : > { %v3237_v49 = vadd.f32 %v8498_v50, %v7766_v10 }
 0x5d6   : > { %v3226_v21 = vpop.f32.mrf.mxu0  ;;  %v3083_v1 = vpop.f32.mrf.mxu1 }
 0x5d7   : > { %v10212_v9 = vadd.f32 %v3083_v1, %v2997_v40  ;;  %v3227_v43 = vadd.f32 %v8499_v45, %v3226_v21  ;;  %v8509_v40 = vld [vmem:[%s11037_s5 + $0x50] sm:$0xff] }
 0x5d8   : > { %v7761_v0 = vpop.f32.mrf.mxu1  ;;  %v7769_v2 = vpop.f32.mrf.mxu0 }
 0x5d9   : > { %11169 = vst [vmem:[#allocation23_spill] sm:$0xff] %v10212_v9  ;;  %v3257_v54 = vadd.f32 %v8500_v29, %v7769_v2  ;;  %v8510_v0 = vld [vmem:[%s11037_s5 + $0x68] sm:$0xff] }
 0x5da   : > { %v3246_v6 = vpop.f32.mrf.mxu0  ;;  %v7792_v39 = vpop.f32.mrf.mxu1 }
 0x5db   : > { %v10220_v59 = vadd.f32 %v7792_v39, %v3237_v49  ;;  %v3247_v22 = vadd.f32 %v8501_v63, %v3246_v6  ;;  %v8511_v39 = vld [vmem:[%s11037_s5 + $0x60] sm:$0xff] }
 0x5dc   : > { %v7772_v27 = vpop.f32.mrf.mxu0  ;;  %v3452_v55 = vpop.f32.mrf.mxu1 }
 0x5dd   : > { %v3453_v17 = vadd.f32 %v3452_v55, %v3227_v43  ;;  %v3277_v25 = vadd.f32 %v8502_v53, %v7772_v27 }
 0x5de   : > { %v3266_v57 = vpop.f32.mrf.mxu0  ;;  %v7795_v31 = vpop.f32.mrf.mxu1 }
 0x5df   : > { %v3471_v58 = vadd.f32 %v7795_v31, %v3257_v54  ;;  %v3267_v61 = vadd.f32 %v8503_v34, %v3266_v57 }
 0x5e0   : > { %v7775_v32 = vpop.f32.mrf.mxu0  ;;  %v3464_v15 = vpop.f32.mrf.mxu1 }
 0x5e1   : > { %v3465_v24 = vadd.f32 %v3464_v15, %v3247_v22  ;;  %v3297_v5 = vadd.f32 %v8504_v30, %v7775_v32 }
 0x5e2   : > { %v3286_v52 = vpop.f32.mrf.mxu0  ;;  %v7798_v48 = vpop.f32.mrf.mxu1 }
 0x5e3   : > { %v3483_v11 = vadd.f32 %v7798_v48, %v3277_v25  ;;  %v3287_v46 = vadd.f32 %v8505_v60, %v3286_v52 }
 0x5e4   : > { %v7778_v62 = vpop.f32.mrf.mxu0  ;;  %v3476_v13 = vpop.f32.mrf.mxu1 }
 0x5e5   : > { %v3477_v42 = vadd.f32 %v3476_v13, %v3267_v61  ;;  %v3317_v51 = vadd.f32 %v8506_v26, %v7778_v62 }
 0x5e6   : > { %v3306_v38 = vpop.f32.mrf.mxu0  ;;  %v7801_v16 = vpop.f32.mrf.mxu1 }
 0x5e7   : > { %v10240_v33 = vadd.f32 %v7801_v16, %v3297_v5  ;;  %v3307_v47 = vadd.f32 %v8507_v18, %v3306_v38 }
 0x5e8   : > { %v7781_v23 = vpop.f32.mrf.mxu0  ;;  %v3488_v12 = vpop.f32.mrf.mxu1 }
 0x5e9   : > { %v3489_v14 = vadd.f32 %v3488_v12, %v3287_v46  ;;  %v3337_v35 = vadd.f32 %v8508_v28, %v7781_v23 }
 0x5ea   : > { %v3326_v4 = vpop.f32.mrf.mxu0  ;;  %v7804_v56 = vpop.f32.mrf.mxu1 }
 0x5eb   : > { %v10248_v41 = vadd.f32 %v7804_v56, %v3317_v51  ;;  %v3327_v19 = vadd.f32 %v8509_v40, %v3326_v4 }
 0x5ec   : > { %v7784_v7 = vpop.f32.mrf.mxu0  ;;  %v3500_v36 = vpop.f32.mrf.mxu1 }
 0x5ed   : > { %v10253_v3 = vadd.f32 %v3500_v36, %v3307_v47  ;;  %v3357_v2 = vadd.f32 %v8510_v0, %v7784_v7 }
 0x5ee   : > { %v3346_v37 = vpop.f32.mrf.mxu0  ;;  %v7807_v44 = vpop.f32.mrf.mxu1 }
 0x5ef   : > { %v10258_v10 = vadd.f32 %v7807_v44, %v3337_v35  ;;  %v3347_v45 = vadd.f32 %v8511_v39, %v3346_v37 }
 0x5f0   : > { %v10260_v21 = vpop.f32.mrf.mxu0  ;;  %v3512_v1 = vpop.f32.mrf.mxu1 }
 0x5f1   : > { %v10265_v50 = vadd.f32 %v3512_v1, %v3327_v19 }
 0x5f2   : > { %v10267_v49 = vpop.f32.mrf.mxu0  ;;  %v7810_v6 = vpop.f32.mrf.mxu1 }
 0x5f3   : > { %v10272_v43 = vadd.f32 %v7810_v6, %v3357_v2 }
 0x5f4   : > { %v3524_v27 = vpop.f32.mrf.mxu1  ;;  %v7818_v55 = vpop.f32.mrf.mxu0 }
 0x5f5   : > { %v10274_v29 = vadd.f32 %v3524_v27, %v3347_v45  ;;  %v3624_v54 = vadd.f32 %v7818_v55, %v10220_v59 }
 0x5f6   : > { %v10277_v57 = vpop.f32.mrf.mxu1  ;;  %v3616_v31 = vpop.f32.mrf.mxu0 }
 0x5f7   : > { %v3617_v63 = vadd.f32 %v3616_v31, %v3453_v17 }
 0x5f8   : > { %v10279_v22 = vpop.f32.mrf.mxu1  ;;  %v7821_v32 = vpop.f32.mrf.mxu0 }
 0x5f9   : > { %v3638_v15 = vadd.f32 %v7821_v32, %v3471_v58 }
 0x5fa   : > { %v3630_v53 = vpop.f32.mrf.mxu0  ;;  %v7844_v25 = vpop.f32.mrf.mxu1 }
 0x5fb   : > { %v3631_v52 = vadd.f32 %v3630_v53, %v3465_v24  ;;  %v10281_v48 = vadd.f32 %v7844_v25, %v3624_v54 }
 0x5fc   : > { %v7824_v34 = vpop.f32.mrf.mxu0  ;;  %v3795_v61 = vpop.f32.mrf.mxu1 }
 0x5fd   : > { %11170 = vst [vmem:[#allocation24_spill] sm:$0xff] %v10281_v48  ;;  %v3652_v62 = vadd.f32 %v7824_v34, %v3483_v11  ;;  %v10283_v13 = vadd.f32 %v3795_v61, %v3617_v63 }
 0x5fe   : > { %v3644_v30 = vpop.f32.mrf.mxu0  ;;  %v7847_v59 = vpop.f32.mrf.mxu1 }
 0x5ff   : > { %11171 = vst [vmem:[#allocation27_spill] sm:$0xff] %v10283_v13  ;;  %v3645_v5 = vadd.f32 %v3644_v30, %v3477_v42  ;;  %v10285_v38 = vadd.f32 %v7847_v59, %v3638_v15 }
 0x600   : > { %v10287_v17 = vpop.f32.mrf.mxu0  ;;  %v3811_v16 = vpop.f32.mrf.mxu1 }
 0x601   : > { %v10289_v60 = vadd.f32 %v3811_v16, %v3631_v52 }
 0x602   : > { %v3658_v58 = vpop.f32.mrf.mxu0  ;;  %v7850_v46 = vpop.f32.mrf.mxu1 }
 0x603   : > { %11172 = vst [vmem:[#allocation25_spill] sm:$0xff] %v10289_v60  ;;  %v3659_v24 = vadd.f32 %v3658_v58, %v3489_v14  ;;  %v10291_v23 = vadd.f32 %v7850_v46, %v3652_v62 }
 0x604   : > { %v10293_v12 = vpop.f32.mrf.mxu0  ;;  %v3827_v11 = vpop.f32.mrf.mxu1 }
 0x605   : > { %v10295_v26 = vadd.f32 %v3827_v11, %v3645_v5  ;;  %v8512_v11 = vld [vmem:[%s11037_s5 + $0x78] sm:$0xff] }
 0x606   : > { %v10297_v51 = vpop.f32.mrf.mxu0  ;;  %v10299_v42 = vpop.f32.mrf.mxu1 }
 0x607   : > { %11173 = vst [vmem:[#allocation29_spill] sm:$0xff] %v10295_v26 }
 0x608   : > { %v7833_v4 = vpop.f32.mrf.mxu0  ;;  %v3843_v56 = vpop.f32.mrf.mxu1 }
 0x609   : > { %v10301_v18 = vadd.f32 %v3843_v56, %v3659_v24  ;;  %v3377_v56 = vadd.f32 %v8512_v11, %v10260_v21  ;;  %v3694_v11 = vadd.f32 %v7833_v4, %v10258_v10 }
 0x60a   : > { %v10303_v47 = vpop.f32.mrf.mxu0  ;;  %v10305_v7 = vpop.f32.mrf.mxu1 }
 0x60c   : > { %v7836_v14 = vpop.f32.mrf.mxu0  ;;  %v10307_v36 = vpop.f32.mrf.mxu1 }
 0x60e   : > { %v10309_v28 = vpop.f32.mrf.mxu0  ;;  %v7859_v35 = vpop.f32.mrf.mxu1 }
 0x60f   : > { %v3701_v10 = vadd.f32 %v10309_v28, %v10274_v29 }
 0x610   : > { %v7839_v37 = vpop.f32.mrf.mxu0  ;;  %v10311_v44 = vpop.f32.mrf.mxu1 }
 0x612   : > { %v3714_v40 = vpop.f32.mrf.mxu0  ;;  %v7862_v19 = vpop.f32.mrf.mxu1 }
 0x614   : > { %v3891_v1 = vpop.f32.mrf.mxu1  ;;  %v10313_v0 = vpop.f32.mrf.mxu0 }
 0x615   : > { %11174 = vst [vmem:[#allocation28_spill] sm:$0xff] %v10313_v0 }
 0x616   : > { %v7865_v2 = vpop.f32.mrf.mxu1  ;;  %v10315_v6 = vpop.f32.mrf.mxu0 }
 0x617   : > { %11175 = vst [vmem:[#allocation31_spill] sm:$0xff] %v10315_v6  ;;  %v3543_v6 = vadd.f32 %v10277_v57, %v3377_v56 }
 0x618   : > { %v3907_v39 = vpop.f32.mrf.mxu1  ;;  %v10317_v45 = vpop.f32.mrf.mxu0 }
 0x619   : > { %v3722_v60 = vadd.f32 %v7839_v37, %v3543_v6 }
 0x61a   : > { %v10319_v27 = vpop.f32.mrf.mxu0  ;;  %v10321_v55 = vpop.f32.mrf.mxu1 }
 0x61b   : > { %11176 = vst [vmem:[#allocation30_spill] sm:$0xff] %v10319_v27  ;;  %11177 = vst [vmem:[#allocation33_spill] sm:$0xff] %v10321_v55  ;;  %v3916_v26 = vadd.f32 %v7865_v2, %v3722_v60 }
 0x61c   : > { %v10323_v54 = vpop.f32.mrf.mxu0  ;;  %v10325_v31 = vpop.f32.mrf.mxu1  ;;  %v11186_v2 = vld [vmem:[#allocation28_spill] sm:$0xff] }
 0x61d   : > { %11178 = vst [vmem:[#allocation32_spill] sm:$0xff] %v10325_v31  ;;  %v3367_v31 = vadd.f32 %v8513_v8, %v10267_v49  ;;  %v3884_v8 = vadd.f32 %v7859_v35, %v3694_v11 }
 0x61e   : > { %v10327_v63 = vpop.f32.mrf.mxu0  ;;  %v10329_v32 = vpop.f32.mrf.mxu1 }
 0x61f   : > { %11179 = vst [vmem:[#allocation35_spill] sm:$0xff] %v10327_v63  ;;  %v3537_v27 = vadd.f32 %v10279_v22, %v3367_v31  ;;  %v3680_v22 = vadd.f32 %v10293_v12, %v10248_v41  ;;  %v3687_v12 = vadd.f32 %v10303_v47, %v10265_v50 }
 0x620   : > { %v7879_v15 = vpop.f32.mrf.mxu0  ;;  %v10331_v53 = vpop.f32.mrf.mxu1 }
 0x621   : > { %11180 = vst [vmem:[#allocation34_spill] sm:$0xff] %v10331_v53  ;;  %v3715_v63 = vadd.f32 %v3714_v40, %v3537_v27  ;;  %v3868_v60 = vadd.f32 %v10305_v7, %v3680_v22  ;;  %v3876_v29 = vadd.f32 %v10311_v44, %v3687_v12  ;;  %v4008_v44 = vadd.f32 %v10317_v45, %v10285_v38  ;;  %v11189_v45 = vld [vmem:[#allocation29_spill] sm:$0xff] }
 0x622   : > { %v10333_v25 = vpop.f32.mrf.mxu0  ;;  %v10335_v52 = vpop.f32.mrf.mxu1 }
 0x623   : > { %11181 = vst [vmem:[#allocation37_spill] sm:$0xff] %v10333_v25  ;;  %v3708_v25 = vadd.f32 %v7836_v14, %v10272_v43  ;;  %v3666_v43 = vadd.f32 %v10287_v17, %v10240_v33  ;;  %v3673_v33 = vadd.f32 %v10297_v51, %v10253_v3  ;;  %v10379_v51 = vadd.f32 %v10329_v32, %v4008_v44 }
 0x624   : > { %v7882_v34 = vpop.f32.mrf.mxu0  ;;  %v10337_v61 = vpop.f32.mrf.mxu1 }
 0x625   : > { %11182 = vst [vmem:[#allocation36_spill] sm:$0xff] %v10337_v61  ;;  %v3900_v37 = vadd.f32 %v7862_v19, %v3708_v25  ;;  %v4044_v4 = vadd.f32 %v7882_v34, %v3868_v60  ;;  %v3852_v41 = vadd.f32 %v10299_v42, %v3666_v43  ;;  %v4020_v42 = vadd.f32 %v10323_v54, %v10291_v23  ;;  %v11188_v54 = vld [vmem:[#allocation33_spill] sm:$0xff] }
 0x626   : > { %v10339_v62 = vpop.f32.mrf.mxu0  ;;  %v7905_v30 = vpop.f32.mrf.mxu1  ;;  %v11190_v31 = vld [vmem:[#allocation35_spill] sm:$0xff] }
 0x627   : > { %v4032_v28 = vadd.f32 %v7879_v15, %v3852_v41 }
 0x628   : > { %v7885_v59 = vpop.f32.mrf.mxu0  ;;  %v10341_v5 = vpop.f32.mrf.mxu1 }
 0x629   : > { %11183 = vst [vmem:[#allocation39_spill] sm:$0xff] %v10341_v5  ;;  %v3908_v5 = vadd.f32 %v3907_v39, %v3715_v63  ;;  %v4056_v6 = vadd.f32 %v7885_v59, %v3884_v8  ;;  %v4194_v17 = vadd.f32 %v7905_v30, %v4032_v28  ;;  %v4014_v63 = vadd.f32 %v11190_v31, %v11189_v45  ;;  %v11197_v59 = vld [vmem:[#allocation32_spill] sm:$0xff] }
 0x62a   : > { %v4049_v16 = vpop.f32.mrf.mxu0  ;;  %v7908_v58 = vpop.f32.mrf.mxu1 }
 0x62b   : > { %v4206_v35 = vadd.f32 %v7908_v58, %v4044_v4  ;;  %v4050_v19 = vadd.f32 %v4049_v16, %v3876_v29 }
 0x62c   : > { %v7888_v46 = vpop.f32.mrf.mxu0  ;;  %v4199_v24 = vpop.f32.mrf.mxu1  ;;  %v11191_v32 = vld [vmem:[#allocation36_spill] sm:$0xff] }
 0x62d   : > { %v10396_v15 = vadd.f32 %v11191_v32, %v4014_v63 }
 0x62e   : > { %v4061_v9 = vpop.f32.mrf.mxu0  ;;  %v7911_v20 = vpop.f32.mrf.mxu1 }
 0x630   : > { %v7891_v13 = vpop.f32.mrf.mxu0  ;;  %v4211_v53 = vpop.f32.mrf.mxu1  ;;  %v11187_v27 = vld [vmem:[#allocation39_spill] sm:$0xff] }
 0x631   : > { %v4080_v0 = vadd.f32 %v7891_v13, %v3916_v26  ;;  %v4068_v13 = vadd.f32 %v7888_v46, %v3900_v37  ;;  %v4218_v26 = vadd.f32 %v7911_v20, %v4056_v6  ;;  %v4212_v50 = vadd.f32 %v4211_v53, %v4050_v19  ;;  %v11193_v53 = vld [vmem:[#allocation30_spill] sm:$0xff] }
 0x632   : > { %v7914_v61 = vpop.f32.mrf.mxu1  ;;  %v4073_v55 = vpop.f32.mrf.mxu0 }
 0x633   : > { %v4074_v49 = vadd.f32 %v4073_v55, %v3908_v5  ;;  %v4230_v14 = vadd.f32 %v7914_v61, %v4068_v13  ;;  %v11195_v61 = vld [vmem:[#allocation27_spill] sm:$0xff] }
 0x634   : > { %v4223_v21 = vpop.f32.mrf.mxu1 }
 0x636   : > { %v7917_v48 = vpop.f32.mrf.mxu1 }
 0x637   : > { %v4242_v57 = vadd.f32 %v7917_v48, %v4080_v0  ;;  %v3892_v48 = vadd.f32 %v3891_v1, %v3701_v10  ;;  %v3860_v1 = vadd.f32 %v10307_v36, %v3673_v33  ;;  %v11184_v36 = vld [vmem:[#allocation37_spill] sm:$0xff]  ;;  %v11185_v0 = vld [vmem:[#allocation24_spill] sm:$0xff] }
 0x638   : > { %v4235_v56 = vpop.f32.mrf.mxu1  ;;  %v4026_v23 = vadd.f32 %v11184_v36, %v10301_v18  ;;  %v3996_v39 = vadd.f32 %v11186_v2, %v11185_v0  ;;  %v11192_v18 = vld [vmem:[#allocation25_spill] sm:$0xff] }
 0x639   : > { %v4236_v40 = vadd.f32 %v4235_v56, %v4074_v49  ;;  %4275 = vmax.xlane.f32.xlu1 %v4242_v57  ;;  %v4062_v7 = vadd.f32 %v4061_v9, %v3892_v48  ;;  %v10372_v9 = vadd.f32 %v10335_v52, %v4020_v42  ;;  %v4038_v47 = vadd.f32 %v10339_v62, %v3860_v1  ;;  %v11194_v52 = vld [vmem:[#allocation34_spill] sm:$0xff]  ;;  %v11196_v62 = vld [vmem:[#allocation31_spill] sm:$0xff] }
 0x63a   : > { %v10386_v55 = vadd.f32 %v11187_v27, %v4026_v23  ;;  %v10390_v38 = vadd.f32 %v11188_v54, %v3996_v39  ;;  %v4002_v25 = vadd.f32 %v11193_v53, %v11192_v18  ;;  %v3990_v30 = vadd.f32 %v11196_v62, %v11195_v61 }
 0x63b   : > { %4273 = vmax.xlane.f32.xlu0 %v4236_v40  ;;  %v4224_v20 = vadd.f32 %v4223_v21, %v4062_v7  ;;  %v4200_v3 = vadd.f32 %v4199_v24, %v4038_v47 }
 0x63c   : > { %v10403_v34 = vadd.f32 %v11194_v52, %v4002_v25  ;;  %v10409_v5 = vadd.f32 %v11197_v59, %v3990_v30 }
 0x63d   : > { %4267 = vmax.xlane.f32.xlu1 %v4218_v26 }
 0x63f   : > { %4271 = vmax.xlane.f32.xlu0 %v4230_v14 }
 0x641   : > { %4263 = vmax.xlane.f32.xlu1 %v4206_v35 }
 0x643   : > { %4269 = vmax.xlane.f32.xlu0 %v4224_v20 }
 0x645   : > { %4259 = vmax.xlane.f32.xlu1 %v4194_v17 }
 0x647   : > { %4265 = vmax.xlane.f32.xlu0 %v4212_v50 }
 0x649   : > { %4255 = vmax.xlane.f32.xlu1 %v10372_v9 }
 0x64b   : > { %4261 = vmax.xlane.f32.xlu0 %v4200_v3 }
 0x64d   : > { %4251 = vmax.xlane.f32.xlu1 %v10379_v51 }
 0x64f   : > { %4257 = vmax.xlane.f32.xlu0 %v10386_v55 }
 0x651   : > { %4247 = vmax.xlane.f32.xlu1 %v10390_v38 }
 0x653   : > { %4253 = vmax.xlane.f32.xlu0 %v10396_v15 }
 0x657   : > { %4249 = vmax.xlane.f32.xlu0 %v10403_v34 }
 0x65b   : > { %4245 = vmax.xlane.f32.xlu0 %v10409_v5 }
 0x6c2   : > { %v4276_v16 = vpop.xlane.xlu1 %4275 }
 0x6c3   : > { %v4292_v58 = vsub.f32 %v4242_v57, %v4276_v16 }
 0x6c4   : > { %v4274_v46 = vpop.xlane.xlu0 %4273 }
 0x6c5   : > { %v4323_v24 = vmul.f32 1.442695, %v4292_v58  ;;  %v4291_v21 = vsub.f32 %v4236_v40, %v4274_v46 }
 0x6c6   : > { %v4268_v11 = vpop.xlane.xlu1 %4267 }
 0x6c7   : > { %8430 = vpow2.f32 %v4323_v24  ;;  %v4321_v8 = vmul.f32 1.442695, %v4291_v21  ;;  %v4288_v49 = vsub.f32 %v4218_v26, %v4268_v11 }
 0x6c8   : > { %v4272_v56 = vpop.xlane.xlu0 %4271 }
 0x6c9   : > { %8432 = vpow2.f32 %v4321_v8  ;;  %v4290_v22 = vsub.f32 %v4230_v14, %v4272_v56  ;;  %v4315_v60 = vmul.f32 1.442695, %v4288_v49 }
 0x6ca   : > { %v4264_v37 = vpop.xlane.xlu1 %4263 }
 0x6cb   : > { %v4319_v6 = vmul.f32 1.442695, %v4290_v22  ;;  %v4286_v10 = vsub.f32 %v4206_v35, %v4264_v37 }
 0x6cc   : > { %v4270_v13 = vpop.xlane.xlu0 %4269 }
 0x6cd   : > { %8434 = vpow2.f32 %v4319_v6  ;;  %v4289_v43 = vsub.f32 %v4224_v20, %v4270_v13  ;;  %v4311_v57 = vmul.f32 1.442695, %v4286_v10 }
 0x6ce   : > { %v4260_v48 = vpop.xlane.xlu1 %4259  ;;  %8436 = vpow2.f32 %v4315_v60 }
 0x6cf   : > { %v4317_v4 = vmul.f32 1.442695, %v4289_v43  ;;  %v4284_v41 = vsub.f32 %v4194_v17, %v4260_v48 }
 0x6d0   : > { %v4266_v40 = vpop.xlane.xlu0 %4265 }
 0x6d1   : > { %8438 = vpow2.f32 %v4317_v4  ;;  %v4287_v12 = vsub.f32 %v4212_v50, %v4266_v40  ;;  %v4307_v14 = vmul.f32 1.442695, %v4284_v41  ;;  %v11198_v4 = vmov 0.0  }
 0x6d2   : > { %v4256_v7 = vpop.xlane.xlu1 %4255  ;;  %8440 = vpow2.f32 %v4311_v57 }
 0x6d3   : > { %v4313_v26 = vmul.f32 1.442695, %v4287_v12  ;;  %v4282_v28 = vsub.f32 %v10372_v9, %v4256_v7 }
 0x6d4   : > { %v10412_v29 = vpop.eup %8430  ;;  %v4262_v35 = vpop.xlane.xlu0 %4261 }
 0x6d5   : > { %8442 = vpow2.f32 %v4313_v26  ;;  %v4285_v33 = vsub.f32 %v4200_v3, %v4262_v35  ;;  %4355 = vadd.xlane.f32.xlu1 %v10412_v29  ;;  %v4303_v1 = vmul.f32 1.442695, %v4282_v28 }
 0x6d6   : > { %v10416_v20 = vpop.eup %8432  ;;  %v4252_v19 = vpop.xlane.xlu1 %4251  ;;  %8444 = vpow2.f32 %v4307_v14 }
 0x6d7   : > { %v4309_v17 = vmul.f32 1.442695, %v4285_v33  ;;  %4353 = vadd.xlane.f32.xlu0 %v10416_v20  ;;  %v4280_v42 = vsub.f32 %v10379_v51, %v4252_v19 }
 0x6d8   : > { %v4258_v50 = vpop.xlane.xlu0 %4257 }
 0x6d9   : > { %8446 = vpow2.f32 %v4309_v17  ;;  %v4283_v47 = vsub.f32 %v10386_v55, %v4258_v50  ;;  %v4299_v36 = vmul.f32 1.442695, %v4280_v42 }
 0x6da   : > { %v10421_v9 = vpop.eup %8434  ;;  %v4248_v44 = vpop.xlane.xlu1 %4247  ;;  %8448 = vpow2.f32 %v4303_v1 }
 0x6db   : > { %v4305_v3 = vmul.f32 1.442695, %v4283_v47  ;;  %4351 = vadd.xlane.f32.xlu1 %v10421_v9  ;;  %v4278_v23 = vsub.f32 %v10390_v38, %v4248_v44  ;;  %v10425_v2 = vpop.eup %8436 }
 0x6dc   : > { %v4254_v0 = vpop.xlane.xlu0 %4253 }
 0x6dd   : > { %8450 = vpow2.f32 %v4305_v3  ;;  %v4281_v51 = vsub.f32 %v10396_v15, %v4254_v0  ;;  %v4295_v55 = vmul.f32 1.442695, %v4278_v23 }
 0x6de   : > { %v10428_v39 = vpop.eup %8438  ;;  %8452 = vpow2.f32 %v4299_v36 }
 0x6df   : > { %v4301_v27 = vmul.f32 1.442695, %v4281_v51  ;;  %4347 = vadd.xlane.f32.xlu1 %v10425_v2  ;;  %4349 = vadd.xlane.f32.xlu0 %v10428_v39  ;;  %v10432_v45 = vpop.eup %8440 }
 0x6e0   : > { %v4250_v54 = vpop.xlane.xlu0 %4249 }
 0x6e1   : > { %8454 = vpow2.f32 %v4301_v27  ;;  %v4279_v38 = vsub.f32 %v10403_v34, %v4250_v54 }
 0x6e2   : > { %v10435_v31 = vpop.eup %8442  ;;  %8456 = vpow2.f32 %v4295_v55 }
 0x6e3   : > { %v4297_v63 = vmul.f32 1.442695, %v4279_v38  ;;  %4343 = vadd.xlane.f32.xlu1 %v10432_v45  ;;  %4345 = vadd.xlane.f32.xlu0 %v10435_v31  ;;  %v10439_v15 = vpop.eup %8444 }
 0x6e4   : > { %v4246_v32 = vpop.xlane.xlu0 %4245 }
 0x6e5   : > { %8458 = vpow2.f32 %v4297_v63  ;;  %v4277_v18 = vsub.f32 %v10409_v5, %v4246_v32 }
 0x6e6   : > { %v10442_v53 = vpop.eup %8446 }
 0x6e7   : > { %v4293_v25 = vmul.f32 1.442695, %v4277_v18  ;;  %4339 = vadd.xlane.f32.xlu1 %v10439_v15  ;;  %4341 = vadd.xlane.f32.xlu0 %v10442_v53  ;;  %v10446_v52 = vpop.eup %8448 }
 0x6e9   : > { %8460 = vpow2.f32 %v4293_v25 }
 0x6ea   : > { %v10448_v34 = vpop.eup %8450 }
 0x6eb   : > { %4335 = vadd.xlane.f32.xlu1 %v10446_v52  ;;  %4337 = vadd.xlane.f32.xlu0 %v10448_v34  ;;  %v10452_v61 = vpop.eup %8452 }
 0x6ee   : > { %v10454_v62 = vpop.eup %8454 }
 0x6ef   : > { %4331 = vadd.xlane.f32.xlu1 %v10452_v61  ;;  %4333 = vadd.xlane.f32.xlu0 %v10454_v62  ;;  %v10458_v30 = vpop.eup %8456 }
 0x6f2   : > { %v10460_v59 = vpop.eup %8458 }
 0x6f3   : > { %4327 = vadd.xlane.f32.xlu1 %v10458_v30  ;;  %4329 = vadd.xlane.f32.xlu0 %v10460_v59 }
 0x6f6   : > { %v10464_v5 = vpop.eup %8460 }
 0x6f7   : > { %4325 = vadd.xlane.f32.xlu0 %v10464_v5 }
 0x75e   : > { %v4356_v16 = vpop.xlane.xlu1 %4355 }
 0x75f   : > { %8462 = vrcp.f32 %v4356_v16 }
 0x760   : > { %v4354_v58 = vpop.xlane.xlu0 %4353 }
 0x761   : > { %8464 = vrcp.f32 %v4354_v58 }
 0x764   : > { %v4352_v46 = vpop.xlane.xlu1 %4351 }
 0x765   : > { %8466 = vrcp.f32 %v4352_v46 }
 0x768   : > { %v4348_v24 = vpop.xlane.xlu1 %4347  ;;  %v4350_v21 = vpop.xlane.xlu0 %4349 }
 0x769   : > { %8468 = vrcp.f32 %v4348_v24 }
 0x76a   : > { %8470 = vrcp.f32 %v4350_v21 }
 0x76c   : > { %v8463_v11 = vpop.eup %8462  ;;  %v4344_v8 = vpop.xlane.xlu1 %4343 }
 0x76d   : > { %v4346_v49 = vpop.xlane.xlu0 %4345  ;;  %8472 = vrcp.f32 %v4344_v8  ;;  %v4404_v56 = vmul.f32 %v8463_v11, %v10412_v29 }
 0x76e   : > { %v8465_v22 = vpop.eup %8464  ;;  %8474 = vrcp.f32 %v4346_v49 }
 0x76f   : > { %v10468_v37 = vand.u32 4294901760, %v4404_v56  ;;  %v4403_v6 = vmul.f32 %v8465_v22, %v10416_v20 }
 0x770   : > { %v4340_v60 = vpop.xlane.xlu1 %4339 }
 0x771   : > { %v4342_v10 = vpop.xlane.xlu0 %4341  ;;  %8476 = vrcp.f32 %v4340_v60  ;;  %7919 = vmatpush3.xpose.msra.mxu0 %v10468_v37  ;;  %v10473_v13 = vsub.f32 %v4404_v56, %v10468_v37  ;;  %v10475_v43 = vand.u32 4294901760, %v4403_v6 }
 0x772   : > { %v8467_v48 = vpop.eup %8466  ;;  %8478 = vrcp.f32 %v4342_v10  ;;  %7920 = vmatprep.subr.mxu0 %v11198_v4 }
 0x773   : > { %v10479_v57 = vsub.f32 %v4403_v6, %v10475_v43  ;;  %v4402_v41 = vmul.f32 %v8467_v48, %v10421_v9  ;;  %v4502_v40 = vand.u32 4294901760, %v10473_v13 }
 0x774   : > { %v4336_v35 = vpop.xlane.xlu1 %4335 }
 0x775   : > { %v4338_v12 = vpop.xlane.xlu0 %4337  ;;  %7921 = vmatpush3.xpose.msra.mxu0 %v10475_v43  ;;  %v10484_v7 = vand.u32 4294901760, %v4402_v41  ;;  %v4503_v26 = vsub.f32 %v10473_v13, %v4502_v40  ;;  %v4509_v29 = vand.u32 4294901760, %v10479_v57 }
 0x776   : > { %v8469_v14 = vpop.eup %8468  ;;  %8480 = vrcp.f32 %v4338_v12  ;;  %7922 = vmatprep.subr.mxu0 %v11198_v4 }
 0x777   : > { %v8471_v28 = vpop.eup %8470  ;;  %v10492_v33 = vsub.f32 %v4402_v41, %v10484_v7  ;;  %v4504_v20 = vand.u32 4294901760, %v4503_v26  ;;  %v4510_v19 = vsub.f32 %v10479_v57, %v4509_v29  ;;  %v4400_v17 = vmul.f32 %v8469_v14, %v10425_v2 }
 0x778   : > { %v4401_v1 = vmul.f32 %v8471_v28, %v10428_v39  ;;  %8482 = vrcp.f32 %v4336_v35  ;;  %v4332_v63 = vpop.xlane.xlu1 %4331 }
 0x779   : > { %7923 = vmatpush3.xpose.msra.mxu0 %v10484_v7  ;;  %7954 = vmatpush3.xpose.msra.mxu1 %v4504_v20  ;;  %v10500_v42 = vand.u32 4294901760, %v4400_v17  ;;  %v4516_v50 = vand.u32 4294901760, %v10492_v33  ;;  %v4511_v3 = vand.u32 4294901760, %v4510_v19  ;;  %v4334_v2 = vpop.xlane.xlu0 %4333 }
 0x77a   : > { %v8473_v47 = vpop.eup %8472  ;;  %7955 = vmatprep.subr.mxu1 %v11198_v4  ;;  %7924 = vmatprep.subr.mxu0 %v11198_v4  ;;  %v10505_v9 = vand.u32 4294901760, %v4401_v1  ;;  %8484 = vrcp.f32 %v4334_v2 }
 0x77b   : > { %v8475_v44 = vpop.eup %8474  ;;  %v10508_v36 = vsub.f32 %v4400_v17, %v10500_v42  ;;  %v4517_v23 = vsub.f32 %v10492_v33, %v4516_v50  ;;  %v4398_v0 = vmul.f32 %v8473_v47, %v10432_v45  ;;  %8486 = vrcp.f32 %v4332_v63 }
 0x77c   : > { %v10515_v51 = vsub.f32 %v4401_v1, %v10505_v9  ;;  %v4399_v39 = vmul.f32 %v8475_v44, %v10435_v31  ;;  %v4328_v6 = vpop.xlane.xlu1 %4327 }
 0x77d   : > { %7925 = vmatpush3.xpose.msra.mxu0 %v10505_v9  ;;  %7956 = vmatpush3.xpose.msra.mxu1 %v4511_v3  ;;  %v4530_v45 = vand.u32 4294901760, %v10508_v36  ;;  %v4518_v32 = vand.u32 4294901760, %v4517_v23  ;;  %v10525_v18 = vand.u32 4294901760, %v4398_v0  ;;  %v4330_v21 = vpop.xlane.xlu0 %4329 }
 0x77e   : > { %v8477_v27 = vpop.eup %8476  ;;  %7926 = vmatprep.subr.mxu0 %v11198_v4  ;;  %7957 = vmatprep.subr.mxu1 %v11198_v4  ;;  %v10521_v55 = vand.u32 4294901760, %v4399_v39  ;;  %v4523_v54 = vand.u32 4294901760, %v10515_v51  ;;  %8488 = vrcp.f32 %v4330_v21  ;;  %v11199_v21 = vld [vmem:[#allocation41_spill] sm:$0xff] }
 0x77f   : > { %v8479_v38 = vpop.eup %8478  ;;  %v4531_v58 = vsub.f32 %v10508_v36, %v4530_v45  ;;  %v4396_v46 = vmul.f32 %v8477_v27, %v10439_v15  ;;  %v10542_v8 = vsub.f32 %v4398_v0, %v10525_v18  ;;  %8490 = vrcp.f32 %v4328_v6 }
 0x780   : > { %v10528_v31 = vsub.f32 %v4399_v39, %v10521_v55  ;;  %v4524_v25 = vsub.f32 %v10515_v51, %v4523_v54  ;;  %v4397_v16 = vmul.f32 %v8479_v38, %v10442_v53 }
 0x781   : > { %7927 = vmatpush3.xpose.msra.mxu0 %v10500_v42  ;;  %7958 = vmatpush3.xpose.msra.mxu1 %v4518_v32  ;;  %v4532_v56 = vand.u32 4294901760, %v4531_v58  ;;  %v10550_v15 = vand.u32 4294901760, %v4396_v46  ;;  %v4544_v48 = vand.u32 4294901760, %v10542_v8  ;;  %v4326_v14 = vpop.xlane.xlu0 %4325 }
 0x782   : > { %7928 = vmatprep.subr.mxu0 %v11198_v4  ;;  %7959 = vmatprep.subr.mxu1 %v11198_v4  ;;  %v4525_v11 = vand.u32 4294901760, %v4524_v25  ;;  %v10544_v53 = vand.u32 4294901760, %v4397_v16  ;;  %v4537_v49 = vand.u32 4294901760, %v10528_v31  ;;  %8492 = vrcp.f32 %v4326_v14 }
 0x783   : > { %v8481_v24 = vpop.eup %8480  ;;  %v10564_v12 = vsub.f32 %v4396_v46, %v10550_v15  ;;  %v4545_v35 = vsub.f32 %v10542_v8, %v4544_v48 }
 0x784   : > { %v10553_v60 = vsub.f32 %v4397_v16, %v10544_v53  ;;  %v4538_v10 = vsub.f32 %v10528_v31, %v4537_v49  ;;  %v4395_v41 = vmul.f32 %v8481_v24, %v10448_v34 }
 0x785   : > { %7929 = vmatpush3.xpose.msra.mxu0 %v10521_v55  ;;  %7960 = vmatpush3.xpose.msra.mxu1 %v4525_v11  ;;  %v8483_v22 = vpop.eup %8482  ;;  %v4558_v17 = vand.u32 4294901760, %v10564_v12  ;;  %v4546_v47 = vand.u32 4294901760, %v4545_v35  ;;  %v4406_v11 = vrot.slane %v11199_v21, 4 }
 0x786   : > { %7930 = vmatprep.subr.mxu0 %v11198_v4  ;;  %7961 = vmatprep.subr.mxu1 %v11198_v4  ;;  %v4394_v26 = vmul.f32 %v8483_v22, %v10446_v52  ;;  %v4539_v28 = vand.u32 4294901760, %v4538_v10  ;;  %v10570_v34 = vand.u32 4294901760, %v4395_v41  ;;  %v4551_v20 = vand.u32 4294901760, %v10553_v60 }
 0x787   : > { %v8485_v19 = vpop.eup %8484  ;;  %v4559_v2 = vsub.f32 %v10564_v12, %v4558_v17  ;;  %v10627_v14 = vand.u32 4294901760, %v4406_v11 }
 0x788   : > { %v10576_v52 = vand.u32 4294901760, %v4394_v26  ;;  %v8487_v1 = vpop.eup %8486  ;;  %v10580_v44 = vsub.f32 %v4395_v41, %v10570_v34  ;;  %v4552_v3 = vsub.f32 %v10553_v60, %v4551_v20  ;;  %v4393_v23 = vmul.f32 %v8485_v19, %v10454_v62 }
 0x789   : > { %7931 = vmatpush3.xpose.msra.mxu0 %v10525_v18  ;;  %7962 = vmatpush3.xpose.msra.mxu1 %v4532_v56  ;;  %v4392_v63 = vmul.f32 %v8487_v1, %v10452_v61  ;;  %v4560_v32 = vand.u32 4294901760, %v4559_v2 }
 0x78a   : > { %7932 = vmatprep.subr.mxu0 %v11198_v4  ;;  %7963 = vmatprep.subr.mxu1 %v11198_v4  ;;  %v10590_v0 = vsub.f32 %v4394_v26, %v10576_v52  ;;  %v4553_v27 = vand.u32 4294901760, %v4552_v3  ;;  %v10595_v38 = vand.u32 4294901760, %v4393_v23  ;;  %v4565_v62 = vand.u32 4294901760, %v10580_v44 }
 0x78b   : > { %v8489_v39 = vpop.eup %8488  ;;  %v10609_v24 = vand.u32 4294901760, %v4392_v63  ;;  %v10643_v3 = vsub.f32 %v4406_v11, %v10627_v14 }
 0x78c   : > { %v4572_v25 = vand.u32 4294901760, %v10590_v0  ;;  %v8491_v16 = vpop.eup %8490  ;;  %v10604_v58 = vsub.f32 %v4393_v23, %v10595_v38  ;;  %v4566_v46 = vsub.f32 %v10580_v44, %v4565_v62  ;;  %v4391_v61 = vmul.f32 %v8489_v39, %v10460_v59 }
 0x78d   : > { %7933 = vmatpush3.xpose.msra.mxu0 %v10544_v53  ;;  %7964 = vmatpush3.xpose.msra.mxu1 %v4539_v28  ;;  %v4390_v22 = vmul.f32 %v8491_v16, %v10458_v30  ;;  %v10621_v41 = vsub.f32 %v4392_v63, %v10609_v24  ;;  %v4491_v63 = vand.u32 4294901760, %v10643_v3 }
 0x78e   : > { %7934 = vmatprep.subr.mxu0 %v11198_v4  ;;  %7965 = vmatprep.subr.mxu1 %v11198_v4  ;;  %v4573_v56 = vsub.f32 %v10590_v0, %v4572_v25  ;;  %v4567_v10 = vand.u32 4294901760, %v4566_v46  ;;  %v10623_v59 = vand.u32 4294901760, %v4391_v61  ;;  %v4579_v26 = vand.u32 4294901760, %v10604_v58 }
 0x78f   : > { %v8493_v6 = vpop.eup %8492  ;;  %v10631_v30 = vand.u32 4294901760, %v4390_v22  ;;  %v4586_v1 = vand.u32 4294901760, %v10621_v41  ;;  %v4492_v21 = vsub.f32 %v10643_v3, %v4491_v63 }
 0x790   : > { %v4574_v28 = vand.u32 4294901760, %v4573_v56  ;;  %v10634_v35 = vsub.f32 %v4391_v61, %v10623_v59  ;;  %v4580_v19 = vsub.f32 %v10604_v58, %v4579_v26 }
 0x791   : > { %7935 = vmatpush3.xpose.msra.mxu0 %v10550_v15  ;;  %7966 = vmatpush3.xpose.msra.mxu1 %v4546_v47  ;;  %v4389_v47 = vmul.f32 %v8493_v6, %v10464_v5  ;;  %v10648_v23 = vsub.f32 %v4390_v22, %v10631_v30  ;;  %v4587_v39 = vsub.f32 %v10621_v41, %v4586_v1  ;;  %v4493_v6 = vand.u32 4294901760, %v4492_v21 }
 0x792   : > { %7936 = vmatprep.subr.mxu0 %v11198_v4  ;;  %7967 = vmatprep.subr.mxu1 %v11198_v4  ;;  %v4581_v2 = vand.u32 4294901760, %v4580_v19  ;;  %v4593_v5 = vand.u32 4294901760, %v10634_v35 }
 0x793   : > { %v4600_v61 = vand.u32 4294901760, %v10648_v23 }
 0x794   : > { %v4594_v46 = vsub.f32 %v10634_v35, %v4593_v5 }
 0x795   : > { %7937 = vmatpush3.xpose.msra.mxu0 %v10570_v34  ;;  %7968 = vmatpush3.xpose.msra.mxu1 %v4553_v27  ;;  %v10653_v27 = vand.u32 4294901760, %v4389_v47  ;;  %v4601_v56 = vsub.f32 %v10648_v23, %v4600_v61 }
 0x796   : > { %7938 = vmatprep.subr.mxu0 %v11198_v4  ;;  %7969 = vmatprep.subr.mxu1 %v11198_v4  ;;  %v4595_v11 = vand.u32 4294901760, %v4594_v46 }
 0x797   : > { %v10661_v16 = vsub.f32 %v4389_v47, %v10653_v27 }
 0x799   : > { %7939 = vmatpush3.xpose.msra.mxu0 %v10576_v52  ;;  %7970 = vmatpush3.xpose.msra.mxu1 %v4560_v32  ;;  %v4588_v32 = vand.u32 4294901760, %v4587_v39  ;;  %v4607_v22 = vand.u32 4294901760, %v10661_v16 }
 0x79a   : > { %7940 = vmatprep.subr.mxu0 %v11198_v4  ;;  %7971 = vmatprep.subr.mxu1 %v11198_v4 }
 0x79d   : > { %7941 = vmatpush3.xpose.msra.mxu0 %v10595_v38  ;;  %7972 = vmatpush3.xpose.msra.mxu1 %v4567_v10  ;;  %v4602_v10 = vand.u32 4294901760, %v4601_v56 }
 0x79e   : > { %7942 = vmatprep.subr.mxu0 %v11198_v4  ;;  %7973 = vmatprep.subr.mxu1 %v11198_v4 }
 0x7a1   : > { %7943 = vmatpush3.xpose.msra.mxu0 %v10609_v24  ;;  %7974 = vmatpush3.xpose.msra.mxu1 %v4574_v28  ;;  %v4608_v28 = vsub.f32 %v10661_v16, %v4607_v22 }
 0x7a2   : > { %7944 = vmatprep.subr.mxu0 %v11198_v4  ;;  %7975 = vmatprep.subr.mxu1 %v11198_v4 }
 0x7a3   : > { %v4609_v19 = vand.u32 4294901760, %v4608_v28 }
 0x7a5   : > { %7945 = vmatpush3.xpose.msra.mxu0 %v10623_v59  ;;  %7976 = vmatpush3.xpose.msra.mxu1 %v4581_v2 }
 0x7a6   : > { %7946 = vmatprep.subr.mxu0 %v11198_v4  ;;  %7977 = vmatprep.subr.mxu1 %v11198_v4 }
 0x7a9   : > { %7947 = vmatpush3.xpose.msra.mxu0 %v10631_v30  ;;  %7978 = vmatpush3.xpose.msra.mxu1 %v4588_v32 }
 0x7aa   : > { %7948 = vmatprep.subr.mxu0 %v11198_v4  ;;  %7979 = vmatprep.subr.mxu1 %v11198_v4 }
 0x7ad   : > { %7949 = vmatpush3.xpose.msra.mxu0 %v10653_v27  ;;  %7980 = vmatpush3.xpose.msra.mxu1 %v4595_v11  ;;  %v8514_v11 = vld [vmem:[%s8905_s27] sm:$0xff] }
 0x7ae   : > { %7981 = vmatprep.subr.mxu1 %v11198_v4  ;;  %7988 = vmatprep.subr.mxu0 %v11198_v4 }
 0x7b0   : > { %7951 = vmatmul.mubr.f32.vlgmr.msra.gmra.mxu0 %v4493_v6  ;;  %v5551_v6 = vld [vmem:[%s11041_s9 + $0x18] sm:$0xff] }
 0x7b1   : > { %7982 = vmatpush3.xpose.msra.mxu1 %v4602_v10  ;;  %7989 = vmatpush3.xpose.msra.mxu0 %v10473_v13  ;;  %v5544_v10 = vld [vmem:[%s11040_s8] sm:$0xff] }
 0x7b2   : > { %7983 = vmatprep.subr.mxu1 %v11198_v4  ;;  %7990 = vmatprep.subr.mxu0 %v11198_v4  ;;  %v5573_v28 = vsel %vm536_vm1, %v5544_v10, 0 }
 0x7b3   : > { %8020 = vmatprep.mubr.msk.f32.mxu0 %vm8698_vm0, %v11198_v4 }
 0x7b5   : > { %7984 = vmatpush3.xpose.msra.mxu1 %v4609_v19  ;;  %7991 = vmatpush3.xpose.msra.mxu0 %v10479_v57  ;;  %v10885_v19 = vand.u32 4294901760, %v5573_v28 }
 0x7b6   : > { %7992 = vmatprep.subr.mxu0 %v11198_v4  ;;  %8023 = vmatprep.subr.mxu1 %v11198_v4 }
 0x7b8   : > { %7986 = vmatmul.mubr.f32.vlgmr.msra.gmra.mxu1 %v10627_v14 }
 0x7b9   : > { %7993 = vmatpush3.xpose.msra.mxu0 %v10492_v33  ;;  %8024 = vmatpush3.xpose.msra.mxu1 %v10468_v37  ;;  %v5549_v33 = vld [vmem:[%s11041_s9 + $0x8] sm:$0xff] }
 0x7ba   : > { %7994 = vmatprep.subr.mxu0 %v11198_v4  ;;  %8025 = vmatprep.subr.mxu1 %v11198_v4 }
 0x7bb   : > { %8055 = vmatprep.mubr.msk.f32.mxu1 %vm8698_vm0, %v11198_v4 }
 0x7bd   : > { %7995 = vmatpush3.xpose.msra.mxu0 %v10515_v51  ;;  %8026 = vmatpush3.xpose.msra.mxu1 %v10475_v43 }
 0x7be   : > { %7996 = vmatprep.subr.mxu0 %v11198_v4  ;;  %8027 = vmatprep.subr.mxu1 %v11198_v4 }
 0x7c1   : > { %7997 = vmatpush3.xpose.msra.mxu0 %v10508_v36  ;;  %8028 = vmatpush3.xpose.msra.mxu1 %v10484_v7 }
 0x7c2   : > { %7998 = vmatprep.subr.mxu0 %v11198_v4  ;;  %8029 = vmatprep.subr.mxu1 %v11198_v4 }
 0x7c5   : > { %7999 = vmatpush3.xpose.msra.mxu0 %v10528_v31  ;;  %8030 = vmatpush3.xpose.msra.mxu1 %v10505_v9 }
 0x7c6   : > { %8000 = vmatprep.subr.mxu0 %v11198_v4  ;;  %8031 = vmatprep.subr.mxu1 %v11198_v4 }
 0x7c9   : > { %8001 = vmatpush3.xpose.msra.mxu0 %v10542_v8  ;;  %8032 = vmatpush3.xpose.msra.mxu1 %v10500_v42 }
 0x7ca   : > { %8002 = vmatprep.subr.mxu0 %v11198_v4  ;;  %8033 = vmatprep.subr.mxu1 %v11198_v4 }
 0x7cd   : > { %8003 = vmatpush3.xpose.msra.mxu0 %v10553_v60  ;;  %8034 = vmatpush3.xpose.msra.mxu1 %v10521_v55 }
 0x7ce   : > { %8004 = vmatprep.subr.mxu0 %v11198_v4  ;;  %8035 = vmatprep.subr.mxu1 %v11198_v4 }
 0x7d1   : > { %8005 = vmatpush3.xpose.msra.mxu0 %v10564_v12  ;;  %8036 = vmatpush3.xpose.msra.mxu1 %v10525_v18 }
 0x7d2   : > { %8006 = vmatprep.subr.mxu0 %v11198_v4  ;;  %8037 = vmatprep.subr.mxu1 %v11198_v4 }
 0x7d5   : > { %8007 = vmatpush3.xpose.msra.mxu0 %v10580_v44  ;;  %8038 = vmatpush3.xpose.msra.mxu1 %v10544_v53  ;;  %v11200_v44 = vld [vmem:[#allocation23_spill] sm:$0xff] }
 0x7d6   : > { %8008 = vmatprep.subr.mxu0 %v11198_v4  ;;  %8039 = vmatprep.subr.mxu1 %v11198_v4 }
 0x7d9   : > { %8009 = vmatpush3.xpose.msra.mxu0 %v10590_v0  ;;  %8040 = vmatpush3.xpose.msra.mxu1 %v10550_v15 }
 0x7da   : > { %8010 = vmatprep.subr.mxu0 %v11198_v4  ;;  %8041 = vmatprep.subr.mxu1 %v11198_v4 }
 0x7dd   : > { %8011 = vmatpush3.xpose.msra.mxu0 %v10604_v58  ;;  %8042 = vmatpush3.xpose.msra.mxu1 %v10570_v34 }
 0x7de   : > { %8012 = vmatprep.subr.mxu0 %v11198_v4  ;;  %8043 = vmatprep.subr.mxu1 %v11198_v4 }
 0x7e1   : > { %8013 = vmatpush3.xpose.msra.mxu0 %v10621_v41  ;;  %8044 = vmatpush3.xpose.msra.mxu1 %v10576_v52 }
 0x7e2   : > { %8014 = vmatprep.subr.mxu0 %v11198_v4  ;;  %8045 = vmatprep.subr.mxu1 %v11198_v4 }
 0x7e5   : > { %8015 = vmatpush3.xpose.msra.mxu0 %v10634_v35  ;;  %8046 = vmatpush3.xpose.msra.mxu1 %v10595_v38 }
 0x7e6   : > { %8016 = vmatprep.subr.mxu0 %v11198_v4  ;;  %8047 = vmatprep.subr.mxu1 %v11198_v4 }
 0x7e9   : > { %8017 = vmatpush3.xpose.msra.mxu0 %v10648_v23  ;;  %8048 = vmatpush3.xpose.msra.mxu1 %v10609_v24 }
 0x7ea   : > { %8018 = vmatprep.subr.mxu0 %v11198_v4  ;;  %8049 = vmatprep.subr.mxu1 %v11198_v4 }
 0x7ed   : > { %8019 = vmatpush3.xpose.msra.mxu0 %v10661_v16  ;;  %8050 = vmatpush3.xpose.msra.mxu1 %v10623_v59 }
 0x7ee   : > { %8051 = vmatprep.subr.mxu1 %v11198_v4  ;;  %8058 = vmatprep.subr.mxu0 %v11198_v4 }
 0x7f0   : > { %8021 = vmatmul.mubr.f32.vlgmr.msra.gmra.mxu0 %v10643_v3 }
 0x7f1   : > { %8052 = vmatpush3.xpose.msra.mxu1 %v10631_v30  ;;  %8059 = vmatpush3.xpose.msra.mxu0 %v4502_v40 }
 0x7f2   : > { %8053 = vmatprep.subr.mxu1 %v11198_v4  ;;  %8060 = vmatprep.subr.mxu0 %v11198_v4 }
 0x7f3   : > { %8090 = vmatprep.mubr.msk.f32.mxu0 %vm8698_vm0, %v11198_v4 }
 0x7f5   : > { %8054 = vmatpush3.xpose.msra.mxu1 %v10653_v27  ;;  %8061 = vmatpush3.xpose.msra.mxu0 %v4509_v29  ;;  %v5550_v29 = vld [vmem:[%s11041_s9 + $0x10] sm:$0xff] }
 0x7f6   : > { %8062 = vmatprep.subr.mxu0 %v11198_v4  ;;  %8093 = vmatprep.subr.mxu1 %v11198_v4 }
 0x7f8   : > { %8056 = vmatmul.mubr.f32.vlgmr.msra.gmra.mxu1 %v4491_v63 }
 0x7f9   : > { %8063 = vmatpush3.xpose.msra.mxu0 %v4516_v50  ;;  %8094 = vmatpush3.xpose.msra.mxu1 %v10468_v37  ;;  %v6164_v50 = vld [vmem:[%s11043_s11] sm:$0xff] }
 0x7fa   : > { %8064 = vmatprep.subr.mxu0 %v11198_v4  ;;  %8095 = vmatprep.subr.mxu1 %v11198_v4 }
 0x7fb   : > { %8125 = vmatprep.mubr.msk.f32.mxu1 %vm8698_vm0, %v11198_v4 }
 0x7fd   : > { %8065 = vmatpush3.xpose.msra.mxu0 %v4523_v54  ;;  %8096 = vmatpush3.xpose.msra.mxu1 %v10475_v43 }
 0x7fe   : > { %8066 = vmatprep.subr.mxu0 %v11198_v4  ;;  %8097 = vmatprep.subr.mxu1 %v11198_v4 }
 0x801   : > { %8067 = vmatpush3.xpose.msra.mxu0 %v4530_v45  ;;  %8098 = vmatpush3.xpose.msra.mxu1 %v10484_v7  ;;  %v5054_v7 = vld [vmem:[%s11036_s4] sm:$0xff] }
 0x802   : > { %8068 = vmatprep.subr.mxu0 %v11198_v4  ;;  %8099 = vmatprep.subr.mxu1 %v11198_v4  ;;  %v5053_v45 = vld [vmem:[#allocation2] sm:$0xff] }
 0x803   : > { %5057 = vperm.xlu1 %8365, %v5054_v7  }
 0x805   : > { %8069 = vmatpush3.xpose.msra.mxu0 %v4537_v49  ;;  %8100 = vmatpush3.xpose.msra.mxu1 %v10505_v9 }
 0x806   : > { %8070 = vmatprep.subr.mxu0 %v11198_v4  ;;  %8101 = vmatprep.subr.mxu1 %v11198_v4 }
 0x807   : > { %5564 = vperm.xlu1 %8365, %v5550_v29  }
 0x809   : > { %8071 = vmatpush3.xpose.msra.mxu0 %v4544_v48  ;;  %8102 = vmatpush3.xpose.msra.mxu1 %v10500_v42  ;;  %v5548_v42 = vld [vmem:[%s11041_s9] sm:$0xff] }
 0x80a   : > { %8072 = vmatprep.subr.mxu0 %v11198_v4  ;;  %8103 = vmatprep.subr.mxu1 %v11198_v4 }
 0x80b   : > { %5559 = vperm.xlu1 %8365, %v5549_v33  }
 0x80d   : > { %8073 = vmatpush3.xpose.msra.mxu0 %v4551_v20  ;;  %8104 = vmatpush3.xpose.msra.mxu1 %v10521_v55 }
 0x80e   : > { %8074 = vmatprep.subr.mxu0 %v11198_v4  ;;  %8105 = vmatprep.subr.mxu1 %v11198_v4 }
 0x80f   : > { %5554 = vperm.xlu1 %8365, %v5548_v42  }
 0x811   : > { %8075 = vmatpush3.xpose.msra.mxu0 %v4558_v17  ;;  %8106 = vmatpush3.xpose.msra.mxu1 %v10525_v18  ;;  %v5061_v18 = vsel %vm536_vm1, %v5053_v45, 0 }
 0x812   : > { %8076 = vmatprep.subr.mxu0 %v11198_v4  ;;  %8107 = vmatprep.subr.mxu1 %v11198_v4  ;;  %v5129_v31 = vand.u32 4294901760, %v5061_v18 }
 0x813   : > { %6167 = vperm.xlu1 %8365, %v6164_v50  }
 0x815   : > { %8077 = vmatpush3.xpose.msra.mxu0 %v4565_v62  ;;  %8108 = vmatpush3.xpose.msra.mxu1 %v10544_v53  ;;  %v5130_v53 = vsub.f32 %v5061_v18, %v5129_v31 }
 0x816   : > { %8078 = vmatprep.subr.mxu0 %v11198_v4  ;;  %8109 = vmatprep.subr.mxu1 %v11198_v4 }
 0x817   : > { %v5131_v60 = vand.u32 4294901760, %v5130_v53 }
 0x819   : > { %8079 = vmatpush3.xpose.msra.mxu0 %v4572_v25  ;;  %8110 = vmatpush3.xpose.msra.mxu1 %v10550_v15  ;;  %v5132_v20 = vsub.f32 %v5130_v53, %v5131_v60 }
 0x81a   : > { %8080 = vmatprep.subr.mxu0 %v11198_v4  ;;  %8111 = vmatprep.subr.mxu1 %v11198_v4 }
 0x81d   : > { %8081 = vmatpush3.xpose.msra.mxu0 %v4579_v26  ;;  %8112 = vmatpush3.xpose.msra.mxu1 %v10570_v34 }
 0x81e   : > { %8082 = vmatprep.subr.mxu0 %v11198_v4  ;;  %8113 = vmatprep.subr.mxu1 %v11198_v4 }
 0x821   : > { %8083 = vmatpush3.xpose.msra.mxu0 %v4586_v1  ;;  %8114 = vmatpush3.xpose.msra.mxu1 %v10576_v52 }
 0x822   : > { %8084 = vmatprep.subr.mxu0 %v11198_v4  ;;  %8115 = vmatprep.subr.mxu1 %v11198_v4 }
 0x825   : > { %8085 = vmatpush3.xpose.msra.mxu0 %v4593_v5  ;;  %8116 = vmatpush3.xpose.msra.mxu1 %v10595_v38  ;;  %v5133_v38 = vand.u32 4294901760, %v5132_v20  ;;  %v5546_v20 = vld [vmem:[%s11040_s8 + $0x10] sm:$0xff] }
 0x826   : > { %8086 = vmatprep.subr.mxu0 %v11198_v4  ;;  %8117 = vmatprep.subr.mxu1 %v11198_v4 }
 0x829   : > { %8087 = vmatpush3.xpose.msra.mxu0 %v4600_v61  ;;  %8118 = vmatpush3.xpose.msra.mxu1 %v10609_v24 }
 0x82a   : > { %8088 = vmatprep.subr.mxu0 %v11198_v4  ;;  %8119 = vmatprep.subr.mxu1 %v11198_v4 }
 0x82d   : > { %8089 = vmatpush3.xpose.msra.mxu0 %v4607_v22  ;;  %8120 = vmatpush3.xpose.msra.mxu1 %v10623_v59 }
 0x82e   : > { %8121 = vmatprep.subr.mxu1 %v11198_v4  ;;  %8128 = vmatprep.subr.mxu0 %v11198_v4 }
 0x830   : > { %8091 = vmatmul.mubr.f32.vlgmr.msra.gmra.mxu0 %v10627_v14 }
 0x831   : > { %8122 = vmatpush3.xpose.msra.mxu1 %v10631_v30  ;;  %8130 = vmatprep.mubr.msk.f32.mxu0 %vm8698_vm0, %v11198_v4 }
 0x832   : > { %8123 = vmatprep.subr.mxu1 %v11198_v4 }
 0x835   : > { %8124 = vmatpush3.xpose.msra.mxu1 %v10653_v27 }
 0x836   : > { %8133 = vmatprep.subr.mxu1 %v11198_v4 }
 0x838   : > { %8126 = vmatmul.mubr.f32.vlgmr.msra.gmra.mxu1 %v10627_v14 }
 0x839   : > { %8135 = vmatprep.mubr.msk.f32.mxu1 %vm8698_vm0, %v11198_v4 }
 0x870   : > { %v4495_v37 = vpop.f32.mrf.mxu0 }
 0x872   : > { %v7952_v13 = vpop.f32.mrf.mxu0 }
 0x878   : > { %v4646_v43 = vpop.f32.mrf.mxu1 }
 0x879   : > { %v4647_v57 = vadd.f32 %v4646_v43, %v4495_v37  ;;  %v10888_v37 = vsub.f32 %v5573_v28, %v10885_v19 }
 0x87a   : > { %v7987_v40 = vpop.f32.mrf.mxu1 }
 0x87b   : > { %v5652_v13 = vand.u32 4294901760, %v10888_v37 }
 0x87d   : > { %v5653_v43 = vsub.f32 %v10888_v37, %v5652_v13 }
 0x87e   : > { %v5058_v14 = vpop.permute.xlu1 %5057 }
 0x8b0   : > { %v4750_v9 = vpop.f32.mrf.mxu0 }
 0x8b1   : > { %v4751_v36 = vadd.f32 %v4750_v9, %v4647_v57  ;;  %v5654_v57 = vand.u32 4294901760, %v5653_v43 }
 0x8b2   : > { %v8022_v51 = vpop.f32.mrf.mxu0 }
 0x8b8   : > { %v4839_v55 = vpop.f32.mrf.mxu1 }
 0x8b9   : > { %v4840_v15 = vadd.f32 %v4839_v55, %v4751_v36 }
 0x8ba   : > { %v8057_v54 = vpop.f32.mrf.mxu1 }
 0x8f0   : > { %v4958_v8 = vpop.f32.mrf.mxu0 }
 0x8f1   : > { %v4959_v48 = vadd.f32 %v4958_v8, %v4840_v15 }
 0x8f2   : > { %v8092_v49 = vpop.f32.mrf.mxu0 }
 0x8f8   : > { %v5045_v12 = vpop.f32.mrf.mxu1 }
 0x8f9   : > { %v5046_v34 = vadd.f32 %v5045_v12, %v4959_v48 }
 0x8fa   : > { %v8127_v52 = vpop.f32.mrf.mxu1 }
 0x8fb   : > { %v5050_v17 = vrot.slane %v5046_v34, 4  ;;  %v5545_v34 = vld [vmem:[%s11040_s8 + $0x8] sm:$0xff] }
 0x8fc   : > { %v5576_v52 = vsel %vm536_vm1, %v5545_v34, 0 }
 0x8fd   : > { %v5052_v0 = vsel %vm1191_vm2, %v11200_v44, %v5050_v17  ;;  %v5579_v17 = vsel %vm536_vm1, %v5546_v20, 0  ;;  %v5547_v44 = vld [vmem:[%s11040_s8 + $0x18] sm:$0xff] }
 0x8fe   : > { %v5094_v62 = vand.u32 4294901760, %v5052_v0 }
 0x900   : > { %v5171_v25 = vsub.f32 %v5052_v0, %v5094_v62  ;;  %8129 = vmatpush3.msra.mxu0 %v5094_v62  ;;  %v5660_v0 = vand.u32 4294901760, %v5576_v52 }
 0x901   : > { %8131 = vmatmul.mubr.f32.vlgmr.msra.gmra.mxu0 %v5133_v38  ;;  %8138 = vmatprep.subr.mxu0 %v11198_v4  ;;  %v5670_v38 = vand.u32 4294901760, %v5579_v17 }
 0x902   : > { %8139 = vmatpush3.msra.mxu0 %v5171_v25  ;;  %8140 = vmatprep.mubr.msk.f32.mxu0 %vm8698_vm0, %v11198_v4  ;;  %v5172_v58 = vand.u32 4294901760, %v5171_v25 }
 0x903   : > { %8148 = vmatprep.subr.mxu0 %v11198_v4 }
 0x904   : > { %v5173_v24 = vsub.f32 %v5171_v25, %v5172_v58  ;;  %v5661_v25 = vsub.f32 %v5576_v52, %v5660_v0 }
 0x905   : > { %8141 = vmatmul.mubr.f32.vlgmr.msra.gmra.mxu0 %v5130_v53 }
 0x906   : > { %8149 = vmatpush3.msra.mxu0 %v5172_v58  ;;  %v5174_v41 = vand.u32 4294901760, %v5173_v24  ;;  %8150 = vmatprep.mubr.msk.f32.mxu0 %vm8698_vm0, %v11198_v4  ;;  %v5671_v24 = vsub.f32 %v5579_v17, %v5670_v38 }
 0x908   : > { %8134 = vmatpush3.msra.mxu1 %v5174_v41 }
 0x909   : > { %8136 = vmatmul.mubr.f32.vlgmr.msra.gmra.mxu1 %v5129_v31  ;;  %8143 = vmatprep.subr.mxu1 %v11198_v4 }
 0x90a   : > { %8144 = vmatpush3.msra.mxu1 %v5094_v62  ;;  %8145 = vmatprep.mubr.msk.f32.mxu1 %vm8698_vm0, %v11198_v4 }
 0x90b   : > { %8153 = vmatprep.subr.mxu1 %v11198_v4  ;;  %8151 = vmatmul.mubr.f32.vlgmr.msra.gmra.mxu0 %v5129_v31 }
 0x90c   : > { %8160 = vmatprep.mubr.f32.mxu0 %v5654_v57 }
 0x90d   : > { %8146 = vmatmul.mubr.f32.vlgmr.msra.gmra.mxu1 %v5131_v60 }
 0x90e   : > { %8154 = vmatpush3.msra.mxu1 %v5094_v62  ;;  %8155 = vmatprep.mubr.msk.f32.mxu1 %vm8698_vm0, %v11198_v4  ;;  %v5582_v62 = vsel %vm536_vm1, %v5547_v44, 0 }
 0x90f   : > { %v5680_v58 = vand.u32 4294901760, %v5582_v62 }
 0x911   : > { %8156 = vmatmul.mubr.f32.vlgmr.msra.gmra.mxu1 %v5129_v31 }
 0x912   : > { %8168 = vmatprep.mubr.f32.mxu1 %v10885_v19 }
 0x9c1   : > { %v5135_v59 = vpop.f32.mrf.mxu0 }
 0x9c2   : > { %v5136_v35 = vadd.f32 %v5135_v59, %v5058_v14  ;;  %v5662_v59 = vand.u32 4294901760, %v5661_v25 }
 0x9c3   : > { %v8132_v26 = vpop.f32.mrf.mxu0 }
 0x9c4   : > { %v5681_v26 = vsub.f32 %v5582_v62, %v5680_v58 }
 0x9c5   : > { %v5285_v30 = vpop.f32.mrf.mxu0 }
 0x9c7   : > { %v8142_v1 = vpop.f32.mrf.mxu0 }
 0x9c9   : > { %v5211_v47 = vpop.f32.mrf.mxu1 }
 0x9ca   : > { %v5212_v3 = vadd.f32 %v5211_v47, %v5136_v35  ;;  %v5672_v35 = vand.u32 4294901760, %v5671_v24  ;;  %v5542_v47 = vld [vmem:[%s11039_s7] sm:$0xff] }
 0x9cb   : > { %v8137_v23 = vpop.f32.mrf.mxu1  ;;  %v5433_v2 = vpop.f32.mrf.mxu0 }
 0x9cc   : > { %v5286_v39 = vadd.f32 %v5285_v30, %v5212_v3  ;;  %v5540_v30 = vld [vmem:[#allocation5] sm:$0xff]  ;;  %v5663_v23 = vsub.f32 %v5661_v25, %v5662_v59 }
 0x9cd   : > { %v5359_v27 = vpop.f32.mrf.mxu1  ;;  %v8152_v5 = vpop.f32.mrf.mxu0 }
 0x9ce   : > { %v5360_v63 = vadd.f32 %v5359_v27, %v5286_v39  ;;  %v5673_v39 = vsub.f32 %v5671_v24, %v5672_v35 }
 0x9cf   : > { %v8147_v32 = vpop.f32.mrf.mxu1 }
 0x9d0   : > { %v5434_v16 = vadd.f32 %v5433_v2, %v5360_v63  ;;  %v5682_v2 = vand.u32 4294901760, %v5681_v26  ;;  %v5664_v63 = vand.u32 4294901760, %v5663_v23 }
 0x9d1   : > { %v5505_v46 = vpop.f32.mrf.mxu1 }
 0x9d2   : > { %v5506_v61 = vadd.f32 %v5505_v46, %v5434_v16  ;;  %v5683_v32 = vsub.f32 %v5681_v26, %v5682_v2  ;;  %v5674_v16 = vand.u32 4294901760, %v5673_v39 }
 0x9d3   : > { %v8157_v21 = vpop.f32.mrf.mxu1 }
 0x9d4   : > { %v5509_v56 = vadd.f32 %v8514_v11, %v5506_v61  ;;  %v5684_v21 = vand.u32 4294901760, %v5683_v32 }
 0x9d6   : > { %5510 = vadd.xlane.f32.xlu0 %v5509_v56  ;;  %v5522_v22 = vmul.f32 %v5509_v56, %v5509_v56 }
 0x9da   : > { %5523 = vadd.xlane.f32.xlu0 %v5522_v22  ;;  %v5565_v22 = vpop.permute.xlu1 %5564 }
 0x9f0   : > { %5569 = vperm.xlu0 %8364, %v5551_v6  }
 0xa5f   : > { %v5511_v40 = vpop.xlane.xlu0 %5510 }
 0xa60   : > { %v5512_v7 = vrot.slane %v5511_v40, 4 }
 0xa62   : > { %v5513_v29 = vadd.f32 %v5512_v7, %v5511_v40 }
 0xa63   : > { %v5524_v33 = vpop.xlane.xlu0 %5523 }
 0xa64   : > { %v5514_v42 = vrot.slane %v5513_v29, 2  ;;  %v5525_v50 = vrot.slane %v5524_v33, 4 }
 0xa66   : > { %v5526_v9 = vadd.f32 %v5525_v50, %v5524_v33  ;;  %v5515_v36 = vadd.f32 %v5514_v42, %v5513_v29 }
 0xa68   : > { %v5527_v51 = vrot.slane %v5526_v9, 2  ;;  %v5516_v55 = vrot.slane %v5515_v36, 1 }
 0xa6a   : > { %v5517_v54 = vadd.f32 %v5516_v55, %v5515_v36  ;;  %v5528_v45 = vadd.f32 %v5527_v51, %v5526_v9 }
 0xa6b   : > { %v5570_v50 = vpop.permute.xlu0 %5569 }
 0xa6c   : > { %8272 = vpush %v5517_v54  ;;  %v5529_v18 = vrot.slane %v5528_v45, 1 }
 0xa6e   : > { %v5530_v31 = vadd.f32 %v5529_v18, %v5528_v45 }
 0xa70   : > { %8274 = vpush %v5530_v31 }
 0xa9d   : > { %s8273_s27 = spop %8272 }
 0xa9e   : > { %v5519_v8 = vstv %s8273_s27 }
 0xa9f   : > { %v5521_v53 = vmul.f32 0.0009765625, %v5519_v8  ;;  %v6163_v8 = vld [vmem:[#allocation7] sm:$0xff] }
 0xaa0   : > { %v6172_v52 = vsel %vm6170_vm4, %v6163_v8, 0 }
 0xaa1   : > { %s8275_s19 = spop %8274  ;;  %v5534_v15 = vmul.f32 %v5521_v53, %v5521_v53  ;;  %v5536_v41 = vsub.f32 %v5509_v56, %v5521_v53 }
 0xaa2   : > { %v5532_v49 = vstv %s8275_s19  ;;  %s507_s19 = sand.u32 1, %s8683_s30  }
 0xaa3   : > { %v5533_v60 = vmul.f32 0.0009765625, %v5532_v49  ;;  %s6820_s18 = sshll.u32 %s507_s19, 3 }
 0xaa4   : > { %s509_s15 = scalar_lea.vmem [#allocation10], %s6820_s18 }
 0xaa5   : > { %v5535_v48 = vsub.f32 %v5533_v60, %v5534_v15  ;;  %s6708_s0 = sshll.u32 %s509_s15, 4  ;;  %s6709_s0 = int_to_ptr.vmem [resolvable:$true] %s6708_s0 }
 0xaa6   : > { %s8619_s1 = scalar_lea.vmem %s6709_s0, 128  ;;  %p8626_p2 = scmp.lt.s32.totalorder %s6709_s0, %s8624_s21 }
 0xaa7   : > { %v5537_v12 = vadd.f32 1e-05, %v5535_v48  ;;  %p8620_p8 = scmp.ne.s32.totalorder %s6709_s0, %s8619_s1  ;;  %p8627_p9 = scmp.lt.s32.totalorder %s8625_s17, %s8619_s1 }
 0xaa9   : > { %8494 = vrsqrt.f32 %v5537_v12  ;;  %p8621_p0 = pnand %p8620_p8, %p11201_p11  ;;  %p8628_p3 = por %p8627_p9, %p8626_p2 }
 0xaab   : > { %p8622_p1 = pneg %p8621_p0 }
 0xaad   : > { %p8629_p4 = pnand %p8628_p3, %p8622_p1 }
 0xab6   : > { %v8495_v14 = vpop.eup %8494 }
 0xab7   : > { %v5539_v1 = vmul.f32 %v8495_v14, %v5536_v41 }
 0xab9   : > { %v5541_v3 = vmul.f32 %v5540_v30, %v5539_v1 }
 0xabb   : > { %v10910_v27 = vadd.f32 %v5542_v47, %v5541_v3 }
 0xabd   : > { %v5615_v5 = vand.u32 4294901760, %v10910_v27 }
 0xabf   : > { %8158 = vmatprep.subr.mxu0 %v5615_v5  ;;  %v5722_v46 = vsub.f32 %v10910_v27, %v5615_v5 }
 0xac0   : > { %8159 = vmatpush3.msra.mxu0 %v5615_v5 }
 0xac1   : > { %8161 = vmatmul.mubr.f32.vlgmr.msra.gmra.mxu0 %v5664_v63  ;;  %8174 = vmatprep.subr.mxu0 %v5722_v46  ;;  %v5723_v61 = vand.u32 4294901760, %v5722_v46 }
 0xac2   : > { %8175 = vmatpush3.msra.mxu0 %v5722_v46  ;;  %8163 = vmatprep.mubr.f32.mxu0 %v5674_v16 }
 0xac3   : > { %8190 = vmatprep.subr.mxu0 %v5723_v61  ;;  %v5724_v11 = vsub.f32 %v5722_v46, %v5723_v61 }
 0xac5   : > { %8164 = vmatmul.mubr.f32.gmra.mxu0 %v5684_v21  ;;  %v5725_v56 = vand.u32 4294901760, %v5724_v11 }
 0xac6   : > { %8176 = vmatprep.mubr.f32.mxu0 %v10888_v37  ;;  %v5560_v37 = vpop.permute.xlu1 %5559 }
 0xac7   : > { %8166 = vmatprep.subr.mxu1 %v5725_v56 }
 0xac8   : > { %8167 = vmatpush3.msra.mxu1 %v5725_v56 }
 0xac9   : > { %8169 = vmatmul.mubr.f32.vlgmr.msra.gmra.mxu1 %v5660_v0  ;;  %8177 = vmatmul.mubr.f32.vlgmr.msra.gmra.mxu0 %v5661_v25  ;;  %v10925_v25 = vand.u32 4294901760, %v6172_v52 }
 0xaca   : > { %8182 = vmatprep.subr.mxu1 %v5615_v5  ;;  %8191 = vmatpush3.msra.mxu0 %v5723_v61 }
 0xacb   : > { %8183 = vmatpush3.msra.mxu1 %v5615_v5  ;;  %8171 = vmatprep.mubr.f32.mxu1 %v5670_v38  ;;  %v10928_v47 = vsub.f32 %v6172_v52, %v10925_v25 }
 0xacc   : > { %8198 = vmatprep.subr.mxu1 %v5615_v5  ;;  %8179 = vmatprep.mubr.f32.mxu0 %v5671_v24 }
 0xacd   : > { %8172 = vmatmul.mubr.f32.gmra.mxu1 %v5680_v58  ;;  %8180 = vmatmul.mubr.f32.gmra.mxu0 %v5681_v26  ;;  %v6245_v61 = vand.u32 4294901760, %v10928_v47 }
 0xace   : > { %8184 = vmatprep.mubr.f32.mxu1 %v5652_v13  ;;  %8192 = vmatprep.mubr.f32.mxu0 %v10885_v19 }
 0xacf   : > { %8206 = vmatprep.subr.mxu0 %v11198_v4 }
 0xad1   : > { %8185 = vmatmul.mubr.f32.vlgmr.msra.gmra.mxu1 %v5662_v59  ;;  %8193 = vmatmul.mubr.f32.vlgmr.msra.gmra.mxu0 %v5660_v0 }
 0xad2   : > { %8199 = vmatpush3.msra.mxu1 %v5615_v5  ;;  %8187 = vmatprep.mubr.f32.mxu1 %v5672_v35 }
 0xad3   : > { %8195 = vmatprep.mubr.f32.mxu0 %v5670_v38  ;;  %8217 = vmatprep.subr.mxu1 %v11198_v4 }
 0xad5   : > { %8188 = vmatmul.mubr.f32.gmra.mxu1 %v5682_v2  ;;  %8196 = vmatmul.mubr.f32.gmra.mxu0 %v5680_v58 }
 0xad6   : > { %8200 = vmatprep.mubr.f32.mxu1 %v10885_v19  ;;  %8214 = vmatprep.mubr.msk.f32.mxu0 %vm8698_vm0, %v11198_v4  ;;  %v5555_v19 = vpop.permute.xlu1 %5554 }
 0xad9   : > { %8201 = vmatmul.mubr.f32.vlgmr.msra.gmra.mxu1 %v5660_v0 }
 0xada   : > { %8203 = vmatprep.mubr.f32.mxu1 %v5670_v38 }
 0xadd   : > { %8204 = vmatmul.mubr.f32.gmra.mxu1 %v5680_v58 }
 0xade   : > { %8225 = vmatprep.mubr.msk.f32.mxu1 %vm8698_vm0, %v11198_v4 }
 0xb81   : > { %v8162_v6 = vpop.f32.mrf.mxu0 }
 0xb82   : > { %v5667_v29 = vadd.f32 %v8162_v6, %v5560_v37 }
 0xb83   : > { %v5656_v10 = vpop.f32.mrf.mxu0 }
 0xb84   : > { %v5657_v9 = vadd.f32 %v5656_v10, %v5555_v19 }
 0xb85   : > { %v8165_v28 = vpop.f32.mrf.mxu0 }
 0xb86   : > { %v5687_v54 = vadd.f32 %v8165_v28, %v5570_v50  ;;  %v6246_v28 = vsub.f32 %v10928_v47, %v6245_v61 }
 0xb87   : > { %v5676_v13 = vpop.f32.mrf.mxu0 }
 0xb88   : > { %v5677_v53 = vadd.f32 %v5676_v13, %v5565_v22  ;;  %v6247_v19 = vand.u32 4294901760, %v6246_v28  ;;  %v6691_v28 = vld [vmem:[#allocation8] sm:$0xff] }
 0xb89   : > { %v8170_v43 = vpop.f32.mrf.mxu1  ;;  %v8178_v57 = vpop.f32.mrf.mxu0 }
 0xb8a   : > { %v5769_v36 = vadd.f32 %v8170_v43, %v5667_v29 }
 0xb8b   : > { %v5762_v40 = vpop.f32.mrf.mxu1  ;;  %v5854_v7 = vpop.f32.mrf.mxu0 }
 0xb8c   : > { %v5763_v45 = vadd.f32 %v5762_v40, %v5657_v9  ;;  %v5862_v49 = vadd.f32 %v8178_v57, %v5769_v36 }
 0xb8d   : > { %v8173_v33 = vpop.f32.mrf.mxu1  ;;  %v8181_v42 = vpop.f32.mrf.mxu0 }
 0xb8e   : > { %v5781_v15 = vadd.f32 %v8173_v33, %v5687_v54  ;;  %v5855_v12 = vadd.f32 %v5854_v7, %v5763_v45 }
 0xb8f   : > { %v5774_v51 = vpop.f32.mrf.mxu1  ;;  %v5868_v55 = vpop.f32.mrf.mxu0 }
 0xb90   : > { %v5775_v34 = vadd.f32 %v5774_v51, %v5677_v53  ;;  %v5876_v44 = vadd.f32 %v8181_v42, %v5781_v15  ;;  %v6168_v15 = vpop.permute.xlu1 %6167 }
 0xb91   : > { %v8186_v18 = vpop.f32.mrf.mxu1  ;;  %v8194_v31 = vpop.f32.mrf.mxu0 }
 0xb92   : > { %v5958_v20 = vadd.f32 %v8186_v18, %v5862_v49  ;;  %v5869_v58 = vadd.f32 %v5868_v55, %v5775_v34 }
 0xb93   : > { %v5949_v60 = vpop.f32.mrf.mxu1  ;;  %v6047_v48 = vpop.f32.mrf.mxu0 }
 0xb94   : > { %v5950_v0 = vadd.f32 %v5949_v60, %v5855_v12  ;;  %v6054_v24 = vadd.f32 %v8194_v31, %v5958_v20 }
 0xb95   : > { %v8189_v17 = vpop.f32.mrf.mxu1  ;;  %v8197_v62 = vpop.f32.mrf.mxu0 }
 0xb96   : > { %v5974_v41 = vadd.f32 %v8189_v17, %v5876_v44  ;;  %v6048_v26 = vadd.f32 %v6047_v48, %v5950_v0 }
 0xb97   : > { %v5965_v38 = vpop.f32.mrf.mxu1  ;;  %v6059_v35 = vpop.f32.mrf.mxu0 }
 0xb98   : > { %v5966_v14 = vadd.f32 %v5965_v38, %v5869_v58  ;;  %v6066_v3 = vadd.f32 %v8197_v62, %v5974_v41 }
 0xb99   : > { %v8202_v59 = vpop.f32.mrf.mxu1 }
 0xb9a   : > { %v6144_v30 = vadd.f32 %v8202_v59, %v6054_v24  ;;  %v6060_v5 = vadd.f32 %v6059_v35, %v5966_v14 }
 0xb9b   : > { %v6137_v1 = vpop.f32.mrf.mxu1 }
 0xb9c   : > { %v6160_v23 = vmax.f32 %v6144_v30, 0.0  ;;  %v6138_v2 = vadd.f32 %v6137_v1, %v6048_v26 }
 0xb9d   : > { %v8205_v39 = vpop.f32.mrf.mxu1 }
 0xb9e   : > { %v10930_v63 = vand.u32 4294901760, %v6160_v23  ;;  %v6159_v32 = vmax.f32 %v6138_v2, 0.0  ;;  %v6156_v16 = vadd.f32 %v8205_v39, %v6066_v3 }
 0xb9f   : > { %v6149_v46 = vpop.f32.mrf.mxu1 }
 0xba0   : > { %v10933_v21 = vand.u32 4294901760, %v6159_v32  ;;  %v6162_v11 = vmax.f32 %v6156_v16, 0.0  ;;  %v6150_v56 = vadd.f32 %v6149_v46, %v6060_v5  ;;  %v6293_v22 = vsub.f32 %v6160_v23, %v10930_v63 }
 0xba2   : > { %v10936_v6 = vand.u32 4294901760, %v6162_v11  ;;  %v6161_v10 = vmax.f32 %v6150_v56, 0.0  ;;  %v6300_v37 = vsub.f32 %v6159_v32, %v10933_v21  ;;  %v6294_v57 = vand.u32 4294901760, %v6293_v22 }
 0xba4   : > { %v6279_v13 = vsub.f32 %v6162_v11, %v10936_v6  ;;  %v10943_v43 = vand.u32 4294901760, %v6161_v10  ;;  %8207 = vmatpush3.msra.mxu0 %v10936_v6  ;;  %v6301_v29 = vand.u32 4294901760, %v6300_v37  ;;  %v6295_v50 = vsub.f32 %v6293_v22, %v6294_v57 }
 0xba5   : > { %8208 = vmatprep.subr.mxu0 %v11198_v4 }
 0xba6   : > { %v6280_v40 = vand.u32 4294901760, %v6279_v13  ;;  %v6286_v7 = vsub.f32 %v6161_v10, %v10943_v43  ;;  %8209 = vmatpush3.msra.mxu0 %v10943_v43  ;;  %v6302_v51 = vsub.f32 %v6300_v37, %v6301_v29  ;;  %v6296_v54 = vand.u32 4294901760, %v6295_v50 }
 0xba7   : > { %8210 = vmatprep.subr.mxu0 %v11198_v4 }
 0xba8   : > { %v6281_v33 = vsub.f32 %v6279_v13, %v6280_v40  ;;  %v6287_v42 = vand.u32 4294901760, %v6286_v7  ;;  %8211 = vmatpush3.msra.mxu0 %v10930_v63  ;;  %v6303_v45 = vand.u32 4294901760, %v6302_v51 }
 0xba9   : > { %8212 = vmatprep.subr.mxu0 %v11198_v4 }
 0xbaa   : > { %v6288_v9 = vsub.f32 %v6286_v7, %v6287_v42  ;;  %8213 = vmatpush3.msra.mxu0 %v10933_v21  ;;  %v6282_v36 = vand.u32 4294901760, %v6281_v33 }
 0xbab   : > { %8215 = vmatmul.mubr.f32.vlgmr.msra.gmra.mxu0 %v6247_v19  ;;  %8228 = vmatprep.subr.mxu0 %v11198_v4 }
 0xbac   : > { %8218 = vmatpush3.msra.mxu1 %v6282_v36  ;;  %8229 = vmatpush3.msra.mxu0 %v6279_v13  ;;  %v6289_v55 = vand.u32 4294901760, %v6288_v9 }
 0xbad   : > { %8219 = vmatprep.subr.mxu1 %v11198_v4  ;;  %8230 = vmatprep.subr.mxu0 %v11198_v4 }
 0xbae   : > { %8220 = vmatpush3.msra.mxu1 %v6289_v55  ;;  %8231 = vmatpush3.msra.mxu0 %v6286_v7 }
 0xbaf   : > { %8221 = vmatprep.subr.mxu1 %v11198_v4  ;;  %8232 = vmatprep.subr.mxu0 %v11198_v4 }
 0xbb0   : > { %8222 = vmatpush3.msra.mxu1 %v6296_v54  ;;  %8233 = vmatpush3.msra.mxu0 %v6293_v22 }
 0xbb1   : > { %8223 = vmatprep.subr.mxu1 %v11198_v4  ;;  %8234 = vmatprep.subr.mxu0 %v11198_v4 }
 0xbb2   : > { %8224 = vmatpush3.msra.mxu1 %v6303_v45  ;;  %8235 = vmatpush3.msra.mxu0 %v6300_v37 }
 0xbb3   : > { %8226 = vmatmul.mubr.f32.vlgmr.msra.gmra.mxu1 %v10925_v25  ;;  %8236 = vmatprep.mubr.msk.f32.mxu0 %vm8698_vm0, %v11198_v4 }
 0xbb4   : > { %8239 = vmatprep.subr.mxu1 %v11198_v4  ;;  %8250 = vmatprep.subr.mxu0 %v11198_v4 }
 0xbb5   : > { %8237 = vmatmul.mubr.f32.vlgmr.msra.gmra.mxu0 %v10928_v47  ;;  %8240 = vmatpush3.msra.mxu1 %v10936_v6 }
 0xbb6   : > { %8251 = vmatpush3.msra.mxu0 %v6280_v40  ;;  %8241 = vmatprep.subr.mxu1 %v11198_v4 }
 0xbb7   : > { %8252 = vmatprep.subr.mxu0 %v11198_v4  ;;  %8242 = vmatpush3.msra.mxu1 %v10943_v43 }
 0xbb8   : > { %8253 = vmatpush3.msra.mxu0 %v6287_v42  ;;  %8243 = vmatprep.subr.mxu1 %v11198_v4 }
 0xbb9   : > { %8254 = vmatprep.subr.mxu0 %v11198_v4  ;;  %8244 = vmatpush3.msra.mxu1 %v10930_v63 }
 0xbba   : > { %8255 = vmatpush3.msra.mxu0 %v6294_v57  ;;  %8245 = vmatprep.subr.mxu1 %v11198_v4 }
 0xbbb   : > { %8256 = vmatprep.subr.mxu0 %v11198_v4  ;;  %8246 = vmatpush3.msra.mxu1 %v10933_v21 }
 0xbbc   : > { %8247 = vmatprep.mubr.msk.f32.mxu1 %vm8698_vm0, %v11198_v4  ;;  %8257 = vmatpush3.msra.mxu0 %v6301_v29 }
 0xbbd   : > { %8248 = vmatmul.mubr.f32.vlgmr.msra.gmra.mxu1 %v6245_v61  ;;  %8261 = vmatprep.subr.mxu1 %v11198_v4 }
 0xbbe   : > { %8258 = vmatprep.mubr.msk.f32.mxu0 %vm8698_vm0, %v11198_v4  ;;  %8262 = vmatpush3.msra.mxu1 %v10936_v6  ;;  %v6689_v6 = vld [vmem:[%s11044_s12] sm:$0xff] }
 0xbbf   : > { %8259 = vmatmul.mubr.f32.vlgmr.msra.gmra.mxu0 %v10925_v25  ;;  %8263 = vmatprep.subr.mxu1 %v11198_v4 }
 0xbc0   : > { %8264 = vmatpush3.msra.mxu1 %v10943_v43  ;;  %8269 = vmatprep.mubr.msk.f32.mxu1 %vm8698_vm0, %v11198_v4 }
 0xbc1   : > { %8265 = vmatprep.subr.mxu1 %v11198_v4 }
 0xbc2   : > { %8266 = vmatpush3.msra.mxu1 %v10930_v63 }
 0xbc3   : > { %8267 = vmatprep.subr.mxu1 %v11198_v4 }
 0xbc4   : > { %8268 = vmatpush3.msra.mxu1 %v10933_v21 }
 0xbc5   : > { %8270 = vmatmul.mubr.f32.vlgmr.msra.gmra.mxu1 %v10925_v25 }
 0xc6b   : > { %v6249_v18 = vpop.f32.mrf.mxu0 }
 0xc6c   : > { %v6250_v48 = vadd.f32 %v6249_v18, %v6168_v15 }
 0xc6d   : > { %v8216_v31 = vpop.f32.mrf.mxu0 }
 0xc73   : > { %v6340_v8 = vpop.f32.mrf.mxu1 }
 0xc74   : > { %v6341_v12 = vadd.f32 %v6340_v8, %v6250_v48 }
 0xc75   : > { %v6420_v53 = vpop.f32.mrf.mxu0  ;;  %v8227_v49 = vpop.f32.mrf.mxu1 }
 0xc76   : > { %v6421_v20 = vadd.f32 %v6420_v53, %v6341_v12 }
 0xc77   : > { %v8238_v60 = vpop.f32.mrf.mxu0 }
 0xc7d   : > { %v6497_v34 = vpop.f32.mrf.mxu1 }
 0xc7e   : > { %v6498_v44 = vadd.f32 %v6497_v34, %v6421_v20 }
 0xc7f   : > { %v6580_v52 = vpop.f32.mrf.mxu0  ;;  %v8249_v17 = vpop.f32.mrf.mxu1 }
 0xc80   : > { %v6581_v4 = vadd.f32 %v6580_v52, %v6498_v44 }
 0xc81   : > { %v8260_v0 = vpop.f32.mrf.mxu0 }
 0xc85   : > { %v6655_v38 = vpop.f32.mrf.mxu1 }
 0xc86   : > { %v6656_v62 = vadd.f32 %v6655_v38, %v6581_v4 }
 0xc87   : > { %v8271_v58 = vpop.f32.mrf.mxu1 }
 0xc88   : > { %v6659_v25 = vadd.f32 %v6656_v62, %v10910_v27 }
 0xc8a   : > { %6660 = vadd.xlane.f32.xlu1 %v6659_v25  ;;  %v6671_v24 = vmul.f32 %v6659_v25, %v6659_v25 }
 0xc8c   : > { %6672 = vadd.xlane.f32.xlu0 %v6671_v24 }
 0xd13   : > { %v6661_v41 = vpop.xlane.xlu1 %6660 }
 0xd14   : > { %v6662_v59 = vrot.slane %v6661_v41, 4 }
 0xd15   : > { %v6673_v26 = vpop.xlane.xlu0 %6672 }
 0xd16   : > { %v6663_v14 = vadd.f32 %v6662_v59, %v6661_v41  ;;  %v6674_v30 = vrot.slane %v6673_v26, 4 }
 0xd18   : > { %v6664_v35 = vrot.slane %v6663_v14, 2  ;;  %v6675_v1 = vadd.f32 %v6674_v30, %v6673_v26 }
 0xd1a   : > { %v6665_v47 = vadd.f32 %v6664_v35, %v6663_v14  ;;  %v6676_v3 = vrot.slane %v6675_v1, 2 }
 0xd1c   : > { %v6677_v23 = vadd.f32 %v6676_v3, %v6675_v1  ;;  %v6666_v2 = vrot.slane %v6665_v47, 1 }
 0xd1e   : > { %v6667_v39 = vadd.f32 %v6666_v2, %v6665_v47  ;;  %v6678_v5 = vrot.slane %v6677_v23, 1 }
 0xd20   : > { %8276 = vpush %v6667_v39  ;;  %v6679_v63 = vadd.f32 %v6678_v5, %v6677_v23 }
 0xd22   : > { %8278 = vpush %v6679_v63 }
 0xd51   : > { %s8277_s20 = spop %8276 }
 0xd52   : > { %v6669_v27 = vstv %s8277_s20  ;;  %s6706_s20 = scalar_lea.hbm %s11046_s14, %s6823_s26 }
 0xd53   : > { %v6670_v32 = vmul.f32 0.0009765625, %v6669_v27  ;;  %s8279_s27 = spop %8278 }
 0xd54   : > { %v6681_v16 = vstv %s8279_s27  ;;  %s6695_s27 = scalar_lea.sflag [#allocation4], %s507_s19 }
 0xd55   : > { %v6683_v46 = vmul.f32 %v6670_v32, %v6670_v32  ;;  %v6682_v61 = vmul.f32 0.0009765625, %v6681_v16  ;;  %v6685_v56 = vsub.f32 %v6659_v25, %v6670_v32 }
 0xd57   : > { %v6684_v21 = vsub.f32 %v6682_v61, %v6683_v46 }
 0xd59   : > { %v6686_v11 = vadd.f32 1e-05, %v6684_v21 }
 0xd5b   : > { %8496 = vrsqrt.f32 %v6686_v11 }
 0xd68   : > { %v8497_v22 = vpop.eup %8496 }
 0xd69   : > { %v6688_v10 = vmul.f32 %v8497_v22, %v6685_v56 }
 0xd6b   : > { %v6690_v37 = vmul.f32 %v6689_v6, %v6688_v10 }
 0xd6d   : > { %v6692_v13 = vadd.f32 %v6691_v28, %v6690_v37 }
 0xd6f   : > { %6693 = vst [vmem:[%s509_s15] sm:$0xff] %v6692_v13 }
 0xd70   : > { %8632 = shalt.err (!%p8629_p4)
}
 0xd71   : > { %s8633_s18 = scalar_lea.hbm %s6706_s20, 128  ;;  %s8637_s15 = scalar_lea.hbm %s11046_s14, 256 }
 0xd72   : > { %p8634_p13 = scmp.ne.s32.totalorder %s6706_s20, %s8633_s18  ;;  %p8638_p10 = scmp.lt.s32.totalorder %s6706_s20, %s11046_s14 }
 0xd73   : > { %p8639_p12 = scmp.lt.s32.totalorder %s8637_s15, %s8633_s18 }
 0xd74   : > { %p8635_p5 = pnand %p8634_p13, %p11201_p11 }
 0xd75   : > { %p8640_p7 = por %p8639_p12, %p8638_p10 }
 0xd76   : > { %p8636_p6 = pneg %p8635_p5 }
 0xd78   : > { %p8641_p8 = pnand %p8640_p7, %p8636_p6 }
 0xd7a   : > { %8644 = shalt.err (!%p8641_p8)
}
 0xd7b   : > { %8296 = dma.vmem_to_hbm [thread:$0]  (%p11201_p11), %s6709_s0, 128, %s6706_s20, %s6695_s27  }
 0xd7c PF: > { %p8323_p0 = scmp.ge.s32.totalorder %s8691_s16, 2  ;;  %s6720_s1 = sand.u32 1, %s8679_s29  }
 0xd7d   : > { %p11202_p1 = scmp.ne.s32.totalorder %s11094_s24, 0  ;;  %s6721_s28 = scalar_lea.sflag [#allocation4], %s6720_s1 }
 0xd7f   : > { %p8312_p2 = pnand %p8323_p0, %p11202_p1 }
 0xd81   : > { %p8313_p9 = pneg %p8312_p2 }
 0xd83   : > { %8674 = dma.done.wait (%p8313_p9), %s6721_s28, 128  }
 0xd84   : > { %8676 = vsyncadd (%p8313_p9), %s6721_s28, 4294967168  ;;  %s11203_s16 = sld [smem:[#allocation16_spill]]  ;;  %s11206_s29 = smov %s8683_s30 }
 0xd85   : > { %s11204_s21 = sld [smem:[#allocation15_spill]] }
 0xd86   : > { %s11205_s15 = sld [smem:[#allocation17_spill]] }
 0xd8a   : > { %p27_p3 = scmp.ge.s32.totalorder %s11203_s16, 4  }
 0xd8b   : > { %s11207_s30 = smov %s11204_s21 }
 0xd8c   :  { %29 = sbr.rel (!%p27_p3) target bundleno = 9 (0x9), region = 128 }
 0xd91   :  { %6726 = vsyncpa [#allocation3], 1 }
 0xd92   :  { %6728 = vsyncpa [#allocation3 + $0x1], 1 }
 0xd93   :  { %6729 = vsyncpa [#allocation6], 1 }
 0xd94   :  { %6730 = vsyncpa [#allocation9], 1 }
 0xd95   :  { %6731 = vsyncpa [#allocation4], 1 }
 0xd96   :  { %6733 = vsyncpa [#allocation4 + $0x1], 1 }

</bundles_post_ra>
